<compile_context>
chip_gen: v7x
topology: tpu7x:2x2x1
jax: 0.10.0
libtpu: 0.0.40
codegen_flags: <defaults>
</compile_context>

<pallas_src>
import jax
import jax.numpy as jnp
from jax.experimental import pallas as pl
from jax.experimental.pallas import tpu as pltpu

BN_EPS = 1e-5
H1, H2 = 256, 128        # hidden_dims default of the PyTorch module
OUT_DIM = 64             # output_dim default
N_ENC = 4                # profile / activity / network / interaction
ENC_NPARAM = 8           # w1, b1, scale1, shift1, w2, b2, scale2, shift2
FUSE_NPARAM = 6          # wf1, bf1, scalef1, shiftf1, wf2, bf2


def _forward_kernel(*refs):
    # refs = (x_profile, x_activity, x_network, x_interaction,
    #         4*8 encoder params, 6 fusion params, out)
    x_refs = refs[:N_ENC]
    params = refs[N_ENC:N_ENC + N_ENC * ENC_NPARAM + FUSE_NPARAM]
    out_ref = refs[-1]

    def linear_relu_bn(x, w_ref, b_ref, s_ref, t_ref):
        # Linear -> ReLU -> folded BatchNorm1d (eval) -> Dropout (eval = id)
        h = jnp.dot(x, w_ref[...], preferred_element_type=jnp.float32) + b_ref[...]
        h = jnp.maximum(h, 0.0)
        return h * s_ref[...] + t_ref[...]

    # --- the four feature encoders ---------------------------------------
    enc_out = []
    for e in range(N_ENC):
        w1, b1, s1, t1, w2, b2, s2, t2 = params[e * ENC_NPARAM:(e + 1) * ENC_NPARAM]
        h = linear_relu_bn(x_refs[e][...].astype(jnp.float32), w1, b1, s1, t1)
        enc_out.append(linear_relu_bn(h, w2, b2, s2, t2))          # (TB, H2)

    # --- fusion head (concat folded into 4 partial dots) ------------------
    wf1, bf1, sf1, tf1, wf2, bf2 = params[N_ENC * ENC_NPARAM:]
    h = bf1[...].astype(jnp.float32)                               # (1, H1) -> bcast
    for e in range(N_ENC):
        h = h + jnp.dot(enc_out[e], wf1[e * H2:(e + 1) * H2, :],
                        preferred_element_type=jnp.float32)
    h = jnp.maximum(h, 0.0) * sf1[...] + tf1[...]
    out = jnp.dot(h, wf2[...], preferred_element_type=jnp.float32) + bf2[...]
    out_ref[...] = out.astype(out_ref.dtype)


def network_model_forward(inputs, params, *, block_b=None):
    """inputs: tuple of 4 (B, in_dim_i) arrays. params: flat list (kernel order).

    Returns the (B, OUT_DIM) f32 output of NetworkModel.forward (eval mode).
    """
    B = inputs[0].shape[0]
    if block_b is None:
        block_b = 256 if B % 256 == 0 else (128 if B % 128 == 0 else B)
    assert B % block_b == 0, "batch must be divisible by the batch tile"
    grid = (B // block_b,)

    in_specs = []
    for x in inputs:
        d = x.shape[1]
        in_specs.append(pl.BlockSpec((block_b, d), lambda i: (i, 0)))
    for p in params:
        r, c = p.shape
        # full-array block, constant index -> stays resident across grid steps
        in_specs.append(pl.BlockSpec((r, c), lambda i: (0, 0)))

    return pl.pallas_call(
        _forward_kernel,
        out_shape=jax.ShapeDtypeStruct((B, OUT_DIM), jnp.float32),
        grid_spec=pltpu.PrefetchScalarGridSpec(
            num_scalar_prefetch=0,
            grid=grid,
            in_specs=in_specs,
            out_specs=pl.BlockSpec((block_b, OUT_DIM), lambda i: (i, 0)),
        ),
        compiler_params=pltpu.CompilerParams(
            dimension_semantics=("parallel",),
        ),
    )(*inputs, *params)


# ---------------------------------------------------------------------------
# Parameter construction (Linear weights/bias + folded eval-mode BatchNorm).
# ---------------------------------------------------------------------------
def init_params(key, in_dims, dtype=jnp.float32):
    keys = iter(jax.random.split(key, 1024))

    def linear(fan_in, fan_out):
        w = jax.random.normal(next(keys), (fan_in, fan_out), dtype) / jnp.sqrt(
            jnp.asarray(fan_in, dtype))
        b = jax.random.normal(next(keys), (1, fan_out), dtype) * 0.1
        return w, b

    def bn_folded(n):
        gamma = jax.random.uniform(next(keys), (1, n), dtype, 0.5, 1.5)
        beta = jax.random.normal(next(keys), (1, n), dtype) * 0.1
        mean = jax.random.normal(next(keys), (1, n), dtype) * 0.1
        var = jax.random.uniform(next(keys), (1, n), dtype, 0.5, 1.5)
        scale = gamma / jnp.sqrt(var + BN_EPS)
        shift = beta - mean * scale
        return scale, shift

    params = []
    for d in in_dims:
        w1, b1 = linear(d, H1)
        s1, t1 = bn_folded(H1)
        w2, b2 = linear(H1, H2)
        s2, t2 = bn_folded(H2)
        params += [w1, b1, s1, t1, w2, b2, s2, t2]
    wf1, bf1 = linear(N_ENC * H2, H1)
    sf1, tf1 = bn_folded(H1)
    wf2, bf2 = linear(H1, OUT_DIM)
    params += [wf1, bf1, sf1, tf1, wf2, bf2]
    return params


def ref_forward(inputs, params):
    """Pure-JAX reference of the same eval-mode forward."""
    hi = jax.lax.Precision.HIGHEST

    def layer(x, w, b, s, t):
        h = jnp.dot(x, w, preferred_element_type=jnp.float32, precision=hi) + b
        return jnp.maximum(h, 0.0) * s + t

    outs = []
    for e, x in enumerate(inputs):
        w1, b1, s1, t1, w2, b2, s2, t2 = params[e * ENC_NPARAM:(e + 1) * ENC_NPARAM]
        h = layer(x.astype(jnp.float32), w1, b1, s1, t1)
        outs.append(layer(h, w2, b2, s2, t2))
    combined = jnp.concatenate(outs, axis=1)
    wf1, bf1, sf1, tf1, wf2, bf2 = params[N_ENC * ENC_NPARAM:]
    h = layer(combined, wf1, bf1, sf1, tf1)
    return jnp.dot(h, wf2, preferred_element_type=jnp.float32, precision=hi) + bf2


if __name__ == "__main__":
    B = 8
    in_dims = (32, 48, 16, 24)  # profile / activity / network / interaction dims

    key = jax.random.PRNGKey(0)
    key, *ikeys = jax.random.split(key, 1 + len(in_dims))
    inputs = tuple(
        jax.random.normal(k, (B, d), dtype=jnp.float32)
        for k, d in zip(ikeys, in_dims)
    )
    params = init_params(key, in_dims)

    out = network_model_forward(inputs, params)
    jax.block_until_ready(out)

    expected = ref_forward(inputs, params)
    assert out.shape == (B, OUT_DIM), out.shape
    max_err = jnp.max(jnp.abs(out - expected))
    assert jnp.allclose(out, expected, rtol=5e-3, atol=5e-3), float(max_err)
    print("KERNEL_OK")
</pallas_src>

<mosaic_0001>
module attributes {stable_mosaic.version = 11 : i64} {
  func.func @_forward_kernel(%arg0: i32, %arg1: memref<8x32xf32, #tpu.memory_space<vmem>>, %arg2: memref<8x48xf32, #tpu.memory_space<vmem>>, %arg3: memref<8x16xf32, #tpu.memory_space<vmem>>, %arg4: memref<8x24xf32, #tpu.memory_space<vmem>>, %arg5: memref<32x256xf32, #tpu.memory_space<vmem>>, %arg6: memref<1x256xf32, #tpu.memory_space<vmem>>, %arg7: memref<1x256xf32, #tpu.memory_space<vmem>>, %arg8: memref<1x256xf32, #tpu.memory_space<vmem>>, %arg9: memref<256x128xf32, #tpu.memory_space<vmem>>, %arg10: memref<1x128xf32, #tpu.memory_space<vmem>>, %arg11: memref<1x128xf32, #tpu.memory_space<vmem>>, %arg12: memref<1x128xf32, #tpu.memory_space<vmem>>, %arg13: memref<48x256xf32, #tpu.memory_space<vmem>>, %arg14: memref<1x256xf32, #tpu.memory_space<vmem>>, %arg15: memref<1x256xf32, #tpu.memory_space<vmem>>, %arg16: memref<1x256xf32, #tpu.memory_space<vmem>>, %arg17: memref<256x128xf32, #tpu.memory_space<vmem>>, %arg18: memref<1x128xf32, #tpu.memory_space<vmem>>, %arg19: memref<1x128xf32, #tpu.memory_space<vmem>>, %arg20: memref<1x128xf32, #tpu.memory_space<vmem>>, %arg21: memref<16x256xf32, #tpu.memory_space<vmem>>, %arg22: memref<1x256xf32, #tpu.memory_space<vmem>>, %arg23: memref<1x256xf32, #tpu.memory_space<vmem>>, %arg24: memref<1x256xf32, #tpu.memory_space<vmem>>, %arg25: memref<256x128xf32, #tpu.memory_space<vmem>>, %arg26: memref<1x128xf32, #tpu.memory_space<vmem>>, %arg27: memref<1x128xf32, #tpu.memory_space<vmem>>, %arg28: memref<1x128xf32, #tpu.memory_space<vmem>>, %arg29: memref<24x256xf32, #tpu.memory_space<vmem>>, %arg30: memref<1x256xf32, #tpu.memory_space<vmem>>, %arg31: memref<1x256xf32, #tpu.memory_space<vmem>>, %arg32: memref<1x256xf32, #tpu.memory_space<vmem>>, %arg33: memref<256x128xf32, #tpu.memory_space<vmem>>, %arg34: memref<1x128xf32, #tpu.memory_space<vmem>>, %arg35: memref<1x128xf32, #tpu.memory_space<vmem>>, %arg36: memref<1x128xf32, #tpu.memory_space<vmem>>, %arg37: memref<512x256xf32, #tpu.memory_space<vmem>>, %arg38: memref<1x256xf32, #tpu.memory_space<vmem>>, %arg39: memref<1x256xf32, #tpu.memory_space<vmem>>, %arg40: memref<1x256xf32, #tpu.memory_space<vmem>>, %arg41: memref<256x64xf32, #tpu.memory_space<vmem>>, %arg42: memref<1x64xf32, #tpu.memory_space<vmem>>, %arg43: memref<8x64xf32, #tpu.memory_space<vmem>>) attributes {dimension_semantics = [#tpu.dimension_semantics<parallel>], iteration_bounds = array<i64: 1>, scalar_prefetch = 0 : i64, scratch_operands = 0 : i64, tpu.core_type = #tpu.core_type<tc>, window_params = [{transform_indices = @transform_0, window_bounds = array<i64: 8, 32>}, {transform_indices = @transform_1, window_bounds = array<i64: 8, 48>}, {transform_indices = @transform_2, window_bounds = array<i64: 8, 16>}, {transform_indices = @transform_3, window_bounds = array<i64: 8, 24>}, {pipeline_mode = #tpu.pipeline_mode<synchronous>, transform_indices = @transform_4, window_bounds = array<i64: 32, 256>}, {pipeline_mode = #tpu.pipeline_mode<synchronous>, transform_indices = @transform_5, window_bounds = array<i64: 1, 256>}, {pipeline_mode = #tpu.pipeline_mode<synchronous>, transform_indices = @transform_6, window_bounds = array<i64: 1, 256>}, {pipeline_mode = #tpu.pipeline_mode<synchronous>, transform_indices = @transform_7, window_bounds = array<i64: 1, 256>}, {pipeline_mode = #tpu.pipeline_mode<synchronous>, transform_indices = @transform_8, window_bounds = array<i64: 256, 128>}, {pipeline_mode = #tpu.pipeline_mode<synchronous>, transform_indices = @transform_9, window_bounds = array<i64: 1, 128>}, {pipeline_mode = #tpu.pipeline_mode<synchronous>, transform_indices = @transform_10, window_bounds = array<i64: 1, 128>}, {pipeline_mode = #tpu.pipeline_mode<synchronous>, transform_indices = @transform_11, window_bounds = array<i64: 1, 128>}, {pipeline_mode = #tpu.pipeline_mode<synchronous>, transform_indices = @transform_12, window_bounds = array<i64: 48, 256>}, {pipeline_mode = #tpu.pipeline_mode<synchronous>, transform_indices = @transform_13, window_bounds = array<i64: 1, 256>}, {pipeline_mode = #tpu.pipeline_mode<synchronous>, transform_indices = @transform_14, window_bounds = array<i64: 1, 256>}, {pipeline_mode = #tpu.pipeline_mode<synchronous>, transform_indices = @transform_15, window_bounds = array<i64: 1, 256>}, {pipeline_mode = #tpu.pipeline_mode<synchronous>, transform_indices = @transform_16, window_bounds = array<i64: 256, 128>}, {pipeline_mode = #tpu.pipeline_mode<synchronous>, transform_indices = @transform_17, window_bounds = array<i64: 1, 128>}, {pipeline_mode = #tpu.pipeline_mode<synchronous>, transform_indices = @transform_18, window_bounds = array<i64: 1, 128>}, {pipeline_mode = #tpu.pipeline_mode<synchronous>, transform_indices = @transform_19, window_bounds = array<i64: 1, 128>}, {pipeline_mode = #tpu.pipeline_mode<synchronous>, transform_indices = @transform_20, window_bounds = array<i64: 16, 256>}, {pipeline_mode = #tpu.pipeline_mode<synchronous>, transform_indices = @transform_21, window_bounds = array<i64: 1, 256>}, {pipeline_mode = #tpu.pipeline_mode<synchronous>, transform_indices = @transform_22, window_bounds = array<i64: 1, 256>}, {pipeline_mode = #tpu.pipeline_mode<synchronous>, transform_indices = @transform_23, window_bounds = array<i64: 1, 256>}, {pipeline_mode = #tpu.pipeline_mode<synchronous>, transform_indices = @transform_24, window_bounds = array<i64: 256, 128>}, {pipeline_mode = #tpu.pipeline_mode<synchronous>, transform_indices = @transform_25, window_bounds = array<i64: 1, 128>}, {pipeline_mode = #tpu.pipeline_mode<synchronous>, transform_indices = @transform_26, window_bounds = array<i64: 1, 128>}, {pipeline_mode = #tpu.pipeline_mode<synchronous>, transform_indices = @transform_27, window_bounds = array<i64: 1, 128>}, {pipeline_mode = #tpu.pipeline_mode<synchronous>, transform_indices = @transform_28, window_bounds = array<i64: 24, 256>}, {pipeline_mode = #tpu.pipeline_mode<synchronous>, transform_indices = @transform_29, window_bounds = array<i64: 1, 256>}, {pipeline_mode = #tpu.pipeline_mode<synchronous>, transform_indices = @transform_30, window_bounds = array<i64: 1, 256>}, {pipeline_mode = #tpu.pipeline_mode<synchronous>, transform_indices = @transform_31, window_bounds = array<i64: 1, 256>}, {pipeline_mode = #tpu.pipeline_mode<synchronous>, transform_indices = @transform_32, window_bounds = array<i64: 256, 128>}, {pipeline_mode = #tpu.pipeline_mode<synchronous>, transform_indices = @transform_33, window_bounds = array<i64: 1, 128>}, {pipeline_mode = #tpu.pipeline_mode<synchronous>, transform_indices = @transform_34, window_bounds = array<i64: 1, 128>}, {pipeline_mode = #tpu.pipeline_mode<synchronous>, transform_indices = @transform_35, window_bounds = array<i64: 1, 128>}, {pipeline_mode = #tpu.pipeline_mode<synchronous>, transform_indices = @transform_36, window_bounds = array<i64: 512, 256>}, {pipeline_mode = #tpu.pipeline_mode<synchronous>, transform_indices = @transform_37, window_bounds = array<i64: 1, 256>}, {pipeline_mode = #tpu.pipeline_mode<synchronous>, transform_indices = @transform_38, window_bounds = array<i64: 1, 256>}, {pipeline_mode = #tpu.pipeline_mode<synchronous>, transform_indices = @transform_39, window_bounds = array<i64: 1, 256>}, {pipeline_mode = #tpu.pipeline_mode<synchronous>, transform_indices = @transform_40, window_bounds = array<i64: 256, 64>}, {pipeline_mode = #tpu.pipeline_mode<synchronous>, transform_indices = @transform_41, window_bounds = array<i64: 1, 64>}, {transform_indices = @transform_42, window_bounds = array<i64: 8, 64>}]} {
    %c0 = arith.constant 0 : index
    %c0_0 = arith.constant 0 : index
    %0 = vector.load %arg1[%c0, %c0_0] : memref<8x32xf32, #tpu.memory_space<vmem>>, vector<8x32xf32>
    %c0_1 = arith.constant 0 : index
    %c0_2 = arith.constant 0 : index
    %1 = vector.load %arg5[%c0_1, %c0_2] : memref<32x256xf32, #tpu.memory_space<vmem>>, vector<32x256xf32>
    %cst = arith.constant dense<0.000000e+00> : vector<8x256xf32>
    %2 = tpu.matmul %0, %1, %cst {dimension_numbers = #tpu.dot_dimension_numbers<[1], [0], [0], [1], [0, 0, 1, 1], [], []>} : vector<8x32xf32>, vector<32x256xf32>, vector<8x256xf32> -> vector<8x256xf32>
    %c0_3 = arith.constant 0 : index
    %c0_4 = arith.constant 0 : index
    %3 = vector.load %arg6[%c0_3, %c0_4] : memref<1x256xf32, #tpu.memory_space<vmem>>, vector<1x256xf32>
    %4 = vector.broadcast %3 : vector<1x256xf32> to vector<8x256xf32>
    %5 = arith.addf %2, %4 : vector<8x256xf32>
    %cst_5 = arith.constant 0.000000e+00 : f32
    %6 = vector.broadcast %cst_5 : f32 to vector<8x256xf32>
    %7 = arith.maximumf %5, %6 : vector<8x256xf32>
    %c0_6 = arith.constant 0 : index
    %c0_7 = arith.constant 0 : index
    %8 = vector.load %arg7[%c0_6, %c0_7] : memref<1x256xf32, #tpu.memory_space<vmem>>, vector<1x256xf32>
    %9 = vector.broadcast %8 : vector<1x256xf32> to vector<8x256xf32>
    %10 = arith.mulf %7, %9 : vector<8x256xf32>
    %c0_8 = arith.constant 0 : index
    %c0_9 = arith.constant 0 : index
    %11 = vector.load %arg8[%c0_8, %c0_9] : memref<1x256xf32, #tpu.memory_space<vmem>>, vector<1x256xf32>
    %12 = vector.broadcast %11 : vector<1x256xf32> to vector<8x256xf32>
    %13 = arith.addf %10, %12 : vector<8x256xf32>
    %c0_10 = arith.constant 0 : index
    %c0_11 = arith.constant 0 : index
    %14 = vector.load %arg9[%c0_10, %c0_11] : memref<256x128xf32, #tpu.memory_space<vmem>>, vector<256x128xf32>
    %cst_12 = arith.constant dense<0.000000e+00> : vector<8x128xf32>
    %15 = tpu.matmul %13, %14, %cst_12 {dimension_numbers = #tpu.dot_dimension_numbers<[1], [0], [0], [1], [0, 0, 1, 1], [], []>} : vector<8x256xf32>, vector<256x128xf32>, vector<8x128xf32> -> vector<8x128xf32>
    %c0_13 = arith.constant 0 : index
    %c0_14 = arith.constant 0 : index
    %16 = vector.load %arg10[%c0_13, %c0_14] : memref<1x128xf32, #tpu.memory_space<vmem>>, vector<1x128xf32>
    %17 = vector.broadcast %16 : vector<1x128xf32> to vector<8x128xf32>
    %18 = arith.addf %15, %17 : vector<8x128xf32>
    %cst_15 = arith.constant 0.000000e+00 : f32
    %19 = vector.broadcast %cst_15 : f32 to vector<8x128xf32>
    %20 = arith.maximumf %18, %19 : vector<8x128xf32>
    %c0_16 = arith.constant 0 : index
    %c0_17 = arith.constant 0 : index
    %21 = vector.load %arg11[%c0_16, %c0_17] : memref<1x128xf32, #tpu.memory_space<vmem>>, vector<1x128xf32>
    %22 = vector.broadcast %21 : vector<1x128xf32> to vector<8x128xf32>
    %23 = arith.mulf %20, %22 : vector<8x128xf32>
    %c0_18 = arith.constant 0 : index
    %c0_19 = arith.constant 0 : index
    %24 = vector.load %arg12[%c0_18, %c0_19] : memref<1x128xf32, #tpu.memory_space<vmem>>, vector<1x128xf32>
    %25 = vector.broadcast %24 : vector<1x128xf32> to vector<8x128xf32>
    %26 = arith.addf %23, %25 : vector<8x128xf32>
    %c0_20 = arith.constant 0 : index
    %c0_21 = arith.constant 0 : index
    %27 = vector.load %arg2[%c0_20, %c0_21] : memref<8x48xf32, #tpu.memory_space<vmem>>, vector<8x48xf32>
    %c0_22 = arith.constant 0 : index
    %c0_23 = arith.constant 0 : index
    %28 = vector.load %arg13[%c0_22, %c0_23] : memref<48x256xf32, #tpu.memory_space<vmem>>, vector<48x256xf32>
    %cst_24 = arith.constant dense<0.000000e+00> : vector<8x256xf32>
    %29 = tpu.matmul %27, %28, %cst_24 {dimension_numbers = #tpu.dot_dimension_numbers<[1], [0], [0], [1], [0, 0, 1, 1], [], []>} : vector<8x48xf32>, vector<48x256xf32>, vector<8x256xf32> -> vector<8x256xf32>
    %c0_25 = arith.constant 0 : index
    %c0_26 = arith.constant 0 : index
    %30 = vector.load %arg14[%c0_25, %c0_26] : memref<1x256xf32, #tpu.memory_space<vmem>>, vector<1x256xf32>
    %31 = vector.broadcast %30 : vector<1x256xf32> to vector<8x256xf32>
    %32 = arith.addf %29, %31 : vector<8x256xf32>
    %cst_27 = arith.constant 0.000000e+00 : f32
    %33 = vector.broadcast %cst_27 : f32 to vector<8x256xf32>
    %34 = arith.maximumf %32, %33 : vector<8x256xf32>
    %c0_28 = arith.constant 0 : index
    %c0_29 = arith.constant 0 : index
    %35 = vector.load %arg15[%c0_28, %c0_29] : memref<1x256xf32, #tpu.memory_space<vmem>>, vector<1x256xf32>
    %36 = vector.broadcast %35 : vector<1x256xf32> to vector<8x256xf32>
    %37 = arith.mulf %34, %36 : vector<8x256xf32>
    %c0_30 = arith.constant 0 : index
    %c0_31 = arith.constant 0 : index
    %38 = vector.load %arg16[%c0_30, %c0_31] : memref<1x256xf32, #tpu.memory_space<vmem>>, vector<1x256xf32>
    %39 = vector.broadcast %38 : vector<1x256xf32> to vector<8x256xf32>
    %40 = arith.addf %37, %39 : vector<8x256xf32>
    %c0_32 = arith.constant 0 : index
    %c0_33 = arith.constant 0 : index
    %41 = vector.load %arg17[%c0_32, %c0_33] : memref<256x128xf32, #tpu.memory_space<vmem>>, vector<256x128xf32>
    %cst_34 = arith.constant dense<0.000000e+00> : vector<8x128xf32>
    %42 = tpu.matmul %40, %41, %cst_34 {dimension_numbers = #tpu.dot_dimension_numbers<[1], [0], [0], [1], [0, 0, 1, 1], [], []>} : vector<8x256xf32>, vector<256x128xf32>, vector<8x128xf32> -> vector<8x128xf32>
    %c0_35 = arith.constant 0 : index
    %c0_36 = arith.constant 0 : index
    %43 = vector.load %arg18[%c0_35, %c0_36] : memref<1x128xf32, #tpu.memory_space<vmem>>, vector<1x128xf32>
    %44 = vector.broadcast %43 : vector<1x128xf32> to vector<8x128xf32>
    %45 = arith.addf %42, %44 : vector<8x128xf32>
    %cst_37 = arith.constant 0.000000e+00 : f32
    %46 = vector.broadcast %cst_37 : f32 to vector<8x128xf32>
    %47 = arith.maximumf %45, %46 : vector<8x128xf32>
    %c0_38 = arith.constant 0 : index
    %c0_39 = arith.constant 0 : index
    %48 = vector.load %arg19[%c0_38, %c0_39] : memref<1x128xf32, #tpu.memory_space<vmem>>, vector<1x128xf32>
    %49 = vector.broadcast %48 : vector<1x128xf32> to vector<8x128xf32>
    %50 = arith.mulf %47, %49 : vector<8x128xf32>
    %c0_40 = arith.constant 0 : index
    %c0_41 = arith.constant 0 : index
    %51 = vector.load %arg20[%c0_40, %c0_41] : memref<1x128xf32, #tpu.memory_space<vmem>>, vector<1x128xf32>
    %52 = vector.broadcast %51 : vector<1x128xf32> to vector<8x128xf32>
    %53 = arith.addf %50, %52 : vector<8x128xf32>
    %c0_42 = arith.constant 0 : index
    %c0_43 = arith.constant 0 : index
    %54 = vector.load %arg3[%c0_42, %c0_43] : memref<8x16xf32, #tpu.memory_space<vmem>>, vector<8x16xf32>
    %c0_44 = arith.constant 0 : index
    %c0_45 = arith.constant 0 : index
    %55 = vector.load %arg21[%c0_44, %c0_45] : memref<16x256xf32, #tpu.memory_space<vmem>>, vector<16x256xf32>
    %cst_46 = arith.constant dense<0.000000e+00> : vector<8x256xf32>
    %56 = tpu.matmul %54, %55, %cst_46 {dimension_numbers = #tpu.dot_dimension_numbers<[1], [0], [0], [1], [0, 0, 1, 1], [], []>} : vector<8x16xf32>, vector<16x256xf32>, vector<8x256xf32> -> vector<8x256xf32>
    %c0_47 = arith.constant 0 : index
    %c0_48 = arith.constant 0 : index
    %57 = vector.load %arg22[%c0_47, %c0_48] : memref<1x256xf32, #tpu.memory_space<vmem>>, vector<1x256xf32>
    %58 = vector.broadcast %57 : vector<1x256xf32> to vector<8x256xf32>
    %59 = arith.addf %56, %58 : vector<8x256xf32>
    %cst_49 = arith.constant 0.000000e+00 : f32
    %60 = vector.broadcast %cst_49 : f32 to vector<8x256xf32>
    %61 = arith.maximumf %59, %60 : vector<8x256xf32>
    %c0_50 = arith.constant 0 : index
    %c0_51 = arith.constant 0 : index
    %62 = vector.load %arg23[%c0_50, %c0_51] : memref<1x256xf32, #tpu.memory_space<vmem>>, vector<1x256xf32>
    %63 = vector.broadcast %62 : vector<1x256xf32> to vector<8x256xf32>
    %64 = arith.mulf %61, %63 : vector<8x256xf32>
    %c0_52 = arith.constant 0 : index
    %c0_53 = arith.constant 0 : index
    %65 = vector.load %arg24[%c0_52, %c0_53] : memref<1x256xf32, #tpu.memory_space<vmem>>, vector<1x256xf32>
    %66 = vector.broadcast %65 : vector<1x256xf32> to vector<8x256xf32>
    %67 = arith.addf %64, %66 : vector<8x256xf32>
    %c0_54 = arith.constant 0 : index
    %c0_55 = arith.constant 0 : index
    %68 = vector.load %arg25[%c0_54, %c0_55] : memref<256x128xf32, #tpu.memory_space<vmem>>, vector<256x128xf32>
    %cst_56 = arith.constant dense<0.000000e+00> : vector<8x128xf32>
    %69 = tpu.matmul %67, %68, %cst_56 {dimension_numbers = #tpu.dot_dimension_numbers<[1], [0], [0], [1], [0, 0, 1, 1], [], []>} : vector<8x256xf32>, vector<256x128xf32>, vector<8x128xf32> -> vector<8x128xf32>
    %c0_57 = arith.constant 0 : index
    %c0_58 = arith.constant 0 : index
    %70 = vector.load %arg26[%c0_57, %c0_58] : memref<1x128xf32, #tpu.memory_space<vmem>>, vector<1x128xf32>
    %71 = vector.broadcast %70 : vector<1x128xf32> to vector<8x128xf32>
    %72 = arith.addf %69, %71 : vector<8x128xf32>
    %cst_59 = arith.constant 0.000000e+00 : f32
    %73 = vector.broadcast %cst_59 : f32 to vector<8x128xf32>
    %74 = arith.maximumf %72, %73 : vector<8x128xf32>
    %c0_60 = arith.constant 0 : index
    %c0_61 = arith.constant 0 : index
    %75 = vector.load %arg27[%c0_60, %c0_61] : memref<1x128xf32, #tpu.memory_space<vmem>>, vector<1x128xf32>
    %76 = vector.broadcast %75 : vector<1x128xf32> to vector<8x128xf32>
    %77 = arith.mulf %74, %76 : vector<8x128xf32>
    %c0_62 = arith.constant 0 : index
    %c0_63 = arith.constant 0 : index
    %78 = vector.load %arg28[%c0_62, %c0_63] : memref<1x128xf32, #tpu.memory_space<vmem>>, vector<1x128xf32>
    %79 = vector.broadcast %78 : vector<1x128xf32> to vector<8x128xf32>
    %80 = arith.addf %77, %79 : vector<8x128xf32>
    %c0_64 = arith.constant 0 : index
    %c0_65 = arith.constant 0 : index
    %81 = vector.load %arg4[%c0_64, %c0_65] : memref<8x24xf32, #tpu.memory_space<vmem>>, vector<8x24xf32>
    %c0_66 = arith.constant 0 : index
    %c0_67 = arith.constant 0 : index
    %82 = vector.load %arg29[%c0_66, %c0_67] : memref<24x256xf32, #tpu.memory_space<vmem>>, vector<24x256xf32>
    %cst_68 = arith.constant dense<0.000000e+00> : vector<8x256xf32>
    %83 = tpu.matmul %81, %82, %cst_68 {dimension_numbers = #tpu.dot_dimension_numbers<[1], [0], [0], [1], [0, 0, 1, 1], [], []>} : vector<8x24xf32>, vector<24x256xf32>, vector<8x256xf32> -> vector<8x256xf32>
    %c0_69 = arith.constant 0 : index
    %c0_70 = arith.constant 0 : index
    %84 = vector.load %arg30[%c0_69, %c0_70] : memref<1x256xf32, #tpu.memory_space<vmem>>, vector<1x256xf32>
    %85 = vector.broadcast %84 : vector<1x256xf32> to vector<8x256xf32>
    %86 = arith.addf %83, %85 : vector<8x256xf32>
    %cst_71 = arith.constant 0.000000e+00 : f32
    %87 = vector.broadcast %cst_71 : f32 to vector<8x256xf32>
    %88 = arith.maximumf %86, %87 : vector<8x256xf32>
    %c0_72 = arith.constant 0 : index
    %c0_73 = arith.constant 0 : index
    %89 = vector.load %arg31[%c0_72, %c0_73] : memref<1x256xf32, #tpu.memory_space<vmem>>, vector<1x256xf32>
    %90 = vector.broadcast %89 : vector<1x256xf32> to vector<8x256xf32>
    %91 = arith.mulf %88, %90 : vector<8x256xf32>
    %c0_74 = arith.constant 0 : index
    %c0_75 = arith.constant 0 : index
    %92 = vector.load %arg32[%c0_74, %c0_75] : memref<1x256xf32, #tpu.memory_space<vmem>>, vector<1x256xf32>
    %93 = vector.broadcast %92 : vector<1x256xf32> to vector<8x256xf32>
    %94 = arith.addf %91, %93 : vector<8x256xf32>
    %c0_76 = arith.constant 0 : index
    %c0_77 = arith.constant 0 : index
    %95 = vector.load %arg33[%c0_76, %c0_77] : memref<256x128xf32, #tpu.memory_space<vmem>>, vector<256x128xf32>
    %cst_78 = arith.constant dense<0.000000e+00> : vector<8x128xf32>
    %96 = tpu.matmul %94, %95, %cst_78 {dimension_numbers = #tpu.dot_dimension_numbers<[1], [0], [0], [1], [0, 0, 1, 1], [], []>} : vector<8x256xf32>, vector<256x128xf32>, vector<8x128xf32> -> vector<8x128xf32>
    %c0_79 = arith.constant 0 : index
    %c0_80 = arith.constant 0 : index
    %97 = vector.load %arg34[%c0_79, %c0_80] : memref<1x128xf32, #tpu.memory_space<vmem>>, vector<1x128xf32>
    %98 = vector.broadcast %97 : vector<1x128xf32> to vector<8x128xf32>
    %99 = arith.addf %96, %98 : vector<8x128xf32>
    %cst_81 = arith.constant 0.000000e+00 : f32
    %100 = vector.broadcast %cst_81 : f32 to vector<8x128xf32>
    %101 = arith.maximumf %99, %100 : vector<8x128xf32>
    %c0_82 = arith.constant 0 : index
    %c0_83 = arith.constant 0 : index
    %102 = vector.load %arg35[%c0_82, %c0_83] : memref<1x128xf32, #tpu.memory_space<vmem>>, vector<1x128xf32>
    %103 = vector.broadcast %102 : vector<1x128xf32> to vector<8x128xf32>
    %104 = arith.mulf %101, %103 : vector<8x128xf32>
    %c0_84 = arith.constant 0 : index
    %c0_85 = arith.constant 0 : index
    %105 = vector.load %arg36[%c0_84, %c0_85] : memref<1x128xf32, #tpu.memory_space<vmem>>, vector<1x128xf32>
    %106 = vector.broadcast %105 : vector<1x128xf32> to vector<8x128xf32>
    %107 = arith.addf %104, %106 : vector<8x128xf32>
    %c0_86 = arith.constant 0 : index
    %c0_87 = arith.constant 0 : index
    %108 = vector.load %arg38[%c0_86, %c0_87] : memref<1x256xf32, #tpu.memory_space<vmem>>, vector<1x256xf32>
    %c0_88 = arith.constant 0 : index
    %c0_89 = arith.constant 0 : index
    %109 = vector.load %arg37[%c0_88, %c0_89] : memref<512x256xf32, #tpu.memory_space<vmem>>, vector<128x256xf32>
    %cst_90 = arith.constant dense<0.000000e+00> : vector<8x256xf32>
    %110 = tpu.matmul %26, %109, %cst_90 {dimension_numbers = #tpu.dot_dimension_numbers<[1], [0], [0], [1], [0, 0, 1, 1], [], []>} : vector<8x128xf32>, vector<128x256xf32>, vector<8x256xf32> -> vector<8x256xf32>
    %111 = vector.broadcast %108 : vector<1x256xf32> to vector<8x256xf32>
    %112 = arith.addf %111, %110 : vector<8x256xf32>
    %c128 = arith.constant 128 : index
    %c0_91 = arith.constant 0 : index
    %113 = vector.load %arg37[%c128, %c0_91] : memref<512x256xf32, #tpu.memory_space<vmem>>, vector<128x256xf32>
    %cst_92 = arith.constant dense<0.000000e+00> : vector<8x256xf32>
    %114 = tpu.matmul %53, %113, %cst_92 {dimension_numbers = #tpu.dot_dimension_numbers<[1], [0], [0], [1], [0, 0, 1, 1], [], []>} : vector<8x128xf32>, vector<128x256xf32>, vector<8x256xf32> -> vector<8x256xf32>
    %115 = arith.addf %112, %114 : vector<8x256xf32>
    %c256 = arith.constant 256 : index
    %c0_93 = arith.constant 0 : index
    %116 = vector.load %arg37[%c256, %c0_93] : memref<512x256xf32, #tpu.memory_space<vmem>>, vector<128x256xf32>
    %cst_94 = arith.constant dense<0.000000e+00> : vector<8x256xf32>
    %117 = tpu.matmul %80, %116, %cst_94 {dimension_numbers = #tpu.dot_dimension_numbers<[1], [0], [0], [1], [0, 0, 1, 1], [], []>} : vector<8x128xf32>, vector<128x256xf32>, vector<8x256xf32> -> vector<8x256xf32>
    %118 = arith.addf %115, %117 : vector<8x256xf32>
    %c384 = arith.constant 384 : index
    %c0_95 = arith.constant 0 : index
    %119 = vector.load %arg37[%c384, %c0_95] : memref<512x256xf32, #tpu.memory_space<vmem>>, vector<128x256xf32>
    %cst_96 = arith.constant dense<0.000000e+00> : vector<8x256xf32>
    %120 = tpu.matmul %107, %119, %cst_96 {dimension_numbers = #tpu.dot_dimension_numbers<[1], [0], [0], [1], [0, 0, 1, 1], [], []>} : vector<8x128xf32>, vector<128x256xf32>, vector<8x256xf32> -> vector<8x256xf32>
    %121 = arith.addf %118, %120 : vector<8x256xf32>
    %cst_97 = arith.constant 0.000000e+00 : f32
    %122 = vector.broadcast %cst_97 : f32 to vector<8x256xf32>
    %123 = arith.maximumf %121, %122 : vector<8x256xf32>
    %c0_98 = arith.constant 0 : index
    %c0_99 = arith.constant 0 : index
    %124 = vector.load %arg39[%c0_98, %c0_99] : memref<1x256xf32, #tpu.memory_space<vmem>>, vector<1x256xf32>
    %125 = vector.broadcast %124 : vector<1x256xf32> to vector<8x256xf32>
    %126 = arith.mulf %123, %125 : vector<8x256xf32>
    %c0_100 = arith.constant 0 : index
    %c0_101 = arith.constant 0 : index
    %127 = vector.load %arg40[%c0_100, %c0_101] : memref<1x256xf32, #tpu.memory_space<vmem>>, vector<1x256xf32>
    %128 = vector.broadcast %127 : vector<1x256xf32> to vector<8x256xf32>
    %129 = arith.addf %126, %128 : vector<8x256xf32>
    %c0_102 = arith.constant 0 : index
    %c0_103 = arith.constant 0 : index
    %130 = vector.load %arg41[%c0_102, %c0_103] : memref<256x64xf32, #tpu.memory_space<vmem>>, vector<256x64xf32>
    %cst_104 = arith.constant dense<0.000000e+00> : vector<8x64xf32>
    %131 = tpu.matmul %129, %130, %cst_104 {dimension_numbers = #tpu.dot_dimension_numbers<[1], [0], [0], [1], [0, 0, 1, 1], [], []>} : vector<8x256xf32>, vector<256x64xf32>, vector<8x64xf32> -> vector<8x64xf32>
    %c0_105 = arith.constant 0 : index
    %c0_106 = arith.constant 0 : index
    %132 = vector.load %arg42[%c0_105, %c0_106] : memref<1x64xf32, #tpu.memory_space<vmem>>, vector<1x64xf32>
    %133 = vector.broadcast %132 : vector<1x64xf32> to vector<8x64xf32>
    %134 = arith.addf %131, %133 : vector<8x64xf32>
    %c0_107 = arith.constant 0 : index
    %c0_108 = arith.constant 0 : index
    %135 = vector.load %arg43[%c0_107, %c0_108] : memref<8x64xf32, #tpu.memory_space<vmem>>, vector<8x64xf32>
    tpu.vector_store %arg43[%c0_107, %c0_108], %134 {strides = array<i32>} : memref<8x64xf32, #tpu.memory_space<vmem>>, vector<8x64xf32>,
    return
  }
  func.func @transform_0(%arg0: i32) -> (i32, i32) {
    %c0_i32 = arith.constant 0 : i32
    %c0_i32_0 = arith.constant 0 : i32
    return %arg0, %c0_i32 : i32, i32
  }
  func.func @transform_1(%arg0: i32) -> (i32, i32) {
    %c0_i32 = arith.constant 0 : i32
    %c0_i32_0 = arith.constant 0 : i32
    return %arg0, %c0_i32 : i32, i32
  }
  func.func @transform_2(%arg0: i32) -> (i32, i32) {
    %c0_i32 = arith.constant 0 : i32
    %c0_i32_0 = arith.constant 0 : i32
    return %arg0, %c0_i32 : i32, i32
  }
  func.func @transform_3(%arg0: i32) -> (i32, i32) {
    %c0_i32 = arith.constant 0 : i32
    %c0_i32_0 = arith.constant 0 : i32
    return %arg0, %c0_i32 : i32, i32
  }
  func.func @transform_4(%arg0: i32) -> (i32, i32) {
    %c0_i32 = arith.constant 0 : i32
    %c0_i32_0 = arith.constant 0 : i32
    %c0_i32_1 = arith.constant 0 : i32
    return %c0_i32, %c0_i32_0 : i32, i32
  }
  func.func @transform_5(%arg0: i32) -> (i32, i32) {
    %c0_i32 = arith.constant 0 : i32
    %c0_i32_0 = arith.constant 0 : i32
    %c0_i32_1 = arith.constant 0 : i32
    return %c0_i32, %c0_i32_0 : i32, i32
  }
  func.func @transform_6(%arg0: i32) -> (i32, i32) {
    %c0_i32 = arith.constant 0 : i32
    %c0_i32_0 = arith.constant 0 : i32
    %c0_i32_1 = arith.constant 0 : i32
    return %c0_i32, %c0_i32_0 : i32, i32
  }
  func.func @transform_7(%arg0: i32) -> (i32, i32) {
    %c0_i32 = arith.constant 0 : i32
    %c0_i32_0 = arith.constant 0 : i32
    %c0_i32_1 = arith.constant 0 : i32
    return %c0_i32, %c0_i32_0 : i32, i32
  }
  func.func @transform_8(%arg0: i32) -> (i32, i32) {
    %c0_i32 = arith.constant 0 : i32
    %c0_i32_0 = arith.constant 0 : i32
    %c0_i32_1 = arith.constant 0 : i32
    return %c0_i32, %c0_i32_0 : i32, i32
  }
  func.func @transform_9(%arg0: i32) -> (i32, i32) {
    %c0_i32 = arith.constant 0 : i32
    %c0_i32_0 = arith.constant 0 : i32
    %c0_i32_1 = arith.constant 0 : i32
    return %c0_i32, %c0_i32_0 : i32, i32
  }
  func.func @transform_10(%arg0: i32) -> (i32, i32) {
    %c0_i32 = arith.constant 0 : i32
    %c0_i32_0 = arith.constant 0 : i32
    %c0_i32_1 = arith.constant 0 : i32
    return %c0_i32, %c0_i32_0 : i32, i32
  }
  func.func @transform_11(%arg0: i32) -> (i32, i32) {
    %c0_i32 = arith.constant 0 : i32
    %c0_i32_0 = arith.constant 0 : i32
    %c0_i32_1 = arith.constant 0 : i32
    return %c0_i32, %c0_i32_0 : i32, i32
  }
  func.func @transform_12(%arg0: i32) -> (i32, i32) {
    %c0_i32 = arith.constant 0 : i32
    %c0_i32_0 = arith.constant 0 : i32
    %c0_i32_1 = arith.constant 0 : i32
    return %c0_i32, %c0_i32_0 : i32, i32
  }
  func.func @transform_13(%arg0: i32) -> (i32, i32) {
    %c0_i32 = arith.constant 0 : i32
    %c0_i32_0 = arith.constant 0 : i32
    %c0_i32_1 = arith.constant 0 : i32
    return %c0_i32, %c0_i32_0 : i32, i32
  }
  func.func @transform_14(%arg0: i32) -> (i32, i32) {
    %c0_i32 = arith.constant 0 : i32
    %c0_i32_0 = arith.constant 0 : i32
    %c0_i32_1 = arith.constant 0 : i32
    return %c0_i32, %c0_i32_0 : i32, i32
  }
  func.func @transform_15(%arg0: i32) -> (i32, i32) {
    %c0_i32 = arith.constant 0 : i32
    %c0_i32_0 = arith.constant 0 : i32
    %c0_i32_1 = arith.constant 0 : i32
    return %c0_i32, %c0_i32_0 : i32, i32
  }
  func.func @transform_16(%arg0: i32) -> (i32, i32) {
    %c0_i32 = arith.constant 0 : i32
    %c0_i32_0 = arith.constant 0 : i32
    %c0_i32_1 = arith.constant 0 : i32
    return %c0_i32, %c0_i32_0 : i32, i32
  }
  func.func @transform_17(%arg0: i32) -> (i32, i32) {
    %c0_i32 = arith.constant 0 : i32
    %c0_i32_0 = arith.constant 0 : i32
    %c0_i32_1 = arith.constant 0 : i32
    return %c0_i32, %c0_i32_0 : i32, i32
  }
  func.func @transform_18(%arg0: i32) -> (i32, i32) {
    %c0_i32 = arith.constant 0 : i32
    %c0_i32_0 = arith.constant 0 : i32
    %c0_i32_1 = arith.constant 0 : i32
    return %c0_i32, %c0_i32_0 : i32, i32
  }
  func.func @transform_19(%arg0: i32) -> (i32, i32) {
    %c0_i32 = arith.constant 0 : i32
    %c0_i32_0 = arith.constant 0 : i32
    %c0_i32_1 = arith.constant 0 : i32
    return %c0_i32, %c0_i32_0 : i32, i32
  }
  func.func @transform_20(%arg0: i32) -> (i32, i32) {
    %c0_i32 = arith.constant 0 : i32
    %c0_i32_0 = arith.constant 0 : i32
    %c0_i32_1 = arith.constant 0 : i32
    return %c0_i32, %c0_i32_0 : i32, i32
  }
  func.func @transform_21(%arg0: i32) -> (i32, i32) {
    %c0_i32 = arith.constant 0 : i32
    %c0_i32_0 = arith.constant 0 : i32
    %c0_i32_1 = arith.constant 0 : i32
    return %c0_i32, %c0_i32_0 : i32, i32
  }
  func.func @transform_22(%arg0: i32) -> (i32, i32) {
    %c0_i32 = arith.constant 0 : i32
    %c0_i32_0 = arith.constant 0 : i32
    %c0_i32_1 = arith.constant 0 : i32
    return %c0_i32, %c0_i32_0 : i32, i32
  }
  func.func @transform_23(%arg0: i32) -> (i32, i32) {
    %c0_i32 = arith.constant 0 : i32
    %c0_i32_0 = arith.constant 0 : i32
    %c0_i32_1 = arith.constant 0 : i32
    return %c0_i32, %c0_i32_0 : i32, i32
  }
  func.func @transform_24(%arg0: i32) -> (i32, i32) {
    %c0_i32 = arith.constant 0 : i32
    %c0_i32_0 = arith.constant 0 : i32
    %c0_i32_1 = arith.constant 0 : i32
    return %c0_i32, %c0_i32_0 : i32, i32
  }
  func.func @transform_25(%arg0: i32) -> (i32, i32) {
    %c0_i32 = arith.constant 0 : i32
    %c0_i32_0 = arith.constant 0 : i32
    %c0_i32_1 = arith.constant 0 : i32
    return %c0_i32, %c0_i32_0 : i32, i32
  }
  func.func @transform_26(%arg0: i32) -> (i32, i32) {
    %c0_i32 = arith.constant 0 : i32
    %c0_i32_0 = arith.constant 0 : i32
    %c0_i32_1 = arith.constant 0 : i32
    return %c0_i32, %c0_i32_0 : i32, i32
  }
  func.func @transform_27(%arg0: i32) -> (i32, i32) {
    %c0_i32 = arith.constant 0 : i32
    %c0_i32_0 = arith.constant 0 : i32
    %c0_i32_1 = arith.constant 0 : i32
    return %c0_i32, %c0_i32_0 : i32, i32
  }
  func.func @transform_28(%arg0: i32) -> (i32, i32) {
    %c0_i32 = arith.constant 0 : i32
    %c0_i32_0 = arith.constant 0 : i32
    %c0_i32_1 = arith.constant 0 : i32
    return %c0_i32, %c0_i32_0 : i32, i32
  }
  func.func @transform_29(%arg0: i32) -> (i32, i32) {
    %c0_i32 = arith.constant 0 : i32
    %c0_i32_0 = arith.constant 0 : i32
    %c0_i32_1 = arith.constant 0 : i32
    return %c0_i32, %c0_i32_0 : i32, i32
  }
  func.func @transform_30(%arg0: i32) -> (i32, i32) {
    %c0_i32 = arith.constant 0 : i32
    %c0_i32_0 = arith.constant 0 : i32
    %c0_i32_1 = arith.constant 0 : i32
    return %c0_i32, %c0_i32_0 : i32, i32
  }
  func.func @transform_31(%arg0: i32) -> (i32, i32) {
    %c0_i32 = arith.constant 0 : i32
    %c0_i32_0 = arith.constant 0 : i32
    %c0_i32_1 = arith.constant 0 : i32
    return %c0_i32, %c0_i32_0 : i32, i32
  }
  func.func @transform_32(%arg0: i32) -> (i32, i32) {
    %c0_i32 = arith.constant 0 : i32
    %c0_i32_0 = arith.constant 0 : i32
    %c0_i32_1 = arith.constant 0 : i32
    return %c0_i32, %c0_i32_0 : i32, i32
  }
  func.func @transform_33(%arg0: i32) -> (i32, i32) {
    %c0_i32 = arith.constant 0 : i32
    %c0_i32_0 = arith.constant 0 : i32
    %c0_i32_1 = arith.constant 0 : i32
    return %c0_i32, %c0_i32_0 : i32, i32
  }
  func.func @transform_34(%arg0: i32) -> (i32, i32) {
    %c0_i32 = arith.constant 0 : i32
    %c0_i32_0 = arith.constant 0 : i32
    %c0_i32_1 = arith.constant 0 : i32
    return %c0_i32, %c0_i32_0 : i32, i32
  }
  func.func @transform_35(%arg0: i32) -> (i32, i32) {
    %c0_i32 = arith.constant 0 : i32
    %c0_i32_0 = arith.constant 0 : i32
    %c0_i32_1 = arith.constant 0 : i32
    return %c0_i32, %c0_i32_0 : i32, i32
  }
  func.func @transform_36(%arg0: i32) -> (i32, i32) {
    %c0_i32 = arith.constant 0 : i32
    %c0_i32_0 = arith.constant 0 : i32
    %c0_i32_1 = arith.constant 0 : i32
    return %c0_i32, %c0_i32_0 : i32, i32
  }
  func.func @transform_37(%arg0: i32) -> (i32, i32) {
    %c0_i32 = arith.constant 0 : i32
    %c0_i32_0 = arith.constant 0 : i32
    %c0_i32_1 = arith.constant 0 : i32
    return %c0_i32, %c0_i32_0 : i32, i32
  }
  func.func @transform_38(%arg0: i32) -> (i32, i32) {
    %c0_i32 = arith.constant 0 : i32
    %c0_i32_0 = arith.constant 0 : i32
    %c0_i32_1 = arith.constant 0 : i32
    return %c0_i32, %c0_i32_0 : i32, i32
  }
  func.func @transform_39(%arg0: i32) -> (i32, i32) {
    %c0_i32 = arith.constant 0 : i32
    %c0_i32_0 = arith.constant 0 : i32
    %c0_i32_1 = arith.constant 0 : i32
    return %c0_i32, %c0_i32_0 : i32, i32
  }
  func.func @transform_40(%arg0: i32) -> (i32, i32) {
    %c0_i32 = arith.constant 0 : i32
    %c0_i32_0 = arith.constant 0 : i32
    %c0_i32_1 = arith.constant 0 : i32
    return %c0_i32, %c0_i32_0 : i32, i32
  }
  func.func @transform_41(%arg0: i32) -> (i32, i32) {
    %c0_i32 = arith.constant 0 : i32
    %c0_i32_0 = arith.constant 0 : i32
    %c0_i32_1 = arith.constant 0 : i32
    return %c0_i32, %c0_i32_0 : i32, i32
  }
  func.func @transform_42(%arg0: i32) -> (i32, i32) {
    %c0_i32 = arith.constant 0 : i32
    %c0_i32_0 = arith.constant 0 : i32
    return %arg0, %c0_i32 : i32, i32
  }
}

</mosaic_0001>

<bundles_post_ra>
// kernel: tpu_custom_call.1
= control target key start
LH: loop header
LB: loop body
LE: loop exit
PB: predicated region body
PF: predicated region fallthrough
CT: control target
= control target key end

     0   :  { %s3638_s6 = smov 1   ;;  %s3639_s10 = smov 2   ;;  %s4261_s0 = inlined_call_operand.smem [shape: u32[43], index: -1, kind: input, shape index: {}] }
   0x1   :  { %s3728_s5 = sld [smem:[%s4261_s0]]   ;;  %s3640_s14 = smov 3  }
   0x2   :  { %s3733_s9 = sld [smem:[%s4261_s0 + %s3638_s6]]   ;;  %s3641_s18 = smov 4  }
   0x3   :  { %s3738_s13 = sld [smem:[%s4261_s0 + %s3639_s10]]   ;;  %s3642_s22 = smov 5  }
   0x4   :  { %s3743_s17 = sld [smem:[%s4261_s0 + %s3640_s14]]   ;;  %s3643_s26 = smov 6  }
   0x5   :  { %s3748_s21 = sld [smem:[%s4261_s0 + %s3641_s18]]   ;;  %s3644_s30 = smov 7  }
   0x6   :  { %s3753_s25 = sld [smem:[%s4261_s0 + %s3642_s22]]   ;;  %s3645_s4 = smov 8  }
   0x7   :  { %4283 = sst [smem:[#allocation75_spill]] %s3728_s5  ;;  %s3646_s10 = smov 9  }
   0x8   :  { %s3758_s29 = sld [smem:[%s4261_s0 + %s3643_s26]]   ;;  %s3647_s15 = smov 10  }
   0x9   :  { %4284 = sst [smem:[#allocation76_spill]] %s3738_s13  ;;  %s3648_s20 = smov 11  }
   0xa   :  { %s3763_s3 = sld [smem:[%s4261_s0 + %s3644_s30]]   ;;  %s3649_s26 = smov 12  }
   0xb   :  { %4285 = sst [smem:[#allocation77_spill]] %s3748_s21  ;;  %s3650_s1 = smov 13  }
   0xc   :  { %4286 = sst [smem:[#allocation78_spill]] %s3753_s25  ;;  %s3651_s7 = smov 14  }
   0xd   :  { %s3768_s8 = sld [smem:[%s4261_s0 + %s3645_s4]]   ;;  %s3653_s22 = smov 16  }
   0xe   :  { %4287 = sst [smem:[#allocation79_spill]] %s3758_s29  ;;  %s3654_s28 = smov 17  }
   0xf   :  { %s3773_s14 = sld [smem:[%s4261_s0 + %s3646_s10]]  }
  0x10   :  { %4288 = sst [smem:[#allocation80_spill]] %s3763_s3 }
  0x11   :  { %s3778_s19 = sld [smem:[%s4261_s0 + %s3647_s15]]   ;;  %s3652_s15 = smov 15  }
  0x12   :  { %s3783_s24 = sld [smem:[%s4261_s0 + %s3648_s20]]  }
  0x13   :  { %4289 = sst [smem:[#allocation81_spill]] %s3768_s8 }
  0x14   :  { %s3788_s30 = sld [smem:[%s4261_s0 + %s3649_s26]]  }
  0x15   :  { %4290 = sst [smem:[#allocation82_spill]] %s3773_s14 }
  0x16   :  { %s3793_s6 = sld [smem:[%s4261_s0 + %s3650_s1]]  }
  0x17   :  { %s3798_s12 = sld [smem:[%s4261_s0 + %s3651_s7]]   ;;  %s3655_s7 = smov 18  }
  0x18   :  { %4291 = sst [smem:[#allocation83_spill]] %s3783_s24 }
  0x19   :  { %s3803_s20 = sld [smem:[%s4261_s0 + %s3652_s15]]   ;;  %s3656_s15 = smov 19  }
  0x1a   :  { %4292 = sst [smem:[#allocation84_spill]] %s3788_s30 }
  0x1b   :  { %s3808_s27 = sld [smem:[%s4261_s0 + %s3653_s22]]   ;;  %s3657_s22 = smov 20  }
  0x1c   :  { %s3813_s4 = sld [smem:[%s4261_s0 + %s3654_s28]]   ;;  %s3658_s28 = smov 21  }
  0x1d   :  { %4293 = sst [smem:[#allocation85_spill]] %s3798_s12 }
  0x1e   :  { %s3818_s14 = sld [smem:[%s4261_s0 + %s3655_s7]]   ;;  %s3659_s7 = smov 22  }
  0x1f   :  { %s3823_s3 = sld [smem:[%s4261_s0 + %s3656_s15]]   ;;  %s3660_s15 = smov 23  }
  0x20   :  { %s3828_s29 = sld [smem:[%s4261_s0 + %s3657_s22]]   ;;  %s3661_s22 = smov 24  }
  0x21   :  { %4294 = sst [smem:[#allocation86_spill]] %s3808_s27 }
  0x22   :  { %s3833_s25 = sld [smem:[%s4261_s0 + %s3658_s28]]   ;;  %s3662_s28 = smov 25  }
  0x23   :  { %s3838_s30 = sld [smem:[%s4261_s0 + %s3659_s7]]   ;;  %s3663_s7 = smov 26  }
  0x24   :  { %4295 = sst [smem:[#allocation87_spill]] %s3818_s14 }
  0x25   :  { %s3843_s8 = sld [smem:[%s4261_s0 + %s3660_s15]]   ;;  %s3664_s15 = smov 27  }
  0x26   :  { %4296 = sst [smem:[#allocation88_spill]] %s3828_s29 }
  0x27   :  { %s3848_s29 = sld [smem:[%s4261_s0 + %s3661_s22]]   ;;  %s3665_s22 = smov 28  }
  0x28   :  { %s3853_s14 = sld [smem:[%s4261_s0 + %s3662_s28]]   ;;  %s3666_s28 = smov 29  }
  0x29   :  { %4297 = sst [smem:[#allocation89_spill]] %s3838_s30 }
  0x2a   :  { %s3858_s30 = sld [smem:[%s4261_s0 + %s3663_s7]]   ;;  %s3667_s7 = smov 30  }
  0x2b   :  { %s3863_s27 = sld [smem:[%s4261_s0 + %s3664_s15]]   ;;  %s3668_s15 = smov 31  }
  0x2c   :  { %s3873_s12 = sld [smem:[%s4261_s0 + %s3666_s28]]   ;;  %s3670_s28 = smov 33  }
  0x2d   :  { %4298 = sst [smem:[#allocation90_spill]] %s3848_s29 }
  0x2e   :  { %s3868_s29 = sld [smem:[%s4261_s0 + %s3665_s22]]   ;;  %s3669_s22 = smov 32  }
  0x2f   :  { %s3883_s24 = sld [smem:[%s4261_s0 + %s3668_s15]]   ;;  %s3672_s15 = smov 35  }
  0x30   :  { %4299 = sst [smem:[#allocation91_spill]] %s3858_s30 }
  0x31   :  { %s3878_s30 = sld [smem:[%s4261_s0 + %s3667_s7]]   ;;  %s3671_s7 = smov 34  }
  0x32   :  { %4301 = sst [smem:[#allocation93_spill]] %s3873_s12 }
  0x33   :  { %s3893_s12 = sld [smem:[%s4261_s0 + %s3670_s28]]   ;;  %s3674_s28 = smov 37  }
  0x34   :  { %4300 = sst [smem:[#allocation92_spill]] %s3868_s29 }
  0x35   :  { %4302 = sst [smem:[#allocation94_spill]] %s3883_s24 }
  0x36   :  { %s3888_s29 = sld [smem:[%s4261_s0 + %s3669_s22]]   ;;  %s3673_s22 = smov 36  }
  0x37   :  { %s3898_s21 = sld [smem:[%s4261_s0 + %s3671_s7]]   ;;  %s3675_s7 = smov 38  }
  0x38   :  { %s3903_s24 = sld [smem:[%s4261_s0 + %s3672_s15]]   ;;  %s3676_s15 = smov 39  }
  0x39   :  { %4303 = sst [smem:[#allocation95_spill]] %s3893_s12 }
  0x3a   :  { %s3908_s13 = sld [smem:[%s4261_s0 + %s3673_s22]]   ;;  %s3677_s22 = smov 40  }
  0x3b   :  { %s3913_s12 = sld [smem:[%s4261_s0 + %s3674_s28]]   ;;  %s3678_s28 = smov 41  }
  0x3c   :  { %s3918_s5 = sld [smem:[%s4261_s0 + %s3675_s7]]   ;;  %s3679_s7 = smov 42  }
  0x3e   :  { %4304 = sst [smem:[#allocation96_spill]] %s3903_s24 }
  0x3f   :  { %s3923_s24 = sld [smem:[%s4261_s0 + %s3676_s15]]  }
  0x40   :  { %4305 = sst [smem:[#allocation97_spill]] %s3908_s13 }
  0x41   :  { %4306 = sst [smem:[#allocation98_spill]] %s3913_s12 }
  0x42   :  { %4307 = sst [smem:[#allocation99_spill]] %s3918_s5 }
  0x43   :  { %s3928_s13 = sld [smem:[%s4261_s0 + %s3677_s22]]  }
  0x44   :  { %s3933_s12 = sld [smem:[%s4261_s0 + %s3678_s28]]  }
  0x45   :  { %s3938_s5 = sld [smem:[%s4261_s0 + %s3679_s7]]  }
  0x46   :  { %90 = vsyncpa [#allocation3], 0 }
  0x47   :  { %91 = vsyncpa [#allocation6], 0 }
  0x48   :  { %92 = vsyncpa [#allocation9], 0 }
  0x49   :  { %93 = vsyncpa [#allocation12], 0 }
  0x4a   :  { %94 = vsyncpa [#allocation15], 0 }
  0x4b   :  { %95 = vsyncpa [#allocation18], 0 }
  0x4c   :  { %96 = vsyncpa [#allocation21], 0 }
  0x4d   :  { %97 = vsyncpa [#allocation24], 0 }
  0x4e   :  { %98 = vsyncpa [#allocation27], 0 }
  0x4f   :  { %99 = vsyncpa [#allocation30], 0 }
  0x50   :  { %100 = vsyncpa [#allocation33], 0 }
  0x51   :  { %101 = vsyncpa [#allocation36], 0 }
  0x52   :  { %102 = vsyncpa [#allocation39], 0 }
  0x53   :  { %103 = vsyncpa [#allocation42], 0 }
  0x54   :  { %104 = vsyncpa [#allocation45], 0 }
  0x55   :  { %105 = vsyncpa [#allocation48], 0 }
  0x56   :  { %106 = vsyncpa [#allocation51], 0 }
  0x57   :  { %107 = vsyncpa [#allocation54], 0 }
  0x58   :  { %108 = vsyncpa [#allocation4], 0  ;;  %s3680_s0 = smov [#allocation5]   ;;  %s3681_s16 = smov [#allocation8]  }
  0x59   :  { %s125_s15 = sshll.u32 %s3680_s0, 4  ;;  %s145_s18 = sshll.u32 %s3681_s16, 4  ;;  %s126_s15 = int_to_ptr.vmem [resolvable:$true] %s125_s15  ;;  %s146_s18 = int_to_ptr.vmem [resolvable:$true] %s145_s18 }
  0x5a   :  { %s2830_s22 = scalar_lea.hbm %s3733_s9, 128 }
  0x5b   :  { %p2831_p0 = scmp.ne.s32.totalorder %s3733_s9, %s2830_s22  ;;  %p2834_p1 = scmp.lt.u32.totalorder %s2830_s22, %s3733_s9 }
  0x5d   :  { %p2836_p2 = pnand %p2834_p1, %p2831_p0 }
  0x5f   :  { %2839 = shalt.err (!%p2836_p2)
}
  0x60   :  { %s2840_s23 = scalar_lea.vmem %s126_s15, 128  ;;  %p2845_p4 = scmp.lt.s32.totalorder %s126_s15, %s126_s15 }
  0x61   :  { %p2841_p3 = scmp.ne.s32.totalorder %s126_s15, %s2840_s23  ;;  %p2846_p5 = scmp.lt.s32.totalorder %s2840_s23, %s2840_s23 }
  0x63   :  { %p2847_p6 = por %p2846_p5, %p2845_p4 }
  0x65   :  { %p2848_p7 = pnand %p2847_p6, %p2841_p3 }
  0x67   :  { %2851 = shalt.err (!%p2848_p7)
}
  0x68   :  { %128 = dma.hbm_to_vmem [thread:$0]  %s3733_s9, 128, %s126_s15, [#allocation6]  }
  0x69   :  { %s2852_s26 = scalar_lea.hbm %s3743_s17, 128 }
  0x6a   :  { %p2853_p8 = scmp.ne.s32.totalorder %s3743_s17, %s2852_s26  ;;  %p2856_p9 = scmp.lt.u32.totalorder %s2852_s26, %s3743_s17 }
  0x6c   :  { %p2858_p10 = pnand %p2856_p9, %p2853_p8 }
  0x6e   :  { %2861 = shalt.err (!%p2858_p10)
}
  0x6f   :  { %s2862_s28 = scalar_lea.vmem %s146_s18, 128  ;;  %p2867_p12 = scmp.lt.s32.totalorder %s146_s18, %s146_s18 }
  0x70   :  { %p2863_p11 = scmp.ne.s32.totalorder %s146_s18, %s2862_s28  ;;  %p2868_p13 = scmp.lt.s32.totalorder %s2862_s28, %s2862_s28 }
  0x72   :  { %p2869_p0 = por %p2868_p13, %p2867_p12 }
  0x74   :  { %p2870_p1 = pnand %p2869_p0, %p2863_p11 }
  0x76   :  { %2873 = shalt.err (!%p2870_p1)
}
  0x77   :  { %148 = dma.hbm_to_vmem [thread:$0]  %s3743_s17, 128, %s146_s18, [#allocation9]  }
  0x78   :  { %s3682_s1 = smov [#allocation11]   ;;  %s3683_s9 = smov [#allocation14]  }
  0x79   :  { %s177_s2 = sshll.u32 %s3682_s1, 4  ;;  %s199_s7 = sshll.u32 %s3683_s9, 4  ;;  %s178_s2 = int_to_ptr.vmem [resolvable:$true] %s177_s2  ;;  %s200_s7 = int_to_ptr.vmem [resolvable:$true] %s199_s7 }
  0x7a   :  { %s2874_s10 = scalar_lea.hbm %s3778_s19, 16 }
  0x7b   :  { %p2875_p2 = scmp.ne.s32.totalorder %s3778_s19, %s2874_s10  ;;  %p2878_p3 = scmp.lt.u32.totalorder %s2874_s10, %s3778_s19 }
  0x7d   :  { %p2880_p4 = pnand %p2878_p3, %p2875_p2 }
  0x7f   :  { %2883 = shalt.err (!%p2880_p4)
}
  0x80   :  { %s2884_s11 = scalar_lea.vmem %s178_s2, 16  ;;  %s2888_s0 = scalar_lea.vmem %s178_s2, 32 }
  0x81   :  { %p2885_p5 = scmp.ne.s32.totalorder %s178_s2, %s2884_s11  ;;  %p2889_p6 = scmp.lt.s32.totalorder %s178_s2, %s178_s2 }
  0x82   :  { %p2890_p7 = scmp.lt.s32.totalorder %s2888_s0, %s2884_s11 }
  0x84   :  { %p2891_p8 = por %p2890_p7, %p2889_p6 }
  0x86   :  { %p2892_p9 = pnand %p2891_p8, %p2885_p5 }
  0x88   :  { %2895 = shalt.err (!%p2892_p9)
}
  0x89   :  { %180 = dma.hbm_to_vmem [thread:$0]  %s3778_s19, 16, %s178_s2, [#allocation12]  }
  0x8a   :  { %s2896_s17 = scalar_lea.hbm %s3793_s6, 32 }
  0x8b   :  { %p2897_p10 = scmp.ne.s32.totalorder %s3793_s6, %s2896_s17  ;;  %p2900_p11 = scmp.lt.u32.totalorder %s2896_s17, %s3793_s6 }
  0x8d   :  { %p2902_p12 = pnand %p2900_p11, %p2897_p10 }
  0x8f   :  { %2905 = shalt.err (!%p2902_p12)
}
  0x90   :  { %s2906_s15 = scalar_lea.vmem %s200_s7, 32  ;;  %p2911_p0 = scmp.lt.s32.totalorder %s200_s7, %s200_s7 }
  0x91   :  { %p2907_p13 = scmp.ne.s32.totalorder %s200_s7, %s2906_s15  ;;  %p2912_p1 = scmp.lt.s32.totalorder %s2906_s15, %s2906_s15 }
  0x93   :  { %p2913_p2 = por %p2912_p1, %p2911_p0 }
  0x95   :  { %p2914_p3 = pnand %p2913_p2, %p2907_p13 }
  0x97   :  { %2917 = shalt.err (!%p2914_p3)
}
  0x98   :  { %202 = dma.hbm_to_vmem [thread:$0]  %s3793_s6, 32, %s200_s7, [#allocation15]  }
  0x99   :  { %s3684_s16 = smov [#allocation17]   ;;  %s3685_s19 = smov [#allocation20]  }
  0x9a   :  { %s219_s18 = sshll.u32 %s3684_s16, 4  ;;  %s241_s22 = sshll.u32 %s3685_s19, 4  ;;  %s220_s18 = int_to_ptr.vmem [resolvable:$true] %s219_s18  ;;  %s242_s22 = int_to_ptr.vmem [resolvable:$true] %s241_s22 }
  0x9b   :  { %s2918_s23 = scalar_lea.hbm %s3803_s20, 32 }
  0x9c   :  { %p2919_p4 = scmp.ne.s32.totalorder %s3803_s20, %s2918_s23  ;;  %p2922_p5 = scmp.lt.u32.totalorder %s2918_s23, %s3803_s20 }
  0x9e   :  { %p2924_p6 = pnand %p2922_p5, %p2919_p4 }
  0xa0   :  { %2927 = shalt.err (!%p2924_p6)
}
  0xa1   :  { %s2928_s26 = scalar_lea.vmem %s220_s18, 32  ;;  %p2933_p8 = scmp.lt.s32.totalorder %s220_s18, %s220_s18 }
  0xa2   :  { %p2929_p7 = scmp.ne.s32.totalorder %s220_s18, %s2928_s26  ;;  %p2934_p9 = scmp.lt.s32.totalorder %s2928_s26, %s2928_s26 }
  0xa4   :  { %p2935_p10 = por %p2934_p9, %p2933_p8 }
  0xa6   :  { %p2936_p11 = pnand %p2935_p10, %p2929_p7 }
  0xa8   :  { %2939 = shalt.err (!%p2936_p11)
}
  0xa9   :  { %222 = dma.hbm_to_vmem [thread:$0]  %s3803_s20, 32, %s220_s18, [#allocation18]  }
  0xaa   :  { %s2940_s6 = scalar_lea.hbm %s3813_s4, 16 }
  0xab   :  { %p2941_p12 = scmp.ne.s32.totalorder %s3813_s4, %s2940_s6  ;;  %p2944_p13 = scmp.lt.u32.totalorder %s2940_s6, %s3813_s4 }
  0xad   :  { %p2946_p0 = pnand %p2944_p13, %p2941_p12 }
  0xaf   :  { %2949 = shalt.err (!%p2946_p0)
}
  0xb0   :  { %s2950_s28 = scalar_lea.vmem %s242_s22, 16  ;;  %s2954_s1 = scalar_lea.vmem %s242_s22, 32 }
  0xb1   :  { %p2951_p1 = scmp.ne.s32.totalorder %s242_s22, %s2950_s28  ;;  %p2955_p2 = scmp.lt.s32.totalorder %s242_s22, %s242_s22 }
  0xb2   :  { %p2956_p3 = scmp.lt.s32.totalorder %s2954_s1, %s2950_s28 }
  0xb4   :  { %p2957_p4 = por %p2956_p3, %p2955_p2 }
  0xb6   :  { %p2958_p5 = pnand %p2957_p4, %p2951_p1 }
  0xb8   :  { %2961 = shalt.err (!%p2958_p5)
}
  0xb9   :  { %244 = dma.hbm_to_vmem [thread:$0]  %s3813_s4, 16, %s242_s22, [#allocation21]  }
  0xba   :  { %s3686_s2 = smov [#allocation23]   ;;  %s3687_s9 = smov [#allocation26]  }
  0xbb   :  { %s261_s20 = sshll.u32 %s3686_s2, 4  ;;  %s283_s7 = sshll.u32 %s3687_s9, 4  ;;  %s262_s20 = int_to_ptr.vmem [resolvable:$true] %s261_s20  ;;  %s284_s7 = int_to_ptr.vmem [resolvable:$true] %s283_s7 }
  0xbc   :  { %s2962_s10 = scalar_lea.hbm %s3823_s3, 16 }
  0xbd   :  { %p2963_p6 = scmp.ne.s32.totalorder %s3823_s3, %s2962_s10  ;;  %p2966_p7 = scmp.lt.u32.totalorder %s2962_s10, %s3823_s3 }
  0xbf   :  { %p2968_p8 = pnand %p2966_p7, %p2963_p6 }
  0xc1   :  { %2971 = shalt.err (!%p2968_p8)
}
  0xc2   :  { %s2972_s11 = scalar_lea.vmem %s262_s20, 16  ;;  %s2976_s0 = scalar_lea.vmem %s262_s20, 32 }
  0xc3   :  { %p2973_p9 = scmp.ne.s32.totalorder %s262_s20, %s2972_s11  ;;  %p2977_p10 = scmp.lt.s32.totalorder %s262_s20, %s262_s20 }
  0xc4   :  { %p2978_p11 = scmp.lt.s32.totalorder %s2976_s0, %s2972_s11 }
  0xc6   :  { %p2979_p12 = por %p2978_p11, %p2977_p10 }
  0xc8   :  { %p2980_p13 = pnand %p2979_p12, %p2973_p9 }
  0xca   :  { %2983 = shalt.err (!%p2980_p13)
}
  0xcb   :  { %264 = dma.hbm_to_vmem [thread:$0]  %s3823_s3, 16, %s262_s20, [#allocation24]  }
  0xcc   :  { %s2984_s4 = scalar_lea.hbm %s3833_s25, 32 }
  0xcd   :  { %p2985_p0 = scmp.ne.s32.totalorder %s3833_s25, %s2984_s4  ;;  %p2988_p1 = scmp.lt.u32.totalorder %s2984_s4, %s3833_s25 }
  0xcf   :  { %p2990_p2 = pnand %p2988_p1, %p2985_p0 }
  0xd1   :  { %2993 = shalt.err (!%p2990_p2)
}
  0xd2   :  { %s2994_s17 = scalar_lea.vmem %s284_s7, 32  ;;  %p2999_p4 = scmp.lt.s32.totalorder %s284_s7, %s284_s7 }
  0xd3   :  { %p2995_p3 = scmp.ne.s32.totalorder %s284_s7, %s2994_s17  ;;  %p3000_p5 = scmp.lt.s32.totalorder %s2994_s17, %s2994_s17 }
  0xd5   :  { %p3001_p6 = por %p3000_p5, %p2999_p4 }
  0xd7   :  { %p3002_p7 = pnand %p3001_p6, %p2995_p3 }
  0xd9   :  { %3005 = shalt.err (!%p3002_p7)
}
  0xda   :  { %286 = dma.hbm_to_vmem [thread:$0]  %s3833_s25, 32, %s284_s7, [#allocation27]  }
  0xdb   :  { %s3688_s15 = smov [#allocation29]   ;;  %s3689_s3 = smov [#allocation32]  }
  0xdc   :  { %s303_s16 = sshll.u32 %s3688_s15, 4  ;;  %s325_s18 = sshll.u32 %s3689_s3, 4  ;;  %s304_s16 = int_to_ptr.vmem [resolvable:$true] %s303_s16  ;;  %s326_s18 = int_to_ptr.vmem [resolvable:$true] %s325_s18 }
  0xdd   :  { %s3006_s19 = scalar_lea.hbm %s3843_s8, 32 }
  0xde   :  { %p3007_p8 = scmp.ne.s32.totalorder %s3843_s8, %s3006_s19  ;;  %p3010_p9 = scmp.lt.u32.totalorder %s3006_s19, %s3843_s8 }
  0xe0   :  { %p3012_p10 = pnand %p3010_p9, %p3007_p8 }
  0xe2   :  { %3015 = shalt.err (!%p3012_p10)
}
  0xe3   :  { %s3016_s22 = scalar_lea.vmem %s304_s16, 32  ;;  %p3021_p12 = scmp.lt.s32.totalorder %s304_s16, %s304_s16 }
  0xe4   :  { %p3017_p11 = scmp.ne.s32.totalorder %s304_s16, %s3016_s22  ;;  %p3022_p13 = scmp.lt.s32.totalorder %s3016_s22, %s3016_s22 }
  0xe6   :  { %p3023_p0 = por %p3022_p13, %p3021_p12 }
  0xe8   :  { %p3024_p1 = pnand %p3023_p0, %p3017_p11 }
  0xea   :  { %3027 = shalt.err (!%p3024_p1)
}
  0xeb   :  { %306 = dma.hbm_to_vmem [thread:$0]  %s3843_s8, 32, %s304_s16, [#allocation30]  }
  0xec   :  { %s3028_s25 = scalar_lea.hbm %s3853_s14, 16 }
  0xed   :  { %p3029_p2 = scmp.ne.s32.totalorder %s3853_s14, %s3028_s25  ;;  %p3032_p3 = scmp.lt.u32.totalorder %s3028_s25, %s3853_s14 }
  0xef   :  { %p3034_p4 = pnand %p3032_p3, %p3029_p2 }
  0xf1   :  { %3037 = shalt.err (!%p3034_p4)
}
  0xf2   :  { %s3038_s23 = scalar_lea.vmem %s326_s18, 16  ;;  %s3042_s26 = scalar_lea.vmem %s326_s18, 32 }
  0xf3   :  { %p3039_p5 = scmp.ne.s32.totalorder %s326_s18, %s3038_s23  ;;  %p3043_p6 = scmp.lt.s32.totalorder %s326_s18, %s326_s18 }
  0xf4   :  { %p3044_p7 = scmp.lt.s32.totalorder %s3042_s26, %s3038_s23 }
  0xf6   :  { %p3045_p8 = por %p3044_p7, %p3043_p6 }
  0xf8   :  { %p3046_p9 = pnand %p3045_p8, %p3039_p5 }
  0xfa   :  { %3049 = shalt.err (!%p3046_p9)
}
  0xfb   :  { %328 = dma.hbm_to_vmem [thread:$0]  %s3853_s14, 16, %s326_s18, [#allocation33]  }
  0xfc   :  { %s3690_s6 = smov [#allocation35]   ;;  %s3691_s28 = smov [#allocation38]  }
  0xfd   :  { %s345_s8 = sshll.u32 %s3690_s6, 4  ;;  %s367_s1 = sshll.u32 %s3691_s28, 4  ;;  %s346_s8 = int_to_ptr.vmem [resolvable:$true] %s345_s8  ;;  %s368_s1 = int_to_ptr.vmem [resolvable:$true] %s367_s1 }
  0xfe   :  { %s3050_s2 = scalar_lea.hbm %s3863_s27, 16 }
  0xff   :  { %p3051_p10 = scmp.ne.s32.totalorder %s3863_s27, %s3050_s2  ;;  %p3054_p11 = scmp.lt.u32.totalorder %s3050_s2, %s3863_s27 }
 0x101   :  { %p3056_p12 = pnand %p3054_p11, %p3051_p10 }
 0x103   :  { %3059 = shalt.err (!%p3056_p12)
}
 0x104   :  { %s3060_s20 = scalar_lea.vmem %s346_s8, 16  ;;  %s3064_s9 = scalar_lea.vmem %s346_s8, 32 }
 0x105   :  { %p3061_p13 = scmp.ne.s32.totalorder %s346_s8, %s3060_s20  ;;  %p3065_p0 = scmp.lt.s32.totalorder %s346_s8, %s346_s8 }
 0x106   :  { %p3066_p1 = scmp.lt.s32.totalorder %s3064_s9, %s3060_s20 }
 0x108   :  { %p3067_p2 = por %p3066_p1, %p3065_p0 }
 0x10a   :  { %p3068_p3 = pnand %p3067_p2, %p3061_p13 }
 0x10c   :  { %3071 = shalt.err (!%p3068_p3)
}
 0x10d   :  { %348 = dma.hbm_to_vmem [thread:$0]  %s3863_s27, 16, %s346_s8, [#allocation36]  }
 0x10e   :  { %s3072_s14 = scalar_lea.hbm %s3878_s30, 32 }
 0x10f   :  { %p3073_p4 = scmp.ne.s32.totalorder %s3878_s30, %s3072_s14  ;;  %p3076_p5 = scmp.lt.u32.totalorder %s3072_s14, %s3878_s30 }
 0x111   :  { %p3078_p6 = pnand %p3076_p5, %p3073_p4 }
 0x113   :  { %3081 = shalt.err (!%p3078_p6)
}
 0x114   :  { %s3082_s7 = scalar_lea.vmem %s368_s1, 32  ;;  %p3087_p8 = scmp.lt.s32.totalorder %s368_s1, %s368_s1 }
 0x115   :  { %p3083_p7 = scmp.ne.s32.totalorder %s368_s1, %s3082_s7  ;;  %p3088_p9 = scmp.lt.s32.totalorder %s3082_s7, %s3082_s7 }
 0x117   :  { %p3089_p10 = por %p3088_p9, %p3087_p8 }
 0x119   :  { %p3090_p11 = pnand %p3089_p10, %p3083_p7 }
 0x11b   :  { %3093 = shalt.err (!%p3090_p11)
}
 0x11c   :  { %370 = dma.hbm_to_vmem [thread:$0]  %s3878_s30, 32, %s368_s1, [#allocation39]  }
 0x11d   :  { %s3692_s10 = smov [#allocation41]   ;;  %s3693_s27 = smov [#allocation44]  }
 0x11e   :  { %s386_s11 = sshll.u32 %s3692_s10, 4  ;;  %s409_s0 = sshll.u32 %s3693_s27, 4  ;;  %s387_s11 = int_to_ptr.vmem [resolvable:$true] %s386_s11  ;;  %s3988_s0 = int_to_ptr.vmem [resolvable:$true] %s409_s0 }
 0x11f   :  { %s3094_s4 = scalar_lea.hbm %s3888_s29, 4096 }
 0x120   :  { %p3095_p12 = scmp.ne.s32.totalorder %s3888_s29, %s3094_s4  ;;  %p3098_p13 = scmp.lt.u32.totalorder %s3094_s4, %s3888_s29 }
 0x122   :  { %p3100_p0 = pnand %p3098_p13, %p3095_p12 }
 0x124   :  { %3103 = shalt.err (!%p3100_p0)
}
 0x125   :  { %s3104_s17 = scalar_lea.vmem %s387_s11, 4096  ;;  %p3109_p2 = scmp.lt.s32.totalorder %s387_s11, %s387_s11 }
 0x126   :  { %p3105_p1 = scmp.ne.s32.totalorder %s387_s11, %s3104_s17  ;;  %p3110_p3 = scmp.lt.s32.totalorder %s3104_s17, %s3104_s17 }
 0x128   :  { %p3111_p4 = por %p3110_p3, %p3109_p2 }
 0x12a   :  { %p3112_p5 = pnand %p3111_p4, %p3105_p1 }
 0x12c   :  { %3115 = shalt.err (!%p3112_p5)
}
 0x12d   :  { %s3694_s30 = smov 128   ;;  %s3695_s15 = smov 8  }
 0x12e   :  { %392 = dma.hbm_to_vmem [thread:$0]  %s3888_s29, 4096, %s387_s11, [#allocation42], %s3694_s30, %s3694_s30, %s3695_s15  }
 0x12f   :  { %s3116_s16 = scalar_lea.hbm %s3898_s21, 16 }
 0x130   :  { %p3117_p6 = scmp.ne.s32.totalorder %s3898_s21, %s3116_s16  ;;  %p3120_p7 = scmp.lt.u32.totalorder %s3116_s16, %s3898_s21 }
 0x132   :  { %p3122_p8 = pnand %p3120_p7, %p3117_p6 }
 0x134   :  { %3125 = shalt.err (!%p3122_p8)
}
 0x135   :  { %s3126_s3 = scalar_lea.vmem %s3988_s0, 16  ;;  %s3130_s18 = scalar_lea.vmem %s3988_s0, 32 }
 0x136   :  { %p3127_p9 = scmp.ne.s32.totalorder %s3988_s0, %s3126_s3  ;;  %p3131_p10 = scmp.lt.s32.totalorder %s3988_s0, %s3988_s0 }
 0x137   :  { %p3132_p11 = scmp.lt.s32.totalorder %s3130_s18, %s3126_s3 }
 0x139   :  { %p3133_p12 = por %p3132_p11, %p3131_p10 }
 0x13b   :  { %p3134_p13 = pnand %p3133_p12, %p3127_p9 }
 0x13d   :  { %3137 = shalt.err (!%p3134_p13)
}
 0x13e   :  { %s4308_s29 = sld [smem:[#allocation97_spill]]  ;;  %s3696_s19 = smov [#allocation47]  }
 0x13f   :  { %412 = dma.hbm_to_vmem [thread:$0]  %s3898_s21, 16, %s3988_s0, [#allocation45]  }
 0x140   :  { %s428_s22 = sshll.u32 %s3696_s19, 4  ;;  %s3697_s25 = smov [#allocation50]   ;;  %s429_s22 = int_to_ptr.vmem [resolvable:$true] %s428_s22 }
 0x141   :  { %s451_s23 = sshll.u32 %s3697_s25, 4  ;;  %s452_s23 = int_to_ptr.vmem [resolvable:$true] %s451_s23 }
 0x144   :  { %s3138_s26 = scalar_lea.hbm %s4308_s29, 16384 }
 0x145   :  { %p3139_p0 = scmp.ne.s32.totalorder %s4308_s29, %s3138_s26  ;;  %p3142_p1 = scmp.lt.u32.totalorder %s3138_s26, %s4308_s29 }
 0x147   :  { %p3144_p2 = pnand %p3142_p1, %p3139_p0 }
 0x149   :  { %3147 = shalt.err (!%p3144_p2)
}
 0x14a   :  { %s3148_s6 = scalar_lea.vmem %s429_s22, 16384  ;;  %p3153_p4 = scmp.lt.s32.totalorder %s429_s22, %s429_s22 }
 0x14b   :  { %p3149_p3 = scmp.ne.s32.totalorder %s429_s22, %s3148_s6  ;;  %p3154_p5 = scmp.lt.s32.totalorder %s3148_s6, %s3148_s6 }
 0x14d   :  { %p3155_p6 = por %p3154_p5, %p3153_p4 }
 0x14f   :  { %p3156_p7 = pnand %p3155_p6, %p3149_p3 }
 0x151   :  { %3159 = shalt.err (!%p3156_p7)
}
 0x152   :  { %s3698_s8 = smov 256   ;;  %s4309_s21 = sld [smem:[#allocation99_spill]] }
 0x153   :  { %s3699_s28 = smov 16  }
 0x154   :  { %434 = dma.hbm_to_vmem [thread:$0]  %s4308_s29, 16384, %s429_s22, [#allocation48], %s3698_s8, %s3698_s8, %s3699_s28  }
 0x158   :  { %s3160_s1 = scalar_lea.hbm %s4309_s21, 32 }
 0x159   :  { %p3161_p8 = scmp.ne.s32.totalorder %s4309_s21, %s3160_s1  ;;  %p3164_p9 = scmp.lt.u32.totalorder %s3160_s1, %s4309_s21 }
 0x15b   :  { %p3166_p10 = pnand %p3164_p9, %p3161_p8 }
 0x15d   :  { %3169 = shalt.err (!%p3166_p10)
}
 0x15e   :  { %s3170_s2 = scalar_lea.vmem %s452_s23, 32  ;;  %p3175_p12 = scmp.lt.s32.totalorder %s452_s23, %s452_s23 }
 0x15f   :  { %p3171_p11 = scmp.ne.s32.totalorder %s452_s23, %s3170_s2  ;;  %p3176_p13 = scmp.lt.s32.totalorder %s3170_s2, %s3170_s2 }
 0x161   :  { %p3177_p0 = por %p3176_p13, %p3175_p12 }
 0x163   :  { %p3178_p1 = pnand %p3177_p0, %p3171_p11 }
 0x165   :  { %3181 = shalt.err (!%p3178_p1)
}
 0x166   :  { %s4310_s20 = sld [smem:[#allocation75_spill]]  ;;  %s3700_s9 = smov [#allocation2]  }
 0x167   :  { %454 = dma.hbm_to_vmem [thread:$0]  %s4309_s21, 32, %s452_s23, [#allocation51]  }
 0x168   :  { %s115_s14 = sshll.u32 %s3700_s9, 4  ;;  %s3701_s7 = smov [#allocation7]   ;;  %s116_s14 = int_to_ptr.vmem [resolvable:$true] %s115_s14 }
 0x169   :  { %s135_s10 = sshll.u32 %s3701_s7, 4  ;;  %s136_s10 = int_to_ptr.vmem [resolvable:$true] %s135_s10 }
 0x16c   :  { %s3182_s11 = scalar_lea.hbm %s4310_s20, 128 }
 0x16d   :  { %p3183_p2 = scmp.ne.s32.totalorder %s4310_s20, %s3182_s11  ;;  %p3186_p3 = scmp.lt.u32.totalorder %s3182_s11, %s4310_s20 }
 0x16f   :  { %p3188_p4 = pnand %p3186_p3, %p3183_p2 }
 0x171   :  { %3191 = shalt.err (!%p3188_p4)
}
 0x172   :  { %s3192_s27 = scalar_lea.vmem %s116_s14, 128  ;;  %p3197_p6 = scmp.lt.s32.totalorder %s116_s14, %s116_s14 }
 0x173   :  { %p3193_p5 = scmp.ne.s32.totalorder %s116_s14, %s3192_s27  ;;  %p3198_p7 = scmp.lt.s32.totalorder %s3192_s27, %s3192_s27 }
 0x175   :  { %p3199_p8 = por %p3198_p7, %p3197_p6 }
 0x177   :  { %p3200_p9 = pnand %p3199_p8, %p3193_p5 }
 0x179   :  { %3203 = shalt.err (!%p3200_p9)
}
 0x17a   :  { %s4311_s0 = sld [smem:[#allocation76_spill]] }
 0x17b   :  { %118 = dma.hbm_to_vmem [thread:$0]  %s4310_s20, 128, %s116_s14, [#allocation3]  }
 0x180   :  { %s3204_s4 = scalar_lea.hbm %s4311_s0, 128 }
 0x181   :  { %p3205_p10 = scmp.ne.s32.totalorder %s4311_s0, %s3204_s4  ;;  %p3208_p11 = scmp.lt.u32.totalorder %s3204_s4, %s4311_s0 }
 0x183   :  { %p3210_p12 = pnand %p3208_p11, %p3205_p10 }
 0x185   :  { %3213 = shalt.err (!%p3210_p12)
}
 0x186   :  { %s3214_s17 = scalar_lea.vmem %s136_s10, 128  ;;  %p3219_p0 = scmp.lt.s32.totalorder %s136_s10, %s136_s10 }
 0x187   :  { %p3215_p13 = scmp.ne.s32.totalorder %s136_s10, %s3214_s17  ;;  %p3220_p1 = scmp.lt.s32.totalorder %s3214_s17, %s3214_s17 }
 0x189   :  { %p3221_p2 = por %p3220_p1, %p3219_p0 }
 0x18b   :  { %p3222_p3 = pnand %p3221_p2, %p3215_p13 }
 0x18d   :  { %3225 = shalt.err (!%p3222_p3)
}
 0x18e   :  { %s4312_s16 = sld [smem:[#allocation77_spill]]  ;;  %s3702_s3 = smov [#allocation10]  }
 0x18f   :  { %138 = dma.hbm_to_vmem [thread:$0]  %s4311_s0, 128, %s136_s10, [#allocation6]  }
 0x190   :  { %s154_s18 = sshll.u32 %s3702_s3, 4  ;;  %s3703_s29 = smov [#allocation13]   ;;  %s155_s18 = int_to_ptr.vmem [resolvable:$true] %s154_s18 }
 0x191   :  { %s187_s19 = sshll.u32 %s3703_s29, 4  ;;  %s188_s19 = int_to_ptr.vmem [resolvable:$true] %s187_s19 }
 0x194   :  { %s3226_s22 = scalar_lea.hbm %s4312_s16, 1024 }
 0x195   :  { %p3227_p4 = scmp.ne.s32.totalorder %s4312_s16, %s3226_s22  ;;  %p3230_p5 = scmp.lt.u32.totalorder %s3226_s22, %s4312_s16 }
 0x197   :  { %p3232_p6 = pnand %p3230_p5, %p3227_p4 }
 0x199   :  { %3235 = shalt.err (!%p3232_p6)
}
 0x19a   :  { %s3236_s25 = scalar_lea.vmem %s155_s18, 1024  ;;  %p3241_p8 = scmp.lt.s32.totalorder %s155_s18, %s155_s18 }
 0x19b   :  { %p3237_p7 = scmp.ne.s32.totalorder %s155_s18, %s3236_s25  ;;  %p3242_p9 = scmp.lt.s32.totalorder %s3236_s25, %s3236_s25 }
 0x19d   :  { %p3243_p10 = por %p3242_p9, %p3241_p8 }
 0x19f   :  { %p3244_p11 = pnand %p3243_p10, %p3237_p7 }
 0x1a1   :  { %3247 = shalt.err (!%p3244_p11)
}
 0x1a2   :  { %s4313_s23 = sld [smem:[#allocation83_spill]] }
 0x1a3   :  { %160 = dma.hbm_to_vmem [thread:$0]  %s4312_s16, 1024, %s155_s18, [#allocation9], %s3698_s8, %s3698_s8, %s3699_s28  }
 0x1a8   :  { %s3248_s26 = scalar_lea.hbm %s4313_s23, 16 }
 0x1a9   :  { %p3249_p12 = scmp.ne.s32.totalorder %s4313_s23, %s3248_s26  ;;  %p3252_p13 = scmp.lt.u32.totalorder %s3248_s26, %s4313_s23 }
 0x1ab   :  { %p3254_p0 = pnand %p3252_p13, %p3249_p12 }
 0x1ad   :  { %3257 = shalt.err (!%p3254_p0)
}
 0x1ae   :  { %s3258_s6 = scalar_lea.vmem %s188_s19, 16  ;;  %s3262_s21 = scalar_lea.vmem %s188_s19, 32 }
 0x1af   :  { %p3259_p1 = scmp.ne.s32.totalorder %s188_s19, %s3258_s6  ;;  %p3263_p2 = scmp.lt.s32.totalorder %s188_s19, %s188_s19 }
 0x1b0   :  { %p3264_p3 = scmp.lt.s32.totalorder %s3262_s21, %s3258_s6 }
 0x1b2   :  { %p3265_p4 = por %p3264_p3, %p3263_p2 }
 0x1b4   :  { %p3266_p5 = pnand %p3265_p4, %p3259_p1 }
 0x1b6   :  { %3269 = shalt.err (!%p3266_p5)
}
 0x1b7   :  { %s4314_s1 = sld [smem:[#allocation85_spill]]  ;;  %s3704_s2 = smov [#allocation16]  }
 0x1b8   :  { %190 = dma.hbm_to_vmem [thread:$0]  %s4313_s23, 16, %s188_s19, [#allocation12]  }
 0x1b9   :  { %s209_s20 = sshll.u32 %s3704_s2, 4  ;;  %s3705_s9 = smov [#allocation19]   ;;  %s210_s20 = int_to_ptr.vmem [resolvable:$true] %s209_s20 }
 0x1ba   :  { %s228_s14 = sshll.u32 %s3705_s9, 4  ;;  %s4037_s14 = int_to_ptr.vmem [resolvable:$true] %s228_s14 }
 0x1bd   :  { %s3270_s7 = scalar_lea.hbm %s4314_s1, 32 }
 0x1be   :  { %p3271_p6 = scmp.ne.s32.totalorder %s4314_s1, %s3270_s7  ;;  %p3274_p7 = scmp.lt.u32.totalorder %s3270_s7, %s4314_s1 }
 0x1c0   :  { %p3276_p8 = pnand %p3274_p7, %p3271_p6 }
 0x1c2   :  { %3279 = shalt.err (!%p3276_p8)
}
 0x1c3   :  { %s3280_s10 = scalar_lea.vmem %s210_s20, 32  ;;  %p3285_p10 = scmp.lt.s32.totalorder %s210_s20, %s210_s20 }
 0x1c4   :  { %p3281_p9 = scmp.ne.s32.totalorder %s210_s20, %s3280_s10  ;;  %p3286_p11 = scmp.lt.s32.totalorder %s3280_s10, %s3280_s10 }
 0x1c6   :  { %p3287_p12 = por %p3286_p11, %p3285_p10 }
 0x1c8   :  { %p3288_p13 = pnand %p3287_p12, %p3281_p9 }
 0x1ca   :  { %3291 = shalt.err (!%p3288_p13)
}
 0x1cb   :  { %s4315_s11 = sld [smem:[#allocation86_spill]] }
 0x1cc   :  { %212 = dma.hbm_to_vmem [thread:$0]  %s4314_s1, 32, %s210_s20, [#allocation15]  }
 0x1d1   :  { %s3292_s27 = scalar_lea.hbm %s4315_s11, 4096 }
 0x1d2   :  { %p3293_p0 = scmp.ne.s32.totalorder %s4315_s11, %s3292_s27  ;;  %p3296_p1 = scmp.lt.u32.totalorder %s3292_s27, %s4315_s11 }
 0x1d4   :  { %p3298_p2 = pnand %p3296_p1, %p3293_p0 }
 0x1d6   :  { %3301 = shalt.err (!%p3298_p2)
}
 0x1d7   :  { %s3302_s0 = scalar_lea.vmem %s4037_s14, 4096  ;;  %p3307_p4 = scmp.lt.s32.totalorder %s4037_s14, %s4037_s14 }
 0x1d8   :  { %p3303_p3 = scmp.ne.s32.totalorder %s4037_s14, %s3302_s0  ;;  %p3308_p5 = scmp.lt.s32.totalorder %s3302_s0, %s3302_s0 }
 0x1da   :  { %p3309_p6 = por %p3308_p5, %p3307_p4 }
 0x1dc   :  { %p3310_p7 = pnand %p3309_p6, %p3303_p3 }
 0x1de   :  { %3313 = shalt.err (!%p3310_p7)
}
 0x1df   :  { %s4316_s4 = sld [smem:[#allocation87_spill]]  ;;  %s3706_s17 = smov [#allocation22]  }
 0x1e0   :  { %234 = dma.hbm_to_vmem [thread:$0]  %s4315_s11, 4096, %s4037_s14, [#allocation18], %s3694_s30, %s3694_s30, %s3695_s15  }
 0x1e1   :  { %s251_s16 = sshll.u32 %s3706_s17, 4  ;;  %s3707_s3 = smov [#allocation25]   ;;  %s252_s16 = int_to_ptr.vmem [resolvable:$true] %s251_s16 }
 0x1e2   :  { %s270_s18 = sshll.u32 %s3707_s3, 4  ;;  %s4055_s18 = int_to_ptr.vmem [resolvable:$true] %s270_s18 }
 0x1e5   :  { %s3314_s29 = scalar_lea.hbm %s4316_s4, 16 }
 0x1e6   :  { %p3315_p8 = scmp.ne.s32.totalorder %s4316_s4, %s3314_s29  ;;  %p3318_p9 = scmp.lt.u32.totalorder %s3314_s29, %s4316_s4 }
 0x1e8   :  { %p3320_p10 = pnand %p3318_p9, %p3315_p8 }
 0x1ea   :  { %3323 = shalt.err (!%p3320_p10)
}
 0x1eb   :  { %s3324_s19 = scalar_lea.vmem %s252_s16, 16  ;;  %s3328_s22 = scalar_lea.vmem %s252_s16, 32 }
 0x1ec   :  { %p3325_p11 = scmp.ne.s32.totalorder %s252_s16, %s3324_s19  ;;  %p3329_p12 = scmp.lt.s32.totalorder %s252_s16, %s252_s16 }
 0x1ed   :  { %p3330_p13 = scmp.lt.s32.totalorder %s3328_s22, %s3324_s19 }
 0x1ef   :  { %p3331_p0 = por %p3330_p13, %p3329_p12 }
 0x1f1   :  { %p3332_p1 = pnand %p3331_p0, %p3325_p11 }
 0x1f3   :  { %3335 = shalt.err (!%p3332_p1)
}
 0x1f4   :  { %s4317_s25 = sld [smem:[#allocation88_spill]] }
 0x1f5   :  { %254 = dma.hbm_to_vmem [thread:$0]  %s4316_s4, 16, %s252_s16, [#allocation21]  }
 0x1fa   :  { %s3336_s23 = scalar_lea.hbm %s4317_s25, 512 }
 0x1fb   :  { %p3337_p2 = scmp.ne.s32.totalorder %s4317_s25, %s3336_s23  ;;  %p3340_p3 = scmp.lt.u32.totalorder %s3336_s23, %s4317_s25 }
 0x1fd   :  { %p3342_p4 = pnand %p3340_p3, %p3337_p2 }
 0x1ff   :  { %3345 = shalt.err (!%p3342_p4)
}
 0x200   :  { %s3346_s26 = scalar_lea.vmem %s4055_s18, 512  ;;  %p3351_p6 = scmp.lt.s32.totalorder %s4055_s18, %s4055_s18 }
 0x201   :  { %p3347_p5 = scmp.ne.s32.totalorder %s4055_s18, %s3346_s26  ;;  %p3352_p7 = scmp.lt.s32.totalorder %s3346_s26, %s3346_s26 }
 0x203   :  { %p3353_p8 = por %p3352_p7, %p3351_p6 }
 0x205   :  { %p3354_p9 = pnand %p3353_p8, %p3347_p5 }
 0x207   :  { %3357 = shalt.err (!%p3354_p9)
}
 0x208   :  { %s4318_s6 = sld [smem:[#allocation89_spill]]  ;;  %s3708_s21 = smov [#allocation28]  }
 0x209   :  { %276 = dma.hbm_to_vmem [thread:$0]  %s4317_s25, 512, %s4055_s18, [#allocation24], %s3698_s8, %s3698_s8, %s3699_s28  }
 0x20a   :  { %s293_s1 = sshll.u32 %s3708_s21, 4  ;;  %s3709_s2 = smov [#allocation31]   ;;  %s294_s1 = int_to_ptr.vmem [resolvable:$true] %s293_s1 }
 0x20b   :  { %s312_s20 = sshll.u32 %s3709_s2, 4  ;;  %s4073_s20 = int_to_ptr.vmem [resolvable:$true] %s312_s20 }
 0x20e   :  { %s3358_s9 = scalar_lea.hbm %s4318_s6, 32 }
 0x20f   :  { %p3359_p10 = scmp.ne.s32.totalorder %s4318_s6, %s3358_s9  ;;  %p3362_p11 = scmp.lt.u32.totalorder %s3358_s9, %s4318_s6 }
 0x211   :  { %p3364_p12 = pnand %p3362_p11, %p3359_p10 }
 0x213   :  { %3367 = shalt.err (!%p3364_p12)
}
 0x214   :  { %s3368_s14 = scalar_lea.vmem %s294_s1, 32  ;;  %p3373_p0 = scmp.lt.s32.totalorder %s294_s1, %s294_s1 }
 0x215   :  { %p3369_p13 = scmp.ne.s32.totalorder %s294_s1, %s3368_s14  ;;  %p3374_p1 = scmp.lt.s32.totalorder %s3368_s14, %s3368_s14 }
 0x217   :  { %p3375_p2 = por %p3374_p1, %p3373_p0 }
 0x219   :  { %p3376_p3 = pnand %p3375_p2, %p3369_p13 }
 0x21b   :  { %3379 = shalt.err (!%p3376_p3)
}
 0x21c   :  { %s4319_s8 = sld [smem:[#allocation90_spill]] }
 0x21d   :  { %296 = dma.hbm_to_vmem [thread:$0]  %s4318_s6, 32, %s294_s1, [#allocation27]  }
 0x222   :  { %s3380_s28 = scalar_lea.hbm %s4319_s8, 4096 }
 0x223   :  { %p3381_p4 = scmp.ne.s32.totalorder %s4319_s8, %s3380_s28  ;;  %p3384_p5 = scmp.lt.u32.totalorder %s3380_s28, %s4319_s8 }
 0x225   :  { %p3386_p6 = pnand %p3384_p5, %p3381_p4 }
 0x227   :  { %3389 = shalt.err (!%p3386_p6)
}
 0x228   :  { %s3390_s7 = scalar_lea.vmem %s4073_s20, 4096  ;;  %p3395_p8 = scmp.lt.s32.totalorder %s4073_s20, %s4073_s20 }
 0x229   :  { %p3391_p7 = scmp.ne.s32.totalorder %s4073_s20, %s3390_s7  ;;  %p3396_p9 = scmp.lt.s32.totalorder %s3390_s7, %s3390_s7 }
 0x22b   :  { %p3397_p10 = por %p3396_p9, %p3395_p8 }
 0x22d   :  { %p3398_p11 = pnand %p3397_p10, %p3391_p7 }
 0x22f   :  { %3401 = shalt.err (!%p3398_p11)
}
 0x230   :  { %s4320_s10 = sld [smem:[#allocation91_spill]]  ;;  %s3710_s11 = smov [#allocation34]  }
 0x231   :  { %318 = dma.hbm_to_vmem [thread:$0]  %s4319_s8, 4096, %s4073_s20, [#allocation30], %s3694_s30, %s3694_s30, %s3695_s15  }
 0x232   :  { %s335_s27 = sshll.u32 %s3710_s11, 4  ;;  %s3711_s0 = smov [#allocation37]   ;;  %s336_s27 = int_to_ptr.vmem [resolvable:$true] %s335_s27 }
 0x233   :  { %s357_s4 = sshll.u32 %s3711_s0, 4  ;;  %s358_s4 = int_to_ptr.vmem [resolvable:$true] %s357_s4 }
 0x236   :  { %s3402_s17 = scalar_lea.hbm %s4320_s10, 16 }
 0x237   :  { %p3403_p12 = scmp.ne.s32.totalorder %s4320_s10, %s3402_s17  ;;  %p3406_p13 = scmp.lt.u32.totalorder %s3402_s17, %s4320_s10 }
 0x239   :  { %p3408_p0 = pnand %p3406_p13, %p3403_p12 }
 0x23b   :  { %3411 = shalt.err (!%p3408_p0)
}
 0x23c   :  { %s3412_s16 = scalar_lea.vmem %s336_s27, 16  ;;  %s3416_s3 = scalar_lea.vmem %s336_s27, 32 }
 0x23d   :  { %p3413_p1 = scmp.ne.s32.totalorder %s336_s27, %s3412_s16  ;;  %p3417_p2 = scmp.lt.s32.totalorder %s336_s27, %s336_s27 }
 0x23e   :  { %p3418_p3 = scmp.lt.s32.totalorder %s3416_s3, %s3412_s16 }
 0x240   :  { %p3419_p4 = por %p3418_p3, %p3417_p2 }
 0x242   :  { %p3420_p5 = pnand %p3419_p4, %p3413_p1 }
 0x244   :  { %3423 = shalt.err (!%p3420_p5)
}
 0x245   :  { %s4321_s30 = sld [smem:[#allocation93_spill]] }
 0x246   :  { %338 = dma.hbm_to_vmem [thread:$0]  %s4320_s10, 16, %s336_s27, [#allocation33]  }
 0x24b   :  { %s3424_s15 = scalar_lea.hbm %s4321_s30, 32 }
 0x24c   :  { %p3425_p6 = scmp.ne.s32.totalorder %s4321_s30, %s3424_s15  ;;  %p3428_p7 = scmp.lt.u32.totalorder %s3424_s15, %s4321_s30 }
 0x24e   :  { %p3430_p8 = pnand %p3428_p7, %p3425_p6 }
 0x250   :  { %3433 = shalt.err (!%p3430_p8)
}
 0x251   :  { %s3434_s18 = scalar_lea.vmem %s358_s4, 32  ;;  %p3439_p10 = scmp.lt.s32.totalorder %s358_s4, %s358_s4 }
 0x252   :  { %p3435_p9 = scmp.ne.s32.totalorder %s358_s4, %s3434_s18  ;;  %p3440_p11 = scmp.lt.s32.totalorder %s3434_s18, %s3434_s18 }
 0x254   :  { %p3441_p12 = por %p3440_p11, %p3439_p10 }
 0x256   :  { %p3442_p13 = pnand %p3441_p12, %p3435_p9 }
 0x258   :  { %3445 = shalt.err (!%p3442_p13)
}
 0x259   :  { %s4322_s29 = sld [smem:[#allocation94_spill]]  ;;  %s3712_s19 = smov [#allocation40]  }
 0x25a   :  { %360 = dma.hbm_to_vmem [thread:$0]  %s4321_s30, 32, %s358_s4, [#allocation36]  }
 0x25b   :  { %s377_s22 = sshll.u32 %s3712_s19, 4  ;;  %s3713_s25 = smov [#allocation43]   ;;  %s378_s22 = int_to_ptr.vmem [resolvable:$true] %s377_s22 }
 0x25c   :  { %s399_s23 = sshll.u32 %s3713_s25, 4  ;;  %s400_s23 = int_to_ptr.vmem [resolvable:$true] %s399_s23 }
 0x25f   :  { %s3446_s26 = scalar_lea.hbm %s4322_s29, 32 }
 0x260   :  { %p3447_p0 = scmp.ne.s32.totalorder %s4322_s29, %s3446_s26  ;;  %p3450_p1 = scmp.lt.u32.totalorder %s3446_s26, %s4322_s29 }
 0x262   :  { %p3452_p2 = pnand %p3450_p1, %p3447_p0 }
 0x264   :  { %3455 = shalt.err (!%p3452_p2)
}
 0x265   :  { %s3456_s6 = scalar_lea.vmem %s378_s22, 32  ;;  %p3461_p4 = scmp.lt.s32.totalorder %s378_s22, %s378_s22 }
 0x266   :  { %p3457_p3 = scmp.ne.s32.totalorder %s378_s22, %s3456_s6  ;;  %p3462_p5 = scmp.lt.s32.totalorder %s3456_s6, %s3456_s6 }
 0x268   :  { %p3463_p6 = por %p3462_p5, %p3461_p4 }
 0x26a   :  { %p3464_p7 = pnand %p3463_p6, %p3457_p3 }
 0x26c   :  { %3467 = shalt.err (!%p3464_p7)
}
 0x26d   :  { %s4323_s21 = sld [smem:[#allocation95_spill]] }
 0x26e   :  { %380 = dma.hbm_to_vmem [thread:$0]  %s4322_s29, 32, %s378_s22, [#allocation39]  }
 0x273   :  { %s3468_s1 = scalar_lea.hbm %s4323_s21, 16 }
 0x274   :  { %p3469_p8 = scmp.ne.s32.totalorder %s4323_s21, %s3468_s1  ;;  %p3472_p9 = scmp.lt.u32.totalorder %s3468_s1, %s4323_s21 }
 0x276   :  { %p3474_p10 = pnand %p3472_p9, %p3469_p8 }
 0x278   :  { %3477 = shalt.err (!%p3474_p10)
}
 0x279   :  { %s3478_s2 = scalar_lea.vmem %s400_s23, 16  ;;  %s3482_s20 = scalar_lea.vmem %s400_s23, 32 }
 0x27a   :  { %p3479_p11 = scmp.ne.s32.totalorder %s400_s23, %s3478_s2  ;;  %p3483_p12 = scmp.lt.s32.totalorder %s400_s23, %s400_s23 }
 0x27b   :  { %p3484_p13 = scmp.lt.s32.totalorder %s3482_s20, %s3478_s2 }
 0x27d   :  { %p3485_p0 = por %p3484_p13, %p3483_p12 }
 0x27f   :  { %p3486_p1 = pnand %p3485_p0, %p3479_p11 }
 0x281   :  { %3489 = shalt.err (!%p3486_p1)
}
 0x282   :  { %s4324_s9 = sld [smem:[#allocation96_spill]]  ;;  %s3714_s14 = smov [#allocation46]  }
 0x283   :  { %402 = dma.hbm_to_vmem [thread:$0]  %s4323_s21, 16, %s400_s23, [#allocation42]  }
 0x284   :  { %s419_s8 = sshll.u32 %s3714_s14, 4  ;;  %s3715_s28 = smov [#allocation49]   ;;  %s420_s8 = int_to_ptr.vmem [resolvable:$true] %s419_s8 }
 0x285   :  { %s441_s7 = sshll.u32 %s3715_s28, 4  ;;  %s442_s7 = int_to_ptr.vmem [resolvable:$true] %s441_s7 }
 0x288   :  { %s3490_s10 = scalar_lea.hbm %s4324_s9, 16 }
 0x289   :  { %p3491_p2 = scmp.ne.s32.totalorder %s4324_s9, %s3490_s10  ;;  %p3494_p3 = scmp.lt.u32.totalorder %s3490_s10, %s4324_s9 }
 0x28b   :  { %p3496_p4 = pnand %p3494_p3, %p3491_p2 }
 0x28d   :  { %3499 = shalt.err (!%p3496_p4)
}
 0x28e   :  { %s3500_s11 = scalar_lea.vmem %s420_s8, 16  ;;  %s3504_s27 = scalar_lea.vmem %s420_s8, 32 }
 0x28f   :  { %p3501_p5 = scmp.ne.s32.totalorder %s420_s8, %s3500_s11  ;;  %p3505_p6 = scmp.lt.s32.totalorder %s420_s8, %s420_s8 }
 0x290   :  { %p3506_p7 = scmp.lt.s32.totalorder %s3504_s27, %s3500_s11 }
 0x292   :  { %p3507_p8 = por %p3506_p7, %p3505_p6 }
 0x294   :  { %p3508_p9 = pnand %p3507_p8, %p3501_p5 }
 0x296   :  { %3511 = shalt.err (!%p3508_p9)
}
 0x297   :  { %s4325_s0 = sld [smem:[#allocation98_spill]] }
 0x298   :  { %422 = dma.hbm_to_vmem [thread:$0]  %s4324_s9, 16, %s420_s8, [#allocation45]  }
 0x29d   :  { %s3512_s4 = scalar_lea.hbm %s4325_s0, 32 }
 0x29e   :  { %p3513_p10 = scmp.ne.s32.totalorder %s4325_s0, %s3512_s4  ;;  %p3516_p11 = scmp.lt.u32.totalorder %s3512_s4, %s4325_s0 }
 0x2a0   :  { %p3518_p12 = pnand %p3516_p11, %p3513_p10 }
 0x2a2   :  { %3521 = shalt.err (!%p3518_p12)
}
 0x2a3   :  { %s3522_s17 = scalar_lea.vmem %s442_s7, 32  ;;  %p3527_p0 = scmp.lt.s32.totalorder %s442_s7, %s442_s7 }
 0x2a4   :  { %p3523_p13 = scmp.ne.s32.totalorder %s442_s7, %s3522_s17  ;;  %p3528_p1 = scmp.lt.s32.totalorder %s3522_s17, %s3522_s17 }
 0x2a6   :  { %p3529_p2 = por %p3528_p1, %p3527_p0 }
 0x2a8   :  { %p3530_p3 = pnand %p3529_p2, %p3523_p13 }
 0x2aa   :  { %3533 = shalt.err (!%p3530_p3)
}
 0x2ab   :  { %444 = dma.hbm_to_vmem [thread:$0]  %s4325_s0, 32, %s442_s7, [#allocation48]  }
 0x2ac   :  { %s3716_s16 = smov [#allocation52]   ;;  %s3717_s30 = smov [#allocation53]  }
 0x2ad   :  { %s461_s3 = sshll.u32 %s3716_s16, 4  ;;  %s473_s15 = sshll.u32 %s3717_s30, 4  ;;  %s462_s3 = int_to_ptr.vmem [resolvable:$true] %s461_s3  ;;  %s474_s15 = int_to_ptr.vmem [resolvable:$true] %s473_s15 }
 0x2ae   :  { %s3534_s18 = scalar_lea.hbm %s3923_s24, 32 }
 0x2af   :  { %p3535_p4 = scmp.ne.s32.totalorder %s3923_s24, %s3534_s18  ;;  %p3538_p5 = scmp.lt.u32.totalorder %s3534_s18, %s3923_s24 }
 0x2b1   :  { %p3540_p6 = pnand %p3538_p5, %p3535_p4 }
 0x2b3   :  { %3543 = shalt.err (!%p3540_p6)
}
 0x2b4   :  { %s3544_s29 = scalar_lea.vmem %s462_s3, 32  ;;  %p3549_p8 = scmp.lt.s32.totalorder %s462_s3, %s462_s3 }
 0x2b5   :  { %p3545_p7 = scmp.ne.s32.totalorder %s462_s3, %s3544_s29  ;;  %p3550_p9 = scmp.lt.s32.totalorder %s3544_s29, %s3544_s29 }
 0x2b7   :  { %p3551_p10 = por %p3550_p9, %p3549_p8 }
 0x2b9   :  { %p3552_p11 = pnand %p3551_p10, %p3545_p7 }
 0x2bb   :  { %3555 = shalt.err (!%p3552_p11)
}
 0x2bc   :  { %464 = dma.hbm_to_vmem [thread:$0]  %s3923_s24, 32, %s462_s3, [#allocation51]  }
 0x2bd   :  { %s3556_s19 = scalar_lea.hbm %s3933_s12, 16 }
 0x2be   :  { %p3557_p12 = scmp.ne.s32.totalorder %s3933_s12, %s3556_s19  ;;  %p3560_p13 = scmp.lt.u32.totalorder %s3556_s19, %s3933_s12 }
 0x2c0   :  { %p3562_p0 = pnand %p3560_p13, %p3557_p12 }
 0x2c2   :  { %3565 = shalt.err (!%p3562_p0)
}
 0x2c3   :  { %s3566_s22 = scalar_lea.vmem %s474_s15, 16  ;;  %s3570_s25 = scalar_lea.vmem %s474_s15, 32 }
 0x2c4   :  { %p3567_p1 = scmp.ne.s32.totalorder %s474_s15, %s3566_s22  ;;  %p3571_p2 = scmp.lt.s32.totalorder %s474_s15, %s474_s15 }
 0x2c5   :  { %p3572_p3 = scmp.lt.s32.totalorder %s3570_s25, %s3566_s22 }
 0x2c7   :  { %p3573_p4 = por %p3572_p3, %p3571_p2 }
 0x2c9   :  { %p3574_p5 = pnand %p3573_p4, %p3567_p1 }
 0x2cb   :  { %3577 = shalt.err (!%p3574_p5)
}
 0x2cc   :  { %476 = dma.hbm_to_vmem [thread:$0]  %s3933_s12, 16, %s474_s15, [#allocation54]  }
 0x2cd   :  { %3600 = dma.done.wait [#allocation3], 128  }
 0x2ce   :  { %3601 = vsyncadd [#allocation3], 4294967168 }
 0x2cf   :  { %3602 = dma.done.wait [#allocation6], 256  }
 0x2d0   :  { %3603 = vsyncadd [#allocation6], 4294967040 }
 0x2d1   :  { %3604 = dma.done.wait [#allocation9], 1152  }
 0x2d2   :  { %3605 = vsyncadd [#allocation9], 4294966144 }
 0x2d3   :  { %3606 = dma.done.wait [#allocation12], 32  }
 0x2d4   :  { %3607 = vsyncadd [#allocation12], 4294967264 }
 0x2d5   :  { %3608 = dma.done.wait [#allocation15], 64  }
 0x2d6   :  { %3609 = vsyncadd [#allocation15], 4294967232 }
 0x2d7   :  { %3610 = dma.done.wait [#allocation18], 4128  }
 0x2d8   :  { %3611 = vsyncadd [#allocation18], 4294963168 }
 0x2d9   :  { %3612 = dma.done.wait [#allocation21], 32  }
 0x2da   :  { %3613 = vsyncadd [#allocation21], 4294967264 }
 0x2db   :  { %3614 = dma.done.wait [#allocation24], 528  }
 0x2dc   :  { %3615 = vsyncadd [#allocation24], 4294966768 }
 0x2dd   :  { %3616 = dma.done.wait [#allocation27], 64  }
 0x2de   :  { %3617 = vsyncadd [#allocation27], 4294967232 }
 0x2df   :  { %3618 = dma.done.wait [#allocation30], 4128  }
 0x2e0   :  { %3619 = vsyncadd [#allocation30], 4294963168 }
 0x2e1   :  { %3620 = dma.done.wait [#allocation33], 32  }
 0x2e2   :  { %3621 = vsyncadd [#allocation33], 4294967264 }
 0x2e3   :  { %3622 = dma.done.wait [#allocation36], 48  }
 0x2e4   :  { %3623 = vsyncadd [#allocation36], 4294967248 }
 0x2e5   :  { %3624 = dma.done.wait [#allocation39], 64  }
 0x2e6   :  { %3625 = vsyncadd [#allocation39], 4294967232 }
 0x2e7   :  { %3626 = dma.done.wait [#allocation42], 4112  }
 0x2e8   :  { %3627 = vsyncadd [#allocation42], 4294963184 }
 0x2e9   :  { %3628 = dma.done.wait [#allocation45], 32  }
 0x2ea   :  { %3629 = vsyncadd [#allocation45], 4294967264 }
 0x2eb   :  { %3630 = dma.done.wait [#allocation48], 16416  }
 0x2ec   :  { %3631 = vsyncadd [#allocation48], 4294950880 }
 0x2ed   :  { %3632 = dma.done.wait [#allocation51], 64  }
 0x2ee   :  { %3633 = vsyncadd [#allocation51], 4294967232 }
 0x2ef   :  { %3634 = dma.done.wait [#allocation54], 16  }
 0x2f0   :  { %3635 = vsyncadd [#allocation54], 4294967280  ;;  %s4326_s24 = sld [smem:[#allocation81_spill]]  ;;  %v3718_v0 = vmov 0.0   ;;  %v581_v1 = vld [vmem:[#allocation10 + $0x8] sm:$0xff]  ;;  %v583_v2 = vld [vmem:[#allocation10 + $0x18] sm:$0xff] }
 0x2f1   :  { %668 = vmatprep.mubr.f32.mxu0 %v3718_v0  ;;  %v580_v3 = vld [vmem:[#allocation10] sm:$0xff]  ;;  %v2424_v4 = vpack.c.bf16 %v583_v2, %v581_v1  ;;  %v582_v5 = vld [vmem:[#allocation10 + $0x10] sm:$0xff]  ;;  %v585_v6 = vld [vmem:[#allocation10 + $0x28] sm:$0xff]  ;;  %vm600_vm0 = vcmask 261120   ;;  %s4327_s12 = sld [smem:[#allocation84_spill]]  ;;  %s4328_s23 = sld [smem:[#allocation78_spill]]  ;;  %v590_v2 = vlaneseq }
 0x2f2   :  { %v587_v7 = vld [vmem:[#allocation10 + $0x38] sm:$0xff]  ;;  %v2426_v8 = vpack.c.bf16 %v582_v5, %v580_v3  ;;  %v584_v10 = vld [vmem:[#allocation10 + $0x20] sm:$0xff]  ;;  %v586_v11 = vld [vmem:[#allocation10 + $0x30] sm:$0xff]  ;;  %s4329_s26 = sld [smem:[#allocation79_spill]]  ;;  %s4330_s6 = sld [smem:[#allocation80_spill]]  ;;  %vm856_vm1 = vcmask 392192  }
 0x2f3   :  { %v2428_v9 = vpack.c.bf16 %v587_v7, %v585_v6  ;;  %2425 = vmatprep.subr.bf16.mxu0 %v2424_v4  ;;  %v2430_v14 = vpack.c.bf16 %v586_v11, %v584_v10  ;;  %v579_v20 = vld [vmem:[#allocation2] sm:$0xff]  ;;  %v591_v3 = vshrl.u32 %v590_v2, 7  ;;  %v985_v2 = vld [vmem:[#allocation19 + $0xc0] sm:$0xff]  ;;  %s4331_s21 = sld [smem:[#allocation92_spill]]  ;;  %vm1104_vm2 = vcmask 130048   ;;  %s4332_s1 = sld [smem:[#allocation82_spill]] }
 0x2f4   :  { %2427 = vmatpush1.bf16.msra.mxu0 %v2426_v8  ;;  %vm1354_vm3 = vcmask 195584   ;;  %vm2156_vm4 = vcmask 523264  }
 0x2f5   :  { %2429 = vmatprep.subr.bf16.mxu0 %v2428_v9  ;;  %v4158_v4 = vsub.s32 0, %v591_v3  ;;  %v4161_v6 = vsub.s32 1, %v591_v3  ;;  %v986_v3 = vld [vmem:[#allocation19 + $0xc8] sm:$0xff] }
 0x2f6   :  { %v721_v12 = vld [vmem:[%s4326_s24 + $0x80] sm:$0xff]  ;;  %v722_v13 = vld [vmem:[%s4326_s24 + $0x88] sm:$0xff]  ;;  %v723_v18 = vld [vmem:[%s4326_s24 + $0x90] sm:$0xff] }
 0x2f7   :  { %v2432_v15 = vpack.c.bf16 %v722_v13, %v721_v12  ;;  %v705_v16 = vld [vmem:[%s4326_s24] sm:$0xff]  ;;  %v706_v17 = vld [vmem:[%s4326_s24 + $0x8] sm:$0xff]  ;;  %v724_v19 = vld [vmem:[%s4326_s24 + $0x98] sm:$0xff] }
 0x2f8   :  { %2431 = vmatpush1.bf16.msra.mxu0 %v2430_v14  ;;  %v2434_v21 = vpack.c.bf16 %v706_v17, %v705_v16  ;;  %v2436_v22 = vpack.c.bf16 %v724_v19, %v723_v18  ;;  %v707_v23 = vld [vmem:[%s4326_s24 + $0x10] sm:$0xff]  ;;  %v708_v24 = vld [vmem:[%s4326_s24 + $0x18] sm:$0xff]  ;;  %v725_v25 = vld [vmem:[%s4326_s24 + $0xa0] sm:$0xff] }
 0x2f9   :  { %2433 = vmatprep.subr.bf16.mxu0 %v2432_v15  ;;  %v726_v26 = vld [vmem:[%s4326_s24 + $0xa8] sm:$0xff]  ;;  %v2438_v27 = vpack.c.bf16 %v708_v24, %v707_v23  ;;  %v709_v29 = vld [vmem:[%s4326_s24 + $0x20] sm:$0xff]  ;;  %v727_v31 = vld [vmem:[%s4326_s24 + $0xb0] sm:$0xff] }
 0x2fa   :  { %v2440_v28 = vpack.c.bf16 %v726_v26, %v725_v25  ;;  %v710_v30 = vld [vmem:[%s4326_s24 + $0x28] sm:$0xff]  ;;  %v728_v32 = vld [vmem:[%s4326_s24 + $0xb8] sm:$0xff]  ;;  %v711_v35 = vld [vmem:[%s4326_s24 + $0x30] sm:$0xff] }
 0x2fb   :  { %2232 = vmatmul.mubr.msk.f32.vlgmr.msra.gmra.mrb[0].mxu0 %vm600_vm0, %v579_v20  ;;  %v2442_v33 = vpack.c.bf16 %v710_v30, %v709_v29  ;;  %v2444_v34 = vpack.c.bf16 %v728_v32, %v727_v31  ;;  %v712_v36 = vld [vmem:[%s4326_s24 + $0x38] sm:$0xff]  ;;  %v729_v37 = vld [vmem:[%s4326_s24 + $0xc0] sm:$0xff]  ;;  %v730_v38 = vld [vmem:[%s4326_s24 + $0xc8] sm:$0xff] }
 0x2fc   :  { %2435 = vmatpush3.bf16.msra.mxu0 %v2434_v21  ;;  %v2446_v39 = vpack.c.bf16 %v712_v36, %v711_v35  ;;  %v2448_v40 = vpack.c.bf16 %v730_v38, %v729_v37  ;;  %v713_v41 = vld [vmem:[%s4326_s24 + $0x40] sm:$0xff]  ;;  %v714_v42 = vld [vmem:[%s4326_s24 + $0x48] sm:$0xff]  ;;  %v731_v43 = vld [vmem:[%s4326_s24 + $0xd0] sm:$0xff] }
 0x2fd   :  { %2437 = vmatprep.subr.bf16.mxu0 %v2436_v22  ;;  %v732_v44 = vld [vmem:[%s4326_s24 + $0xd8] sm:$0xff]  ;;  %v2450_v45 = vpack.c.bf16 %v714_v42, %v713_v41  ;;  %v715_v47 = vld [vmem:[%s4326_s24 + $0x50] sm:$0xff]  ;;  %v733_v50 = vld [vmem:[%s4326_s24 + $0xe0] sm:$0xff] }
 0x2fe   :  { %v2452_v46 = vpack.c.bf16 %v732_v44, %v731_v43  ;;  %v716_v48 = vld [vmem:[%s4326_s24 + $0x58] sm:$0xff]  ;;  %v734_v51 = vld [vmem:[%s4326_s24 + $0xe8] sm:$0xff]  ;;  %v717_v53 = vld [vmem:[%s4326_s24 + $0x60] sm:$0xff] }
 0x2ff   :  { %v2454_v49 = vpack.c.bf16 %v716_v48, %v715_v47  ;;  %v2456_v52 = vpack.c.bf16 %v734_v51, %v733_v50  ;;  %v718_v54 = vld [vmem:[%s4326_s24 + $0x68] sm:$0xff]  ;;  %v735_v56 = vld [vmem:[%s4326_s24 + $0xf0] sm:$0xff]  ;;  %v736_v57 = vld [vmem:[%s4326_s24 + $0xf8] sm:$0xff] }
 0x300   :  { %2439 = vmatpush3.bf16.msra.mxu0 %v2438_v27  ;;  %v2458_v55 = vpack.c.bf16 %v718_v54, %v717_v53  ;;  %v2460_v58 = vpack.c.bf16 %v736_v57, %v735_v56  ;;  %v719_v59 = vld [vmem:[%s4326_s24 + $0x70] sm:$0xff]  ;;  %v720_v60 = vld [vmem:[%s4326_s24 + $0x78] sm:$0xff]  ;;  %v833_v62 = vld [vmem:[%s4327_s12 + $0x8] sm:$0xff] }
 0x301   :  { %2441 = vmatprep.subr.bf16.mxu0 %v2440_v28  ;;  %v2462_v61 = vpack.c.bf16 %v720_v60, %v719_v59  ;;  %v835_v63 = vld [vmem:[%s4327_s12 + $0x18] sm:$0xff]  ;;  %v588_v5 = vld [vmem:[%s4328_s23] sm:$0x3]  ;;  %v834_v23 = vld [vmem:[%s4327_s12 + $0x10] sm:$0xff] }
 0x302   :  { %v2464_v1 = vpack.c.bf16 %v835_v63, %v833_v62  ;;  %v593_v7 = vrot.slane %v588_v5, %v4158_v4  ;;  %v677_v8 = vld [vmem:[%s4329_s26] sm:$0x3]  ;;  %v597_v9 = vrot.slane %v588_v5, %v4161_v6  ;;  %v837_v25 = vld [vmem:[%s4327_s12 + $0x28] sm:$0xff]  ;;  %v839_v26 = vld [vmem:[%s4327_s12 + $0x38] sm:$0xff]  ;;  %v2492_v5 = vpack.c.bf16 %v986_v3, %v985_v2 }
 0x303   :  { %v682_v12 = vrot.slane %v677_v8, %v4158_v4  ;;  %v691_v13 = vld [vmem:[%s4330_s6] sm:$0x3]  ;;  %v686_v16 = vrot.slane %v677_v8, %v4161_v6  ;;  %v2468_v30 = vpack.c.bf16 %v839_v26, %v837_v25  ;;  %v838_v32 = vld [vmem:[%s4327_s12 + $0x30] sm:$0xff]  ;;  %v831_v47 = vld [vmem:[#allocation5] sm:$0xff] }
 0x304   :  { %2443 = vmatpush3.bf16.msra.mxu0 %v2442_v33  ;;  %v700_v19 = vrot.slane %v691_v13, %v4161_v6  ;;  %v696_v21 = vrot.slane %v691_v13, %v4158_v4  ;;  %v832_v22 = vld [vmem:[%s4327_s12] sm:$0xff]  ;;  %v841_v33 = vld [vmem:[%s4327_s12 + $0x48] sm:$0xff]  ;;  %v842_v38 = vld [vmem:[%s4327_s12 + $0x50] sm:$0xff] }
 0x305   :  { %2445 = vmatprep.subr.bf16.mxu0 %v2444_v34  ;;  %v2466_v28 = vpack.c.bf16 %v834_v23, %v832_v22  ;;  %v836_v31 = vld [vmem:[%s4327_s12 + $0x20] sm:$0xff]  ;;  %v843_v34 = vld [vmem:[%s4327_s12 + $0x58] sm:$0xff]  ;;  %v961_v43 = vld [vmem:[#allocation19] sm:$0xff] }
 0x306   :  { %v2470_v35 = vpack.c.bf16 %v838_v32, %v836_v31  ;;  %v2472_v36 = vpack.c.bf16 %v843_v34, %v841_v33  ;;  %v840_v37 = vld [vmem:[%s4327_s12 + $0x40] sm:$0xff]  ;;  %v962_v44 = vld [vmem:[#allocation19 + $0x8] sm:$0xff]  ;;  %v965_v56 = vld [vmem:[#allocation19 + $0x20] sm:$0xff] }
 0x307   :  { %v2474_v41 = vpack.c.bf16 %v842_v38, %v840_v37  ;;  %v2478_v48 = vpack.c.bf16 %v962_v44, %v961_v43  ;;  %v963_v50 = vld [vmem:[#allocation19 + $0x10] sm:$0xff]  ;;  %v964_v51 = vld [vmem:[#allocation19 + $0x18] sm:$0xff]  ;;  %v982_v53 = vld [vmem:[#allocation19 + $0xa8] sm:$0xff] }
 0x308   :  { %2447 = vmatpush3.bf16.msra.mxu0 %v2446_v39  ;;  %v977_v39 = vld [vmem:[#allocation19 + $0x80] sm:$0xff]  ;;  %v2482_v54 = vpack.c.bf16 %v964_v51, %v963_v50  ;;  %v966_v57 = vld [vmem:[#allocation19 + $0x28] sm:$0xff]  ;;  %v983_v59 = vld [vmem:[#allocation19 + $0xb0] sm:$0xff] }
 0x309   :  { %2449 = vmatprep.subr.bf16.mxu0 %v2448_v40  ;;  %v978_v40 = vld [vmem:[#allocation19 + $0x88] sm:$0xff]  ;;  %v984_v60 = vld [vmem:[#allocation19 + $0xb8] sm:$0xff]  ;;  %v967_v62 = vld [vmem:[#allocation19 + $0x30] sm:$0xff] }
 0x30a   :  { %v2476_v42 = vpack.c.bf16 %v978_v40, %v977_v39  ;;  %v968_v63 = vld [vmem:[#allocation19 + $0x38] sm:$0xff]  ;;  %v970_v8 = vld [vmem:[#allocation19 + $0x48] sm:$0xff]  ;;  %v971_v13 = vld [vmem:[#allocation19 + $0x50] sm:$0xff] }
 0x30b   :  { %v991_v22 = vld [vmem:[#allocation19 + $0xf0] sm:$0xff]  ;;  %v992_v23 = vld [vmem:[#allocation19 + $0xf8] sm:$0xff]  ;;  %v1228_v37 = vld [vmem:[#allocation31 + $0x98] sm:$0xff] }
 0x30c   :  { %2451 = vmatpush3.bf16.msra.mxu0 %v2450_v45  ;;  %v979_v45 = vld [vmem:[#allocation19 + $0x90] sm:$0xff]  ;;  %v976_v26 = vld [vmem:[#allocation19 + $0x78] sm:$0xff] }
 0x30d   :  { %2453 = vmatprep.subr.bf16.mxu0 %v2452_v46  ;;  %v980_v46 = vld [vmem:[#allocation19 + $0x98] sm:$0xff]  ;;  %v975_v25 = vld [vmem:[#allocation19 + $0x70] sm:$0xff] }
 0x30e   :  { %v1225_v31 = vld [vmem:[#allocation31 + $0x80] sm:$0xff]  ;;  %v1226_v32 = vld [vmem:[#allocation31 + $0x88] sm:$0xff]  ;;  %v1211_v40 = vld [vmem:[#allocation31 + $0x10] sm:$0xff] }
 0x30f   :  { %v1209_v33 = vld [vmem:[#allocation31] sm:$0xff]  ;;  %v2512_v34 = vpack.c.bf16 %v1226_v32, %v1225_v31  ;;  %v1230_v43 = vld [vmem:[#allocation31 + $0xa8] sm:$0xff]  ;;  %v933_v3 = vld [vmem:[#allocation16] sm:$0x3] }
 0x310   :  { %2455 = vmatpush3.bf16.msra.mxu0 %v2454_v49  ;;  %v2480_v49 = vpack.c.bf16 %v980_v46, %v979_v45  ;;  %v1213_v46 = vld [vmem:[#allocation31 + $0x20] sm:$0xff]  ;;  %v1341_v32 = vld [vmem:[%s4331_s21 + $0x28] sm:$0xff] }
 0x311   :  { %2457 = vmatprep.subr.bf16.mxu0 %v2456_v52  ;;  %v981_v52 = vld [vmem:[#allocation19 + $0xa0] sm:$0xff]  ;;  %2513 = vmatprep.subr.bf16.mxu1 %v2512_v34  ;;  %v1335_v34 = vld [vmem:[#allocation8] sm:$0xff] }
 0x314   :  { %2459 = vmatpush3.bf16.msra.mxu0 %v2458_v55  ;;  %v2484_v55 = vpack.c.bf16 %v982_v53, %v981_v52  ;;  %v1215_v52 = vld [vmem:[#allocation31 + $0x30] sm:$0xff]  ;;  %v1216_v53 = vld [vmem:[#allocation31 + $0x38] sm:$0xff] }
 0x315   :  { %2461 = vmatprep.subr.bf16.mxu0 %v2460_v58  ;;  %v2486_v58 = vpack.c.bf16 %v966_v57, %v965_v56  ;;  %v2526_v56 = vpack.c.bf16 %v1216_v53, %v1215_v52  ;;  %v1475_v53 = vld [vmem:[#allocation41 + $0x80] sm:$0xff] }
 0x318   :  { %2463 = vmatpush3.bf16.msra.mxu0 %v2462_v61  ;;  %v2488_v61 = vpack.c.bf16 %v984_v60, %v983_v59  ;;  %v1218_v59 = vld [vmem:[#allocation31 + $0x48] sm:$0xff] }
 0x319   :  { %2465 = vmatprep.subr.bf16.mxu0 %v2464_v1  ;;  %v2490_v1 = vpack.c.bf16 %v968_v63, %v967_v62 }
 0x3ce   :  { %v670_v10 = vpop.f32.mrb[0].mxu0 }
 0x3cf   :  { %v671_v11 = vadd.f32 %v670_v10, %v593_v7  ;;  %v672_v14 = vpop.f32.mrb[1].mxu0  ;;  %v969_v7 = vld [vmem:[#allocation19 + $0x40] sm:$0xff]  ;;  %v987_v10 = vld [vmem:[#allocation19 + $0xd0] sm:$0xff] }
 0x3d0   :  { %v673_v15 = vadd.f32 %v672_v14, %v597_v9  ;;  %v2494_v9 = vpack.c.bf16 %v970_v8, %v969_v7  ;;  %v972_v14 = vld [vmem:[#allocation19 + $0x58] sm:$0xff] }
 0x3d1   :  { %v675_v17 = vmax.f32 %v671_v11, 0.0  ;;  %v988_v11 = vld [vmem:[#allocation19 + $0xd8] sm:$0xff] }
 0x3d2   :  { %v676_v18 = vmax.f32 %v673_v15, 0.0  ;;  %v2498_v15 = vpack.c.bf16 %v972_v14, %v971_v13  ;;  %v942_v13 = vrot.slane %v933_v3, %v4161_v6 }
 0x3d3   :  { %v689_v20 = vmul.f32 %v682_v12, %v675_v17  ;;  %v2496_v12 = vpack.c.bf16 %v988_v11, %v987_v10  ;;  %v990_v17 = vld [vmem:[#allocation19 + $0xe8] sm:$0xff]  ;;  %v947_v10 = vld [vmem:[#allocation17] sm:$0x3] }
 0x3d4   :  { %v690_v24 = vmul.f32 %v686_v16, %v676_v18  ;;  %v989_v16 = vld [vmem:[#allocation19 + $0xe0] sm:$0xff] }
 0x3d5   :  { %v703_v29 = vadd.f32 %v696_v21, %v689_v20  ;;  %v2500_v18 = vpack.c.bf16 %v990_v17, %v989_v16  ;;  %v974_v20 = vld [vmem:[#allocation19 + $0x68] sm:$0xff]  ;;  %v956_v16 = vrot.slane %v947_v10, %v4161_v6 }
 0x3d6   :  { %v704_v27 = vadd.f32 %v700_v19, %v690_v24  ;;  %v973_v19 = vld [vmem:[#allocation19 + $0x60] sm:$0xff]  ;;  %v2504_v24 = vpack.c.bf16 %v992_v23, %v991_v22  ;;  %v1339_v23 = vld [vmem:[%s4331_s21 + $0x18] sm:$0xff] }
 0x3d7   :  { %v2502_v21 = vpack.c.bf16 %v974_v20, %v973_v19  ;;  %v1088_v19 = vld [vmem:[#allocation25] sm:$0xff]  ;;  %v1090_v20 = vld [vmem:[#allocation25 + $0x10] sm:$0xff]  ;;  %v1337_v22 = vld [vmem:[%s4331_s21 + $0x8] sm:$0xff] }
 0x3d8   :  { %808 = vmatprep.mubr.f32.mxu0 %v704_v27  ;;  %v2506_v27 = vpack.c.bf16 %v976_v26, %v975_v25  ;;  %v2510_v25 = vpack.c.bf16 %v1090_v20, %v1088_v19  ;;  %v1483_v20 = vld [vmem:[#allocation41 + $0xc0] sm:$0xff] }
 0x3d9   :  { %809 = vmatmul.mubr.f32.vlgmr.msra.gmra.mrb[2].mxu0 %v703_v29  ;;  %v1091_v29 = vld [vmem:[#allocation25 + $0x18] sm:$0xff] }
 0x3da   :  { %2467 = vmatpush1.bf16.msra.mxu0 %v2466_v28  ;;  %924 = vmatprep.mubr.f32.mxu0 %v3718_v0  ;;  %v1089_v28 = vld [vmem:[#allocation25 + $0x8] sm:$0xff] }
 0x3db   :  { %2469 = vmatprep.subr.bf16.mxu0 %v2468_v30  ;;  %v2508_v30 = vpack.c.bf16 %v1091_v29, %v1089_v28  ;;  %v1336_v28 = vld [vmem:[%s4331_s21] sm:$0xff]  ;;  %v1338_v29 = vld [vmem:[%s4331_s21 + $0x10] sm:$0xff] }
 0x3dc   :  { %v2546_v31 = vpack.c.bf16 %v1338_v29, %v1336_v28  ;;  %v1469_v29 = vld [vmem:[#allocation41 + $0x50] sm:$0xff] }
 0x3de   :  { %2471 = vmatpush1.bf16.msra.mxu0 %v2470_v35  ;;  %v1210_v35 = vld [vmem:[#allocation31 + $0x8] sm:$0xff] }
 0x3df   :  { %2473 = vmatprep.subr.bf16.mxu0 %v2472_v36  ;;  %v1227_v36 = vld [vmem:[#allocation31 + $0x90] sm:$0xff]  ;;  %v2514_v38 = vpack.c.bf16 %v1210_v35, %v1209_v33 }
 0x3e0   :  { %v2516_v39 = vpack.c.bf16 %v1228_v37, %v1227_v36  ;;  %v1340_v33 = vld [vmem:[%s4331_s21 + $0x20] sm:$0xff]  ;;  %v1236_v36 = vld [vmem:[#allocation31 + $0xd8] sm:$0xff] }
 0x3e1   :  { %2515 = vmatpush3.bf16.msra.mxu1 %v2514_v38  ;;  %v1235_v35 = vld [vmem:[#allocation31 + $0xd0] sm:$0xff] }
 0x3e2   :  { %2475 = vmatpush1.bf16.msra.mxu0 %v2474_v41  ;;  %v1212_v41 = vld [vmem:[#allocation31 + $0x18] sm:$0xff]  ;;  %2517 = vmatprep.subr.bf16.mxu1 %v2516_v39  ;;  %v2532_v37 = vpack.c.bf16 %v1236_v36, %v1235_v35  ;;  %v1219_v38 = vld [vmem:[#allocation31 + $0x50] sm:$0xff] }
 0x3e3   :  { %2477 = vmatprep.subr.bf16.mxu0 %v2476_v42  ;;  %v1229_v42 = vld [vmem:[#allocation31 + $0xa0] sm:$0xff]  ;;  %v2518_v44 = vpack.c.bf16 %v1212_v41, %v1211_v40  ;;  %v1220_v39 = vld [vmem:[#allocation31 + $0x58] sm:$0xff]  ;;  %v1471_v35 = vld [vmem:[#allocation41 + $0x60] sm:$0xff] }
 0x3e4   :  { %v2520_v45 = vpack.c.bf16 %v1230_v43, %v1229_v42  ;;  %v2534_v40 = vpack.c.bf16 %v1220_v39, %v1219_v38  ;;  %v1237_v41 = vld [vmem:[#allocation31 + $0xe0] sm:$0xff]  ;;  %v1238_v42 = vld [vmem:[#allocation31 + $0xe8] sm:$0xff]  ;;  %v1472_v36 = vld [vmem:[#allocation41 + $0x68] sm:$0xff] }
 0x3e5   :  { %2236 = vmatmul.mubr.msk.f32.vlgmr.msra.gmra.mrb[4].mxu0 %vm856_vm1, %v831_v47  ;;  %v1214_v47 = vld [vmem:[#allocation31 + $0x28] sm:$0xff]  ;;  %2519 = vmatpush3.bf16.msra.mxu1 %v2518_v44  ;;  %v2536_v43 = vpack.c.bf16 %v1238_v42, %v1237_v41  ;;  %v1221_v44 = vld [vmem:[#allocation31 + $0x60] sm:$0xff] }
 0x3e6   :  { %2479 = vmatpush3.bf16.msra.mxu0 %v2478_v48  ;;  %v1231_v48 = vld [vmem:[#allocation31 + $0xb0] sm:$0xff]  ;;  %v2522_v50 = vpack.c.bf16 %v1214_v47, %v1213_v46  ;;  %2521 = vmatprep.subr.bf16.mxu1 %v2520_v45  ;;  %v1222_v45 = vld [vmem:[#allocation31 + $0x68] sm:$0xff]  ;;  %v1489_v38 = vld [vmem:[#allocation41 + $0xf0] sm:$0xff] }
 0x3e7   :  { %2481 = vmatprep.subr.bf16.mxu0 %v2480_v49  ;;  %v1232_v49 = vld [vmem:[#allocation31 + $0xb8] sm:$0xff]  ;;  %v2538_v46 = vpack.c.bf16 %v1222_v45, %v1221_v44  ;;  %v1239_v47 = vld [vmem:[#allocation31 + $0xf0] sm:$0xff]  ;;  %v1490_v39 = vld [vmem:[#allocation41 + $0xf8] sm:$0xff] }
 0x3e8   :  { %v2524_v51 = vpack.c.bf16 %v1232_v49, %v1231_v48  ;;  %v1240_v48 = vld [vmem:[#allocation31 + $0xf8] sm:$0xff]  ;;  %v1474_v42 = vld [vmem:[#allocation41 + $0x78] sm:$0xff] }
 0x3e9   :  { %2523 = vmatpush3.bf16.msra.mxu1 %v2522_v50  ;;  %v2540_v49 = vpack.c.bf16 %v1240_v48, %v1239_v47  ;;  %v1223_v50 = vld [vmem:[#allocation31 + $0x70] sm:$0xff]  ;;  %v1473_v41 = vld [vmem:[#allocation41 + $0x70] sm:$0xff]  ;;  %v1092_v44 = vld [vmem:[#allocation26] sm:$0x3] }
 0x3ea   :  { %2483 = vmatpush3.bf16.msra.mxu0 %v2482_v54  ;;  %v1233_v54 = vld [vmem:[#allocation31 + $0xc0] sm:$0xff]  ;;  %2525 = vmatprep.subr.bf16.mxu1 %v2524_v51  ;;  %v1224_v51 = vld [vmem:[#allocation31 + $0x78] sm:$0xff]  ;;  %v1097_v47 = vrot.slane %v1092_v44, %v4158_v4 }
 0x3eb   :  { %2485 = vmatprep.subr.bf16.mxu0 %v2484_v55  ;;  %v1234_v55 = vld [vmem:[#allocation31 + $0xc8] sm:$0xff]  ;;  %v2542_v52 = vpack.c.bf16 %v1224_v51, %v1223_v50  ;;  %v1101_v50 = vrot.slane %v1092_v44, %v4161_v6 }
 0x3ec   :  { %v2528_v57 = vpack.c.bf16 %v1234_v55, %v1233_v54  ;;  %v1476_v54 = vld [vmem:[#allocation41 + $0x88] sm:$0xff]  ;;  %v1459_v55 = vld [vmem:[#allocation41] sm:$0xff]  ;;  %v1600_v44 = vld [vmem:[#allocation47 + $0x70] sm:$0xff] }
 0x3ed   :  { %2527 = vmatpush3.bf16.msra.mxu1 %v2526_v56  ;;  %v2548_v56 = vpack.c.bf16 %v1476_v54, %v1475_v53 }
 0x3ee   :  { %2487 = vmatpush3.bf16.msra.mxu0 %v2486_v58  ;;  %v1217_v58 = vld [vmem:[#allocation31 + $0x40] sm:$0xff]  ;;  %2529 = vmatprep.subr.bf16.mxu1 %v2528_v57  ;;  %v1460_v57 = vld [vmem:[#allocation41 + $0x8] sm:$0xff] }
 0x3ef   :  { %2489 = vmatprep.subr.bf16.mxu0 %v2488_v61  ;;  %v2530_v60 = vpack.c.bf16 %v1218_v59, %v1217_v58  ;;  %v2550_v58 = vpack.c.bf16 %v1460_v57, %v1459_v55  ;;  %v1587_v59 = vld [vmem:[#allocation47 + $0x8] sm:$0xff] }
 0x3f1   :  { %2531 = vmatpush3.bf16.msra.mxu1 %v2530_v60  ;;  %v1589_v60 = vld [vmem:[#allocation47 + $0x18] sm:$0xff] }
 0x3f2   :  { %2491 = vmatpush3.bf16.msra.mxu0 %v2490_v1  ;;  %v844_v1 = vld [vmem:[#allocation14] sm:$0x3]  ;;  %2533 = vmatprep.subr.bf16.mxu1 %v2532_v37  ;;  %v2574_v37 = vpack.c.bf16 %v1472_v36, %v1471_v35  ;;  %v1594_v35 = vld [vmem:[#allocation47 + $0x40] sm:$0xff]  ;;  %v1596_v36 = vld [vmem:[#allocation47 + $0x50] sm:$0xff] }
 0x3f3   :  { %2493 = vmatprep.subr.bf16.mxu0 %v2492_v5  ;;  %v849_v2 = vrot.slane %v844_v1, %v4158_v4  ;;  %v853_v5 = vrot.slane %v844_v1, %v4161_v6  ;;  %v1478_v1 = vld [vmem:[#allocation41 + $0x98] sm:$0xff] }
 0x3f5   :  { %2535 = vmatpush3.bf16.msra.mxu1 %v2534_v40  ;;  %v2576_v40 = vpack.c.bf16 %v1490_v39, %v1489_v38  ;;  %v1599_v38 = vld [vmem:[#allocation47 + $0x68] sm:$0xff]  ;;  %v1601_v39 = vld [vmem:[#allocation47 + $0x78] sm:$0xff] }
 0x3f6   :  { %2495 = vmatpush3.bf16.msra.mxu0 %v2494_v9  ;;  %v938_v9 = vrot.slane %v933_v3, %v4158_v4  ;;  %2537 = vmatprep.subr.bf16.mxu1 %v2536_v43  ;;  %v1461_v3 = vld [vmem:[#allocation41 + $0x10] sm:$0xff]  ;;  %v2578_v43 = vpack.c.bf16 %v1474_v42, %v1473_v41  ;;  %v2590_v41 = vpack.c.bf16 %v1596_v36, %v1594_v35  ;;  %v1717_v35 = vld [vmem:[#allocation47 + $0x178] sm:$0xff] }
 0x3f7   :  { %2497 = vmatprep.subr.bf16.mxu0 %v2496_v12  ;;  %v2592_v42 = vpack.c.bf16 %v1601_v39, %v1599_v38  ;;  %v1714_v38 = vld [vmem:[#allocation47 + $0x160] sm:$0xff]  ;;  %v1716_v39 = vld [vmem:[#allocation47 + $0x170] sm:$0xff] }
 0x3f9   :  { %2539 = vmatpush3.bf16.msra.mxu1 %v2538_v46 }
 0x3fa   :  { %2499 = vmatpush3.bf16.msra.mxu0 %v2498_v15  ;;  %2541 = vmatprep.subr.bf16.mxu1 %v2540_v49  ;;  %v1181_v49 = vld [vmem:[#allocation28] sm:$0x3] }
 0x3fb   :  { %2501 = vmatprep.subr.bf16.mxu0 %v2500_v18  ;;  %v952_v18 = vrot.slane %v947_v10, %v4158_v4  ;;  %v1186_v54 = vrot.slane %v1181_v49, %v4158_v4 }
 0x3fd   :  { %2543 = vmatpush3.bf16.msra.mxu1 %v2542_v52  ;;  %v1342_v52 = vld [vmem:[#allocation37] sm:$0x3] }
 0x3fe   :  { %2503 = vmatpush3.bf16.msra.mxu0 %v2502_v21 }
 0x3ff   :  { %2505 = vmatprep.subr.bf16.mxu0 %v2504_v24 }
 0x402   :  { %2507 = vmatpush3.bf16.msra.mxu0 %v2506_v27  ;;  %v2544_v27 = vpack.c.bf16 %v1339_v23, %v1337_v22  ;;  %v1467_v23 = vld [vmem:[#allocation41 + $0x40] sm:$0xff] }
 0x403   :  { %2509 = vmatprep.subr.bf16.mxu0 %v2508_v30  ;;  %v1087_v30 = vld [vmem:[#allocation7] sm:$0xff] }
 0x4ac   :  { %v2281_v61 = vpop.f32.mrb[2].mxu0 }
 0x4ad   :  { %v2282_v62 = vpop.f32.mrb[3].mxu0 }
 0x4ae   :  { %v4182_v63 = vadd.f32 %v2282_v62, %v2281_v61  ;;  %v2580_v61 = vpack.c.bf16 %v1589_v60, %v1587_v59  ;;  %v1477_v62 = vld [vmem:[#allocation41 + $0x90] sm:$0xff]  ;;  %v1347_v60 = vrot.slane %v1342_v52, %v4158_v4 }
 0x4b0   :  { %2581 = vmatprep.subr.bf16.mxu1 %v2580_v61 }
 0x4b8   :  { %v926_v7 = vpop.f32.mrb[4].mxu0 }
 0x4b9   :  { %v927_v8 = vadd.f32 %v926_v7, %v849_v2  ;;  %v928_v11 = vpop.f32.mrb[5].mxu0  ;;  %v2552_v2 = vpack.c.bf16 %v1478_v1, %v1477_v62  ;;  %v1431_v1 = vld [vmem:[#allocation38] sm:$0x3] }
 0x4ba   :  { %v929_v12 = vadd.f32 %v928_v11, %v853_v5  ;;  %v1462_v5 = vld [vmem:[#allocation41 + $0x18] sm:$0xff]  ;;  %v1463_v11 = vld [vmem:[#allocation41 + $0x20] sm:$0xff] }
 0x4bb   :  { %v931_v14 = vmax.f32 %v927_v8, 0.0  ;;  %v2554_v7 = vpack.c.bf16 %v1462_v5, %v1461_v3  ;;  %v1479_v8 = vld [vmem:[#allocation41 + $0xa0] sm:$0xff] }
 0x4bc   :  { %v932_v15 = vmax.f32 %v929_v12, 0.0  ;;  %v1464_v12 = vld [vmem:[#allocation41 + $0x28] sm:$0xff] }
 0x4bd   :  { %v945_v17 = vmul.f32 %v938_v9, %v931_v14  ;;  %v1480_v9 = vld [vmem:[#allocation41 + $0xa8] sm:$0xff]  ;;  %v1481_v14 = vld [vmem:[#allocation41 + $0xb0] sm:$0xff] }
 0x4be   :  { %v946_v21 = vmul.f32 %v942_v13, %v932_v15  ;;  %v2556_v10 = vpack.c.bf16 %v1480_v9, %v1479_v8  ;;  %v2558_v13 = vpack.c.bf16 %v1464_v12, %v1463_v11  ;;  %v1482_v15 = vld [vmem:[#allocation41 + $0xb8] sm:$0xff] }
 0x4bf   :  { %v959_v26 = vadd.f32 %v952_v18, %v945_v17  ;;  %v1465_v17 = vld [vmem:[#allocation41 + $0x30] sm:$0xff]  ;;  %v1466_v18 = vld [vmem:[#allocation41 + $0x38] sm:$0xff] }
 0x4c0   :  { %v960_v24 = vadd.f32 %v956_v16, %v946_v21  ;;  %v2560_v16 = vpack.c.bf16 %v1482_v15, %v1481_v14  ;;  %v2562_v19 = vpack.c.bf16 %v1466_v18, %v1465_v17  ;;  %v1484_v21 = vld [vmem:[#allocation41 + $0xc8] sm:$0xff]  ;;  %v1588_v8 = vld [vmem:[#allocation47 + $0x10] sm:$0xff]  ;;  %v1593_v11 = vld [vmem:[#allocation47 + $0x38] sm:$0xff]  ;;  %v1436_v15 = vrot.slane %v1431_v1, %v4158_v4 }
 0x4c1   :  { %v2564_v22 = vpack.c.bf16 %v1484_v21, %v1483_v20  ;;  %v1440_v20 = vrot.slane %v1431_v1, %v4161_v6 }
 0x4c2   :  { %1064 = vmatprep.mubr.f32.mxu0 %v960_v24  ;;  %v1468_v24 = vld [vmem:[#allocation41 + $0x48] sm:$0xff] }
 0x4c3   :  { %1065 = vmatmul.mubr.f32.vlgmr.msra.gmra.mrb[6].mxu0 %v959_v26  ;;  %v1485_v26 = vld [vmem:[#allocation41 + $0xd0] sm:$0xff] }
 0x4c4   :  { %2511 = vmatpush1.bf16.msra.mxu0 %v2510_v25  ;;  %1172 = vmatprep.mubr.f32.mxu0 %v3718_v0  ;;  %v2566_v25 = vpack.c.bf16 %v1468_v24, %v1467_v23  ;;  %v1590_v23 = vld [vmem:[#allocation47 + $0x20] sm:$0xff]  ;;  %v1592_v24 = vld [vmem:[#allocation47 + $0x30] sm:$0xff] }
 0x4c5   :  { %2545 = vmatprep.subr.bf16.mxu0 %v2544_v27  ;;  %v1486_v27 = vld [vmem:[#allocation41 + $0xd8] sm:$0xff] }
 0x4c6   :  { %v2568_v28 = vpack.c.bf16 %v1486_v27, %v1485_v26  ;;  %v1595_v27 = vld [vmem:[#allocation47 + $0x48] sm:$0xff] }
 0x4c7   :  { %2240 = vmatmul.mubr.msk.f32.vlgmr.msra.gmra.mrb[8].mxu0 %vm1104_vm2, %v1087_v30  ;;  %v1470_v30 = vld [vmem:[#allocation41 + $0x58] sm:$0xff] }
 0x4c8   :  { %2547 = vmatpush1.bf16.msra.mxu0 %v2546_v31  ;;  %1422 = vmatprep.mubr.f32.mxu0 %v3718_v0  ;;  %v2570_v31 = vpack.c.bf16 %v1470_v30, %v1469_v29 }
 0x4c9   :  { %1362 = vmatprep.subr.mxu0 %v1341_v32  ;;  %v1487_v32 = vld [vmem:[#allocation41 + $0xe0] sm:$0xff] }
 0x4cc   :  { %1363 = vmatpush1.msra.mxu0 %v1340_v33  ;;  %v1488_v33 = vld [vmem:[#allocation41 + $0xe8] sm:$0xff] }
 0x4cd   :  { %2244 = vmatmul.mubr.msk.f32.vlgmr.msra.gmra.mrb[10].mxu0 %vm1354_vm3, %v1335_v34  ;;  %2549 = vmatprep.subr.bf16.mxu0 %v2548_v56  ;;  %v2572_v34 = vpack.c.bf16 %v1488_v33, %v1487_v32  ;;  %v1195_v56 = vld [vmem:[#allocation29] sm:$0x3]  ;;  %v2586_v32 = vpack.c.bf16 %v1592_v24, %v1590_v23 }
 0x4ce   :  { %2551 = vmatpush3.bf16.msra.mxu0 %v2550_v58  ;;  %v1190_v58 = vrot.slane %v1181_v49, %v4161_v6  ;;  %v1204_v62 = vrot.slane %v1195_v56, %v4161_v6  ;;  %v1200_v5 = vrot.slane %v1195_v56, %v4158_v4  ;;  %v1606_v56 = vld [vmem:[#allocation47 + $0xa0] sm:$0xff] }
 0x4cf   :  { %2553 = vmatprep.subr.bf16.mxu0 %v2552_v2  ;;  %v1351_v2 = vrot.slane %v1342_v52, %v4161_v6  ;;  %v1607_v52 = vld [vmem:[#allocation47 + $0xa8] sm:$0xff] }
 0x4d2   :  { %2555 = vmatpush3.bf16.msra.mxu0 %v2554_v7  ;;  %v1586_v7 = vld [vmem:[#allocation47] sm:$0xff] }
 0x4d3   :  { %2557 = vmatprep.subr.bf16.mxu0 %v2556_v10  ;;  %v1591_v10 = vld [vmem:[#allocation47 + $0x28] sm:$0xff]  ;;  %v2582_v18 = vpack.c.bf16 %v1588_v8, %v1586_v7  ;;  %v1617_v7 = vld [vmem:[#allocation47 + $0xf8] sm:$0xff] }
 0x4d6   :  { %2559 = vmatpush3.bf16.msra.mxu0 %v2558_v13  ;;  %v1445_v13 = vld [vmem:[#allocation40] sm:$0x3] }
 0x4d7   :  { %2561 = vmatprep.subr.bf16.mxu0 %v2560_v16  ;;  %v1450_v26 = vrot.slane %v1445_v13, %v4158_v4  ;;  %v1454_v30 = vrot.slane %v1445_v13, %v4161_v6  ;;  %v2234_v13 = vld [vmem:[#allocation11] ss:$0 sm:$0xff] }
 0x4da   :  { %2563 = vmatpush3.bf16.msra.mxu0 %v2562_v19 }
 0x4db   :  { %2565 = vmatprep.subr.bf16.mxu0 %v2564_v22  ;;  %v2584_v22 = vpack.c.bf16 %v1593_v11, %v1591_v10  ;;  %v1614_v11 = vld [vmem:[#allocation47 + $0xe0] sm:$0xff] }
 0x4de   :  { %2567 = vmatpush3.bf16.msra.mxu0 %v2566_v25 }
 0x4df   :  { %2569 = vmatprep.subr.bf16.mxu0 %v2568_v28  ;;  %v1597_v28 = vld [vmem:[#allocation47 + $0x58] sm:$0xff] }
 0x4e2   :  { %2571 = vmatpush3.bf16.msra.mxu0 %v2570_v31 }
 0x4e3   :  { %2573 = vmatprep.subr.bf16.mxu0 %v2572_v34  ;;  %v2588_v34 = vpack.c.bf16 %v1597_v28, %v1595_v27  ;;  %v1708_v27 = vld [vmem:[#allocation47 + $0x130] sm:$0xff]  ;;  %v1711_v28 = vld [vmem:[#allocation47 + $0x148] sm:$0xff] }
 0x4e6   :  { %2575 = vmatpush3.bf16.msra.mxu0 %v2574_v37 }
 0x4e7   :  { %2577 = vmatprep.subr.bf16.mxu0 %v2576_v40 }
 0x4ea   :  { %2579 = vmatpush3.bf16.msra.mxu0 %v2578_v43  ;;  %v1598_v43 = vld [vmem:[#allocation47 + $0x60] sm:$0xff] }
 0x596   :  { %v2316_v45 = vpop.f32.mrb[6].mxu0 }
 0x597   :  { %v2317_v46 = vpop.f32.mrb[7].mxu0 }
 0x598   :  { %v4199_v48 = vadd.f32 %v2317_v46, %v2316_v45  ;;  %v1603_v45 = vld [vmem:[#allocation47 + $0x88] sm:$0xff]  ;;  %v1605_v46 = vld [vmem:[#allocation47 + $0x98] sm:$0xff] }
 0x599   :  { %v2596_v49 = vpack.c.bf16 %v1605_v46, %v1603_v45  ;;  %v1720_v45 = vld [vmem:[#allocation47 + $0x190] sm:$0xff]  ;;  %v1723_v46 = vld [vmem:[#allocation47 + $0x1a8] sm:$0xff] }
 0x59a   :  { %v1174_v51 = vpop.f32.mrb[8].mxu0 }
 0x59b   :  { %v1175_v53 = vadd.f32 %v1174_v51, %v1097_v47  ;;  %v1176_v55 = vpop.f32.mrb[9].mxu0  ;;  %v2594_v47 = vpack.c.bf16 %v1600_v44, %v1598_v43  ;;  %v1604_v51 = vld [vmem:[#allocation47 + $0x90] sm:$0xff]  ;;  %v1718_v44 = vld [vmem:[#allocation47 + $0x180] sm:$0xff] }
 0x59c   :  { %v1177_v57 = vadd.f32 %v1176_v55, %v1101_v50  ;;  %v1602_v50 = vld [vmem:[#allocation47 + $0x80] sm:$0xff] }
 0x59d   :  { %v1179_v59 = vmax.f32 %v1175_v53, 0.0  ;;  %v1609_v53 = vld [vmem:[#allocation47 + $0xb8] sm:$0xff] }
 0x59e   :  { %v1180_v61 = vmax.f32 %v1177_v57, 0.0  ;;  %v2600_v55 = vpack.c.bf16 %v1609_v53, %v1607_v52  ;;  %v1608_v57 = vld [vmem:[#allocation47 + $0xb0] sm:$0xff]  ;;  %v2237_v53 = vld [vmem:[#allocation20] ss:$0 sm:$0xff] }
 0x59f   :  { %v1193_v3 = vmul.f32 %v1186_v54, %v1179_v59  ;;  %v2598_v54 = vpack.c.bf16 %v1604_v51, %v1602_v50  ;;  %v1611_v59 = vld [vmem:[#allocation47 + $0xc8] sm:$0xff]  ;;  %v1722_v51 = vld [vmem:[#allocation47 + $0x1a0] sm:$0xff]  ;;  %v1724_v52 = vld [vmem:[#allocation47 + $0x1b0] sm:$0xff] }
 0x5a0   :  { %v1194_v9 = vmul.f32 %v1190_v58, %v1180_v61  ;;  %v1424_v12 = vpop.f32.mrb[10].mxu0  ;;  %v2233_v58 = vld [vmem:[%s4332_s1] ss:$0 sm:$0xff]  ;;  %v2602_v61 = vpack.c.bf16 %v1608_v57, %v1606_v56  ;;  %v2634_v56 = vpack.c.bf16 %v1724_v52, %v1722_v51  ;;  %v1067_v57 = vadd.f32 %v4199_v48, %v2237_v53  ;;  %v1831_v51 = vld [vmem:[#allocation47 + $0x2c0] sm:$0xff]  ;;  %v1833_v52 = vld [vmem:[#allocation47 + $0x2d0] sm:$0xff] }
 0x5a1   :  { %v1425_v14 = vadd.f32 %v1424_v12, %v1347_v60  ;;  %v1426_v16 = vpop.f32.mrb[11].mxu0  ;;  %v1207_v21 = vadd.f32 %v1200_v5, %v1193_v3  ;;  %v1613_v60 = vld [vmem:[#allocation47 + $0xd8] sm:$0xff]  ;;  %v1612_v3 = vld [vmem:[#allocation47 + $0xd0] sm:$0xff]  ;;  %v1615_v5 = vld [vmem:[#allocation47 + $0xe8] sm:$0xff]  ;;  %v2670_v53 = vpack.c.bf16 %v1833_v52, %v1831_v51 }
 0x5a2   :  { %v1208_v17 = vadd.f32 %v1204_v62, %v1194_v9  ;;  %v1427_v19 = vadd.f32 %v1426_v16, %v1351_v2  ;;  %v811_v62 = vadd.f32 %v4182_v63, %v2233_v58  ;;  %v2604_v1 = vpack.c.bf16 %v1613_v60, %v1611_v59  ;;  %v1610_v2 = vld [vmem:[#allocation47 + $0xc0] sm:$0xff]  ;;  %v1616_v12 = vld [vmem:[#allocation47 + $0xf0] sm:$0xff] }
 0x5a3   :  { %v1429_v25 = vmax.f32 %v1425_v14, 0.0  ;;  %v2606_v8 = vpack.c.bf16 %v1612_v3, %v1610_v2  ;;  %v2608_v10 = vpack.c.bf16 %v1617_v7, %v1615_v5  ;;  %v1703_v14 = vld [vmem:[#allocation47 + $0x108] sm:$0xff]  ;;  %v2610_v16 = vpack.c.bf16 %v1616_v12, %v1614_v11  ;;  %v1726_v59 = vld [vmem:[#allocation47 + $0x1c0] sm:$0xff]  ;;  %v1728_v60 = vld [vmem:[#allocation47 + $0x1d0] sm:$0xff] }
 0x5a4   :  { %1312 = vmatprep.mubr.f32.mxu1 %v1208_v17  ;;  %v1430_v29 = vmax.f32 %v1427_v19, 0.0  ;;  %v814_v9 = vmax.f32 %v811_v62, 0.0  ;;  %v1704_v19 = vld [vmem:[#allocation47 + $0x110] sm:$0xff]  ;;  %v1733_v62 = vld [vmem:[#allocation47 + $0x1f8] sm:$0xff]  ;;  %v1070_v2 = vmax.f32 %v1067_v57, 0.0  ;;  %v1730_v5 = vld [vmem:[#allocation47 + $0x1e0] sm:$0xff] }
 0x5a5   :  { %1313 = vmatmul.mubr.f32.vlgmr.msra.gmra.mrb[0].mxu1 %v1207_v21  ;;  %v1443_v31 = vmul.f32 %v1436_v15, %v1429_v25  ;;  %v1705_v15 = vld [vmem:[#allocation47 + $0x118] sm:$0xff]  ;;  %v1707_v21 = vld [vmem:[#allocation47 + $0x128] sm:$0xff]  ;;  %v1732_v7 = vld [vmem:[#allocation47 + $0x1f0] sm:$0xff] }
 0x5a6   :  { %2583 = vmatpush1.bf16.msra.mxu1 %v2582_v18  ;;  %v1444_v33 = vmul.f32 %v1440_v20, %v1430_v29  ;;  %1682 = vmatprep.mubr.f32.mxu1 %v3718_v0  ;;  %v822_v17 = vmul.f32 %v2234_v13, %v814_v9  ;;  %v2612_v63 = vpack.c.bf16 %v1705_v15, %v1703_v14  ;;  %v1702_v18 = vld [vmem:[#allocation47 + $0x100] sm:$0xff]  ;;  %v2235_v20 = vld [vmem:[#allocation13] ss:$0 sm:$0xff]  ;;  %v1808_v9 = vld [vmem:[#allocation47 + $0x208] sm:$0xff] }
 0x5a7   :  { %2585 = vmatprep.subr.bf16.mxu1 %v2584_v22  ;;  %v1457_v37 = vadd.f32 %v1450_v26, %v1443_v31  ;;  %v1709_v22 = vld [vmem:[#allocation47 + $0x138] sm:$0xff]  ;;  %v2614_v23 = vpack.c.bf16 %v1704_v19, %v1702_v18  ;;  %v1706_v26 = vld [vmem:[#allocation47 + $0x120] sm:$0xff]  ;;  %v2642_v11 = vpack.c.bf16 %v1732_v7, %v1730_v5  ;;  %v1809_v14 = vld [vmem:[#allocation47 + $0x210] sm:$0xff] }
 0x5a8   :  { %v1458_v40 = vadd.f32 %v1454_v30, %v1444_v33  ;;  %v830_v24 = vadd.f32 %v2235_v20, %v822_v17  ;;  %v2616_v25 = vpack.c.bf16 %v1709_v22, %v1707_v21  ;;  %v1713_v29 = vld [vmem:[#allocation47 + $0x158] sm:$0xff]  ;;  %v2618_v30 = vpack.c.bf16 %v1708_v27, %v1706_v26  ;;  %v1712_v33 = vld [vmem:[#allocation47 + $0x150] sm:$0xff]  ;;  %v1807_v13 = vld [vmem:[#allocation47 + $0x200] sm:$0xff] }
 0x5a9   :  { %v2620_v31 = vpack.c.bf16 %v1713_v29, %v1711_v28  ;;  %v2239_v15 = vld [vmem:[#allocation23] ss:$0 sm:$0xff]  ;;  %v1814_v17 = vld [vmem:[#allocation47 + $0x238] sm:$0xff]  ;;  %v1813_v21 = vld [vmem:[#allocation47 + $0x230] sm:$0xff] }
 0x5aa   :  { %2587 = vmatpush1.bf16.msra.mxu1 %v2586_v32  ;;  %1562 = vmatprep.mubr.f32.mxu0 %v1458_v40  ;;  %v1710_v32 = vld [vmem:[#allocation47 + $0x140] sm:$0xff]  ;;  %v1719_v40 = vld [vmem:[#allocation47 + $0x188] sm:$0xff]  ;;  %v1817_v27 = vld [vmem:[#allocation47 + $0x250] sm:$0xff] }
 0x5ab   :  { %2589 = vmatprep.subr.bf16.mxu1 %v2588_v34  ;;  %1563 = vmatmul.mubr.f32.vlgmr.msra.gmra.mrb[12].mxu0 %v1457_v37  ;;  %v1715_v34 = vld [vmem:[#allocation47 + $0x168] sm:$0xff]  ;;  %v2622_v36 = vpack.c.bf16 %v1712_v33, %v1710_v32  ;;  %v1811_v20 = vld [vmem:[#allocation47 + $0x220] sm:$0xff]  ;;  %v1822_v29 = vld [vmem:[#allocation47 + $0x278] sm:$0xff] }
 0x5ac   :  { %v2624_v37 = vpack.c.bf16 %v1717_v35, %v1715_v34  ;;  %v1816_v22 = vld [vmem:[#allocation47 + $0x248] sm:$0xff]  ;;  %v1815_v26 = vld [vmem:[#allocation47 + $0x240] sm:$0xff]  ;;  %v1821_v33 = vld [vmem:[#allocation47 + $0x270] sm:$0xff] }
 0x5ad   :  { %v1820_v28 = vld [vmem:[#allocation47 + $0x268] sm:$0xff]  ;;  %v1819_v32 = vld [vmem:[#allocation47 + $0x260] sm:$0xff]  ;;  %v1826_v35 = vld [vmem:[#allocation47 + $0x298] sm:$0xff] }
 0x5ae   :  { %2591 = vmatpush1.bf16.msra.mxu1 %v2590_v41  ;;  %v1721_v41 = vld [vmem:[#allocation47 + $0x198] sm:$0xff]  ;;  %v1824_v34 = vld [vmem:[#allocation47 + $0x288] sm:$0xff]  ;;  %v1835_v57 = vld [vmem:[#allocation47 + $0x2e0] sm:$0xff] }
 0x5af   :  { %2593 = vmatprep.subr.bf16.mxu1 %v2592_v42  ;;  %v2626_v42 = vpack.c.bf16 %v1716_v39, %v1714_v38  ;;  %v2628_v43 = vpack.c.bf16 %v1721_v41, %v1719_v40  ;;  %v1823_v38 = vld [vmem:[#allocation47 + $0x280] sm:$0xff]  ;;  %v1825_v39 = vld [vmem:[#allocation47 + $0x290] sm:$0xff]  ;;  %v1828_v40 = vld [vmem:[#allocation47 + $0x2a8] sm:$0xff] }
 0x5b0   :  { %v1830_v41 = vld [vmem:[#allocation47 + $0x2b8] sm:$0xff]  ;;  %v2048_v7 = vld [vmem:[%s3928_s13 + $0x8] sm:$0xff] }
 0x5b2   :  { %2595 = vmatpush1.bf16.msra.mxu1 %v2594_v47  ;;  %v1725_v47 = vld [vmem:[#allocation47 + $0x1b8] sm:$0xff] }
 0x5b3   :  { %2597 = vmatprep.subr.bf16.mxu1 %v2596_v49  ;;  %v2630_v49 = vpack.c.bf16 %v1720_v45, %v1718_v44  ;;  %v2632_v50 = vpack.c.bf16 %v1725_v47, %v1723_v46  ;;  %v1827_v44 = vld [vmem:[#allocation47 + $0x2a0] sm:$0xff]  ;;  %v1829_v45 = vld [vmem:[#allocation47 + $0x2b0] sm:$0xff]  ;;  %v1832_v47 = vld [vmem:[#allocation47 + $0x2c8] sm:$0xff] }
 0x5b4   :  { %v2666_v46 = vpack.c.bf16 %v1829_v45, %v1827_v44  ;;  %v2243_v44 = vld [vmem:[#allocation35] ss:$0 sm:$0xff]  ;;  %v1917_v45 = vld [vmem:[#allocation47 + $0x328] sm:$0xff] }
 0x5b6   :  { %2599 = vmatpush1.bf16.msra.mxu1 %v2598_v54  ;;  %v1727_v54 = vld [vmem:[#allocation47 + $0x1c8] sm:$0xff] }
 0x5b7   :  { %2601 = vmatprep.subr.bf16.mxu1 %v2600_v55  ;;  %v1729_v55 = vld [vmem:[#allocation47 + $0x1d8] sm:$0xff] }
 0x5b8   :  { %v2636_v58 = vpack.c.bf16 %v1729_v55, %v1727_v54  ;;  %v1836_v54 = vld [vmem:[#allocation47 + $0x2e8] sm:$0xff]  ;;  %v1838_v55 = vld [vmem:[#allocation47 + $0x2f8] sm:$0xff] }
 0x5ba   :  { %2603 = vmatpush1.bf16.msra.mxu1 %v2602_v61  ;;  %v1731_v61 = vld [vmem:[#allocation47 + $0x1e8] sm:$0xff] }
 0x5bb   :  { %2605 = vmatprep.subr.bf16.mxu1 %v2604_v1  ;;  %v2638_v1 = vpack.c.bf16 %v1728_v60, %v1726_v59  ;;  %v2640_v3 = vpack.c.bf16 %v1733_v62, %v1731_v61  ;;  %v1913_v60 = vld [vmem:[#allocation47 + $0x308] sm:$0xff]  ;;  %v1915_v61 = vld [vmem:[#allocation47 + $0x318] sm:$0xff] }
 0x5bc   :  { %v2676_v62 = vpack.c.bf16 %v1915_v61, %v1913_v60  ;;  %v1920_v60 = vld [vmem:[#allocation47 + $0x340] sm:$0xff]  ;;  %v1922_v61 = vld [vmem:[#allocation47 + $0x350] sm:$0xff] }
 0x5be   :  { %2607 = vmatpush1.bf16.msra.mxu1 %v2606_v8  ;;  %v2238_v8 = vld [vmem:[#allocation22] ss:$0 sm:$0xff] }
 0x5bf   :  { %2609 = vmatprep.subr.bf16.mxu1 %v2608_v10  ;;  %v1810_v10 = vld [vmem:[#allocation47 + $0x218] sm:$0xff]  ;;  %v1078_v12 = vmul.f32 %v2238_v8, %v1070_v2  ;;  %v2064_v2 = vld [vmem:[%s3928_s13 + $0x88] sm:$0xff]  ;;  %v2065_v8 = vld [vmem:[%s3928_s13 + $0x90] sm:$0xff] }
 0x5c0   :  { %v2644_v48 = vpack.c.bf16 %v1810_v10, %v1808_v9  ;;  %v2066_v9 = vld [vmem:[%s3928_s13 + $0x98] sm:$0xff] }
 0x5c1   :  { %v1086_v18 = vadd.f32 %v2239_v15, %v1078_v12  ;;  %v2049_v12 = vld [vmem:[%s3928_s13 + $0x10] sm:$0xff] }
 0x5c2   :  { %2611 = vmatpush1.bf16.msra.mxu1 %v2610_v16  ;;  %v1812_v16 = vld [vmem:[#allocation47 + $0x228] sm:$0xff] }
 0x5c3   :  { %2613 = vmatprep.subr.bf16.mxu1 %v2612_v63  ;;  %v2646_v63 = vpack.c.bf16 %v1809_v14, %v1807_v13  ;;  %v2648_v19 = vpack.c.bf16 %v1814_v17, %v1812_v16  ;;  %v2067_v13 = vld [vmem:[%s3928_s13 + $0xa0] sm:$0xff]  ;;  %v2068_v14 = vld [vmem:[%s3928_s13 + $0xa8] sm:$0xff] }
 0x5c4   :  { %v2716_v16 = vpack.c.bf16 %v2068_v14, %v2067_v13  ;;  %v2051_v17 = vld [vmem:[%s3928_s13 + $0x20] sm:$0xff] }
 0x5c5   :  { %1683 = vmatmul.mubr.f32.vlgmr.msra.gmra.mrb[2].mxu1 %v830_v24  ;;  %v2650_v24 = vpack.c.bf16 %v1813_v21, %v1811_v20  ;;  %v1935_v13 = vld [vmem:[#allocation47 + $0x3b8] sm:$0xff] }
 0x5c6   :  { %2615 = vmatpush1.bf16.msra.mxu1 %v2614_v23  ;;  %1798 = vmatprep.mubr.f32.mxu1 %v3718_v0  ;;  %v1818_v23 = vld [vmem:[#allocation47 + $0x258] sm:$0xff] }
 0x5c7   :  { %2617 = vmatprep.subr.bf16.mxu1 %v2616_v25  ;;  %v2652_v25 = vpack.c.bf16 %v1818_v23, %v1816_v22  ;;  %v2053_v22 = vld [vmem:[%s3928_s13 + $0x30] sm:$0xff]  ;;  %v2054_v23 = vld [vmem:[%s3928_s13 + $0x38] sm:$0xff] }
 0x5ca   :  { %2619 = vmatpush1.bf16.msra.mxu1 %v2618_v30  ;;  %v2654_v30 = vpack.c.bf16 %v1817_v27, %v1815_v26  ;;  %v2722_v26 = vpack.c.bf16 %v2054_v23, %v2053_v22  ;;  %v1936_v23 = vld [vmem:[#allocation47 + $0x3c0] sm:$0xff] }
 0x5cb   :  { %2621 = vmatprep.subr.bf16.mxu1 %v2620_v31  ;;  %v2656_v31 = vpack.c.bf16 %v1822_v29, %v1820_v28  ;;  %v2055_v28 = vld [vmem:[%s3928_s13 + $0x40] sm:$0xff]  ;;  %v2056_v29 = vld [vmem:[%s3928_s13 + $0x48] sm:$0xff] }
 0x5ce   :  { %2623 = vmatpush1.bf16.msra.mxu1 %v2622_v36  ;;  %v2658_v36 = vpack.c.bf16 %v1821_v33, %v1819_v32  ;;  %v2726_v32 = vpack.c.bf16 %v2056_v29, %v2055_v28 }
 0x5cf   :  { %2625 = vmatprep.subr.bf16.mxu1 %v2624_v37  ;;  %v2660_v37 = vpack.c.bf16 %v1826_v35, %v1824_v34  ;;  %v2241_v35 = vld [vmem:[#allocation32] ss:$0 sm:$0xff] }
 0x5d2   :  { %2627 = vmatpush1.bf16.msra.mxu1 %v2626_v42  ;;  %v2662_v42 = vpack.c.bf16 %v1825_v39, %v1823_v38  ;;  %v2242_v39 = vld [vmem:[#allocation34] ss:$0 sm:$0xff] }
 0x5d3   :  { %2629 = vmatprep.subr.bf16.mxu1 %v2628_v43  ;;  %v2664_v43 = vpack.c.bf16 %v1830_v41, %v1828_v40  ;;  %v1912_v41 = vld [vmem:[#allocation47 + $0x300] sm:$0xff] }
 0x5d6   :  { %2631 = vmatpush1.bf16.msra.mxu1 %v2630_v49  ;;  %v1834_v49 = vld [vmem:[#allocation47 + $0x2d8] sm:$0xff] }
 0x5d7   :  { %2633 = vmatprep.subr.bf16.mxu1 %v2632_v50  ;;  %v2668_v50 = vpack.c.bf16 %v1834_v49, %v1832_v47 }
 0x5da   :  { %2635 = vmatpush1.bf16.msra.mxu1 %v2634_v56  ;;  %v2672_v56 = vpack.c.bf16 %v1838_v55, %v1836_v54  ;;  %v1916_v54 = vld [vmem:[#allocation47 + $0x320] sm:$0xff]  ;;  %v1918_v55 = vld [vmem:[#allocation47 + $0x330] sm:$0xff] }
 0x5db   :  { %2637 = vmatprep.subr.bf16.mxu1 %v2636_v58  ;;  %v1837_v58 = vld [vmem:[#allocation47 + $0x2f0] sm:$0xff] }
 0x5dc   :  { %v2674_v59 = vpack.c.bf16 %v1837_v58, %v1835_v57  ;;  %v1923_v57 = vld [vmem:[#allocation47 + $0x358] sm:$0xff]  ;;  %v2682_v58 = vpack.c.bf16 %v1918_v55, %v1916_v54  ;;  %v2019_v55 = vld [vmem:[#allocation50] sm:$0x3] }
 0x5de   :  { %2639 = vmatpush1.bf16.msra.mxu1 %v2638_v1  ;;  %v2063_v1 = vld [vmem:[%s3928_s13 + $0x80] sm:$0xff] }
 0x5df   :  { %2641 = vmatprep.subr.bf16.mxu1 %v2640_v3  ;;  %v2047_v3 = vld [vmem:[%s3928_s13] sm:$0xff]  ;;  %v2708_v5 = vpack.c.bf16 %v2064_v2, %v2063_v1  ;;  %v2686_v2 = vpack.c.bf16 %v1922_v61, %v1920_v60  ;;  %v2033_v60 = vld [vmem:[#allocation52] sm:$0x3] }
 0x5e0   :  { %v2710_v10 = vpack.c.bf16 %v2048_v7, %v2047_v3  ;;  %v1927_v1 = vld [vmem:[#allocation47 + $0x378] sm:$0xff]  ;;  %v1926_v7 = vld [vmem:[#allocation47 + $0x370] sm:$0xff] }
 0x5e1   :  { %2709 = vmatprep.subr.bf16.mxu0 %v2708_v5  ;;  %v1924_v5 = vld [vmem:[#allocation47 + $0x360] sm:$0xff] }
 0x5e2   :  { %2643 = vmatpush1.bf16.msra.mxu1 %v2642_v11  ;;  %v2712_v11 = vpack.c.bf16 %v2066_v9, %v2065_v8  ;;  %2711 = vmatpush3.bf16.msra.mxu0 %v2710_v10  ;;  %v1929_v8 = vld [vmem:[#allocation47 + $0x388] sm:$0xff]  ;;  %v1931_v9 = vld [vmem:[#allocation47 + $0x398] sm:$0xff]  ;;  %v2690_v10 = vpack.c.bf16 %v1926_v7, %v1924_v5  ;;  %v2042_v5 = vrot.slane %v2033_v60, %v4161_v6 }
 0x5e3   :  { %2645 = vmatprep.subr.bf16.mxu1 %v2644_v48  ;;  %v2050_v48 = vld [vmem:[%s3928_s13 + $0x18] sm:$0xff] }
 0x5e4   :  { %v2714_v15 = vpack.c.bf16 %v2050_v48, %v2049_v12  ;;  %2713 = vmatprep.subr.bf16.mxu0 %v2712_v11  ;;  %v2692_v11 = vpack.c.bf16 %v1931_v9, %v1929_v8  ;;  %v1928_v12 = vld [vmem:[#allocation47 + $0x380] sm:$0xff]  ;;  %v1933_v48 = vld [vmem:[#allocation47 + $0x3a8] sm:$0xff]  ;;  %v2038_v8 = vrot.slane %v2033_v60, %v4158_v4 }
 0x5e5   :  { %1799 = vmatmul.mubr.f32.vlgmr.msra.gmra.mrb[2].mxu1 %v1086_v18  ;;  %v2069_v18 = vld [vmem:[%s3928_s13 + $0xb0] sm:$0xff] }
 0x5e6   :  { %2647 = vmatpush1.bf16.msra.mxu1 %v2646_v63  ;;  %1903 = vmatprep.mubr.f32.mxu1 %v3718_v0  ;;  %v2052_v63 = vld [vmem:[%s3928_s13 + $0x28] sm:$0xff] }
 0x5e7   :  { %2649 = vmatprep.subr.bf16.mxu1 %v2648_v19  ;;  %v2070_v19 = vld [vmem:[%s3928_s13 + $0xb8] sm:$0xff]  ;;  %2715 = vmatpush3.bf16.msra.mxu0 %v2714_v15  ;;  %v2718_v20 = vpack.c.bf16 %v2052_v63, %v2051_v17  ;;  %v2696_v15 = vpack.c.bf16 %v1935_v13, %v1933_v48  ;;  %v2245_v63 = vld [vmem:[#allocation43] ss:$0 sm:$0xff] }
 0x5e8   :  { %2717 = vmatprep.subr.bf16.mxu0 %v2716_v16  ;;  %v2720_v21 = vpack.c.bf16 %v2070_v19, %v2069_v18  ;;  %v1932_v16 = vld [vmem:[#allocation47 + $0x3a0] sm:$0xff]  ;;  %v1934_v17 = vld [vmem:[#allocation47 + $0x3b0] sm:$0xff]  ;;  %v1937_v18 = vld [vmem:[#allocation47 + $0x3c8] sm:$0xff] }
 0x5e9   :  { %v1939_v19 = vld [vmem:[#allocation47 + $0x3d8] sm:$0xff] }
 0x5ea   :  { %2651 = vmatpush1.bf16.msra.mxu1 %v2650_v24  ;;  %v2071_v24 = vld [vmem:[%s3928_s13 + $0xc0] sm:$0xff]  ;;  %v2700_v22 = vpack.c.bf16 %v1939_v19, %v1937_v18 }
 0x5eb   :  { %2653 = vmatprep.subr.bf16.mxu1 %v2652_v25  ;;  %v2072_v25 = vld [vmem:[%s3928_s13 + $0xc8] sm:$0xff]  ;;  %2719 = vmatpush3.bf16.msra.mxu0 %v2718_v20  ;;  %v2698_v20 = vpack.c.bf16 %v1934_v17, %v1932_v16 }
 0x5ec   :  { %2721 = vmatprep.subr.bf16.mxu0 %v2720_v21  ;;  %v2724_v27 = vpack.c.bf16 %v2072_v25, %v2071_v24  ;;  %v1938_v24 = vld [vmem:[#allocation47 + $0x3d0] sm:$0xff]  ;;  %v1941_v25 = vld [vmem:[#allocation47 + $0x3e8] sm:$0xff] }
 0x5ee   :  { %2655 = vmatpush1.bf16.msra.mxu1 %v2654_v30  ;;  %v2073_v30 = vld [vmem:[%s3928_s13 + $0xd0] sm:$0xff] }
 0x5ef   :  { %2657 = vmatprep.subr.bf16.mxu1 %v2656_v31  ;;  %v2074_v31 = vld [vmem:[%s3928_s13 + $0xd8] sm:$0xff]  ;;  %2723 = vmatpush3.bf16.msra.mxu0 %v2722_v26  ;;  %v1943_v26 = vld [vmem:[#allocation47 + $0x3f8] sm:$0xff] }
 0x5f0   :  { %2725 = vmatprep.subr.bf16.mxu0 %v2724_v27  ;;  %v2728_v33 = vpack.c.bf16 %v2074_v31, %v2073_v30  ;;  %v2702_v27 = vpack.c.bf16 %v1938_v24, %v1936_v23  ;;  %v2704_v29 = vpack.c.bf16 %v1943_v26, %v1941_v25  ;;  %v1940_v30 = vld [vmem:[#allocation47 + $0x3e0] sm:$0xff]  ;;  %v1942_v31 = vld [vmem:[#allocation47 + $0x3f0] sm:$0xff] }
 0x5f2   :  { %2659 = vmatpush1.bf16.msra.mxu1 %v2658_v36 }
 0x5f3   :  { %2661 = vmatprep.subr.bf16.mxu1 %v2660_v37  ;;  %2727 = vmatpush3.bf16.msra.mxu0 %v2726_v32  ;;  %v2246_v32 = vld [vmem:[#allocation44] ss:$0 sm:$0xff] }
 0x5f4   :  { %2729 = vmatprep.subr.bf16.mxu0 %v2728_v33  ;;  %v2706_v33 = vpack.c.bf16 %v1942_v31, %v1940_v30 }
 0x5f6   :  { %2663 = vmatpush1.bf16.msra.mxu1 %v2662_v42  ;;  %v1914_v42 = vld [vmem:[#allocation47 + $0x310] sm:$0xff] }
 0x5f7   :  { %2665 = vmatprep.subr.bf16.mxu1 %v2664_v43  ;;  %v2678_v51 = vpack.c.bf16 %v1914_v42, %v1912_v41  ;;  %v2076_v41 = vld [vmem:[%s3928_s13 + $0xe8] sm:$0xff] }
 0x5fa   :  { %2667 = vmatpush1.bf16.msra.mxu1 %v2666_v46  ;;  %v1919_v46 = vld [vmem:[#allocation47 + $0x338] sm:$0xff] }
 0x5fb   :  { %2669 = vmatprep.subr.bf16.mxu1 %v2668_v50 }
 0x5fe   :  { %2671 = vmatpush1.bf16.msra.mxu1 %v2670_v53  ;;  %v2680_v53 = vpack.c.bf16 %v1919_v46, %v1917_v45  ;;  %v2077_v46 = vld [vmem:[%s3928_s13 + $0xf0] sm:$0xff] }
 0x5ff   :  { %2673 = vmatprep.subr.bf16.mxu1 %v2672_v56  ;;  %v1921_v56 = vld [vmem:[#allocation47 + $0x348] sm:$0xff] }
 0x602   :  { %2675 = vmatpush1.bf16.msra.mxu1 %v2674_v59  ;;  %v2684_v59 = vpack.c.bf16 %v1923_v57, %v1921_v56 }
 0x603   :  { %2677 = vmatprep.subr.bf16.mxu1 %v2676_v62  ;;  %v1925_v62 = vld [vmem:[#allocation47 + $0x368] sm:$0xff] }
 0x604   :  { %v2688_v3 = vpack.c.bf16 %v1927_v1, %v1925_v62  ;;  %v2028_v1 = vrot.slane %v2019_v55, %v4161_v6 }
 0x678   :  { %v2351_v34 = vpop.f32.mrb[0].mxu1 }
 0x679   :  { %v2352_v36 = vpop.f32.mrb[1].mxu1 }
 0x67a   :  { %v2353_v37 = vadd.f32 %v2352_v36, %v2351_v34 }
 0x67c   :  { %v1315_v38 = vadd.f32 %v2353_v37, %v2241_v35  ;;  %v2247_v35 = vld [vmem:[#allocation46] ss:$0 sm:$0xff]  ;;  %v2057_v37 = vld [vmem:[%s3928_s13 + $0x50] sm:$0xff] }
 0x67e   :  { %v1318_v40 = vmax.f32 %v1315_v38, 0.0  ;;  %v2386_v43 = vpop.f32.mrb[12].mxu0  ;;  %v2058_v38 = vld [vmem:[%s3928_s13 + $0x58] sm:$0xff] }
 0x67f   :  { %v2387_v47 = vpop.f32.mrb[13].mxu0 }
 0x680   :  { %v1326_v49 = vmul.f32 %v2242_v39, %v1318_v40  ;;  %v2388_v50 = vadd.f32 %v2387_v47, %v2386_v43  ;;  %v2730_v39 = vpack.c.bf16 %v2058_v38, %v2057_v37  ;;  %v2075_v40 = vld [vmem:[%s3928_s13 + $0xe0] sm:$0xff]  ;;  %v2078_v47 = vld [vmem:[%s3928_s13 + $0xf8] sm:$0xff] }
 0x681   :  { %v2732_v42 = vpack.c.bf16 %v2076_v41, %v2075_v40  ;;  %v2059_v43 = vld [vmem:[%s3928_s13 + $0x60] sm:$0xff] }
 0x682   :  { %v1334_v52 = vadd.f32 %v2243_v44, %v1326_v49  ;;  %v1565_v21 = vadd.f32 %v2388_v50, %v2245_v63  ;;  %2731 = vmatpush3.bf16.msra.mxu0 %v2730_v39  ;;  %v2060_v44 = vld [vmem:[%s3928_s13 + $0x68] sm:$0xff]  ;;  %v2736_v49 = vpack.c.bf16 %v2078_v47, %v2077_v46  ;;  %v2061_v50 = vld [vmem:[%s3928_s13 + $0x70] sm:$0xff] }
 0x683   :  { %v2734_v45 = vpack.c.bf16 %v2060_v44, %v2059_v43  ;;  %2733 = vmatprep.subr.bf16.mxu0 %v2732_v42 }
 0x684   :  { %1904 = vmatmul.mubr.f32.vlgmr.msra.gmra.mrb[2].mxu1 %v1334_v52  ;;  %v1568_v28 = vmax.f32 %v1565_v21, 0.0 }
 0x685   :  { %2679 = vmatpush1.bf16.msra.mxu1 %v2678_v51  ;;  %2008 = vmatprep.mubr.f32.mxu1 %v3718_v0  ;;  %v1930_v0 = vld [vmem:[#allocation47 + $0x390] sm:$0xff] }
 0x686   :  { %2681 = vmatprep.subr.bf16.mxu1 %v2680_v53  ;;  %v2694_v14 = vpack.c.bf16 %v1930_v0, %v1928_v12  ;;  %v1576_v34 = vmul.f32 %v2246_v32, %v1568_v28  ;;  %2735 = vmatpush3.bf16.msra.mxu0 %v2734_v45  ;;  %v2062_v51 = vld [vmem:[%s3928_s13 + $0x78] sm:$0xff]  ;;  %v1585_v53 = vld [vmem:[#allocation49] sm:$0x3]  ;;  %v2248_v0 = vld [vmem:[#allocation53] ss:$0 sm:$0xff]  ;;  %s3719_s13 = smov [#allocation55]  }
 0x687   :  { %v2738_v52 = vpack.c.bf16 %v2062_v51, %v2061_v50  ;;  %2737 = vmatprep.subr.bf16.mxu0 %v2736_v49  ;;  %v1693_v54 = vrot.slane %v1585_v53, %v4158_v4  ;;  %v1697_v56 = vrot.slane %v1585_v53, %v4161_v6  ;;  %s2164_s2 = sshll.u32 %s3719_s13, 4  ;;  %s2165_s2 = int_to_ptr.vmem [resolvable:$true] %s2164_s2 }
 0x688   :  { %v1584_v36 = vadd.f32 %v2247_v35, %v1576_v34  ;;  %s3578_s20 = scalar_lea.vmem %s2165_s2, 128  ;;  %p3583_p7 = scmp.lt.s32.totalorder %s2165_s2, %s2165_s2 }
 0x689   :  { %2683 = vmatpush1.bf16.msra.mxu1 %v2682_v58  ;;  %p3579_p6 = scmp.ne.s32.totalorder %s2165_s2, %s3578_s20  ;;  %p3584_p8 = scmp.lt.s32.totalorder %s3578_s20, %s3578_s20 }
 0x68a   :  { %2685 = vmatprep.subr.bf16.mxu1 %v2684_v59  ;;  %2739 = vmatpush3.bf16.msra.mxu0 %v2738_v52  ;;  %v2024_v59 = vrot.slane %v2019_v55, %v4158_v4 }
 0x68b   :  { %p3585_p9 = por %p3584_p8, %p3583_p7 }
 0x68d   :  { %2687 = vmatpush1.bf16.msra.mxu1 %v2686_v2  ;;  %p3586_p10 = pnand %p3585_p9, %p3579_p6 }
 0x68e   :  { %2689 = vmatprep.subr.bf16.mxu1 %v2688_v3 }
 0x691   :  { %2691 = vmatpush1.bf16.msra.mxu1 %v2690_v10 }
 0x692   :  { %2693 = vmatprep.subr.bf16.mxu1 %v2692_v11 }
 0x695   :  { %2695 = vmatpush1.bf16.msra.mxu1 %v2694_v14 }
 0x696   :  { %2697 = vmatprep.subr.bf16.mxu1 %v2696_v15 }
 0x699   :  { %2699 = vmatpush1.bf16.msra.mxu1 %v2698_v20 }
 0x69a   :  { %2701 = vmatprep.subr.bf16.mxu1 %v2700_v22 }
 0x69d   :  { %2703 = vmatpush1.bf16.msra.mxu1 %v2702_v27 }
 0x69e   :  { %2705 = vmatprep.subr.bf16.mxu1 %v2704_v29 }
 0x6a1   :  { %2707 = vmatpush1.bf16.msra.mxu1 %v2706_v33 }
 0x6a4   :  { %2009 = vmatmul.mubr.f32.vlgmr.msra.gmra.mrb[2].mxu1 %v1584_v36 }
 0x777   :  { %v2010_v57 = vpop.f32.mrb[2].mxu1 }
 0x778   :  { %v2740_v58 = vadd.f32 %v2010_v57, %v1693_v54  ;;  %v2012_v61 = vpop.f32.mrb[3].mxu1 }
 0x779   :  { %v2741_v62 = vadd.f32 %v2012_v61, %v1697_v56 }
 0x77a   :  { %v2017_v2 = vmax.f32 %v2740_v58, 0.0 }
 0x77b   :  { %v2018_v3 = vmax.f32 %v2741_v62, 0.0 }
 0x77c   :  { %v2031_v7 = vmul.f32 %v2024_v59, %v2017_v2 }
 0x77d   :  { %v2032_v9 = vmul.f32 %v2028_v1, %v2018_v3 }
 0x77e   :  { %v2045_v11 = vadd.f32 %v2038_v8, %v2031_v7 }
 0x77f   :  { %v2046_v10 = vadd.f32 %v2042_v5, %v2032_v9 }
 0x781   :  { %2150 = vmatprep.mubr.f32.mxu0 %v2046_v10 }
 0x782   :  { %2151 = vmatmul.mubr.f32.vlgmr.msra.gmra.mrb[14].mxu0 %v2045_v11 }
 0x855   :  { %v2421_v12 = vpop.f32.mrb[14].mxu0 }
 0x856   :  { %v2422_v48 = vpop.f32.mrb[15].mxu0 }
 0x857   :  { %v2423_v13 = vadd.f32 %v2422_v48, %v2421_v12 }
 0x859   :  { %v2153_v14 = vadd.f32 %v2423_v13, %v2248_v0 }
 0x85b   :  { %2157 = vst.msk [vmem:[#allocation55] sm:$0xff] %vm2156_vm4, %v2153_v14 }
 0x85c   :  { %3589 = shalt.err (!%p3586_p10)
}
 0x85d   :  { %s3590_s9 = scalar_lea.hbm %s3938_s5, 128 }
 0x85e   :  { %p3591_p11 = scmp.ne.s32.totalorder %s3938_s5, %s3590_s9  ;;  %p3594_p12 = scmp.lt.u32.totalorder %s3590_s9, %s3938_s5 }
 0x860   :  { %p3596_p13 = pnand %p3594_p12, %p3591_p11 }
 0x862   :  { %3599 = shalt.err (!%p3596_p13)
}
 0x863   :  { %2167 = dma.vmem_to_hbm [thread:$0]  %s2165_s2, 128, %s3938_s5, [#allocation4]  }
 0x864   :  { %3636 = dma.done.wait [#allocation4], 128  }
 0x865   :  { %3637 = vsyncadd [#allocation4], 4294967168 }
 0x866   :  { %2171 = vsyncpa [#allocation3], 1 }
 0x867   :  { %2172 = vsyncpa [#allocation6], 1 }
 0x868   :  { %2173 = vsyncpa [#allocation9], 1 }
 0x869   :  { %2174 = vsyncpa [#allocation12], 1 }
 0x86a   :  { %2175 = vsyncpa [#allocation15], 1 }
 0x86b   :  { %2176 = vsyncpa [#allocation18], 1 }
 0x86c   :  { %2177 = vsyncpa [#allocation21], 1 }
 0x86d   :  { %2178 = vsyncpa [#allocation24], 1 }
 0x86e   :  { %2179 = vsyncpa [#allocation27], 1 }
 0x86f   :  { %2180 = vsyncpa [#allocation30], 1 }
 0x870   :  { %2181 = vsyncpa [#allocation33], 1 }
 0x871   :  { %2182 = vsyncpa [#allocation36], 1 }
 0x872   :  { %2183 = vsyncpa [#allocation39], 1 }
 0x873   :  { %2184 = vsyncpa [#allocation42], 1 }
 0x874   :  { %2185 = vsyncpa [#allocation45], 1 }
 0x875   :  { %2186 = vsyncpa [#allocation48], 1 }
 0x876   :  { %2187 = vsyncpa [#allocation51], 1 }
 0x877   :  { %2188 = vsyncpa [#allocation54], 1 }
 0x878   :  { %2189 = vsyncpa [#allocation4], 1 }

</bundles_post_ra>
